<compile_context>
chip_gen: v7x
topology: tpu7x:2x2x1
jax: 0.10.0
libtpu: 0.0.40
codegen_flags: <defaults>
</compile_context>

<pallas_src>
import functools

import jax
import jax.numpy as jnp
from jax.experimental import pallas as pl
from jax.experimental.pallas import tpu as pltpu

_BN_EPS = 1e-5
_BF16 = jnp.bfloat16


# ------------------------------ Pallas kernel ------------------------------- #

def _fused_kernel(*refs, H2, W2, fuse_deconv):
    """Fused deconv + unetConv2 + RCCA chain, channel-major (C, H2*W2)."""
    (x_ref, low_ref, m_ref,
     upw_ref, upb_ref,
     c1wa_ref, c1wb_ref, c1b_ref,
     c2w_ref, c2b_ref,
     vaw_ref, vas_ref, vah_ref,
     vbw_ref, vbs_ref, vbh_ref,
     b1wa_ref, b1wb_ref, b1s_ref, b1h_ref,
     b2w_ref, b2b_ref,
     o_ref) = refs
    HW = H2 * W2

    m = m_ref[...]                                   # (13, HW) f32 {0,1} masks
    tap_m = [m[t:t + 1] for t in range(9)]           # 3x3 zero-padding masks
    par_m = [m[9 + k:10 + k] for k in range(4)]      # deconv output-parity masks

    x = x_ref[0].astype(jnp.float32)                 # (Ca, HW) channel-major

    if fuse_deconv:
        # ConvTranspose2d(k=2, s=2): x is the nearest-2x-upsampled input, so the
        # deconv is one (Co, 4*Cin) x (4*Cin, HW) matmul over four parity-masked
        # copies; the sub-pixel shuffle is never materialized.
        xcols = jnp.concatenate([x * pm for pm in par_m], axis=0).astype(_BF16)
        a0 = (jnp.dot(upw_ref[...], xcols, preferred_element_type=jnp.float32)
              + upb_ref[...])
    else:
        a0 = x        # multi-concat path: previous chain output is the next "up"

    shifts = [(-(dh * W2 + dw)) % HW
              for dh in (-1, 0, 1) for dw in (-1, 0, 1)]

    def im2col(a):
        # (C, HW) f32 -> (9*C, HW) bf16 via lane rolls (XLU) + zero-pad masks;
        # each 3x3 conv then becomes ONE lane-dense MXU matmul with K = 9*C.
        cols = []
        for t, sh in enumerate(shifts):
            r = a if sh == 0 else pltpu.roll(a, sh, axis=1)
            cols.append(r * tap_m[t])
        return jnp.concatenate(cols, axis=0).astype(_BF16)

    def conv(cols, w_ref):
        return jnp.dot(w_ref[...], cols, preferred_element_type=jnp.float32)

    def relu(v):
        return jnp.maximum(v, 0.0)

    low = low_ref[0].astype(jnp.float32)             # (Cl, HW)

    # --- unetConv2 conv1 over cat([up, low], C) as split-K (no concat in HBM) --
    y = relu(conv(im2col(a0), c1wa_ref) + conv(im2col(low), c1wb_ref)
             + c1b_ref[...])
    # --- unetConv2 conv2 -------------------------------------------------------
    x_in = relu(conv(im2col(y), c2w_ref) + c2b_ref[...])

    # --- RCCA conva (+ folded eval-mode BN); slab reused by the bottleneck -----
    cols_xin = im2col(x_in)
    za = relu(conv(cols_xin, vaw_ref) * vas_ref[...] + vah_ref[...])
    # TODO(synk): CC_module source is not provided; its gamma Parameter is 0 at
    # this deterministic init so the two recurrences are exactly the identity.
    # With trained weights the criss-cross attention would be missing here.
    # --- RCCA convb ------------------------------------------------------------
    zb = relu(conv(im2col(za), vbw_ref) * vbs_ref[...] + vbh_ref[...])
    # --- bottleneck 3x3 over cat([x_in, convb_out], C) as split-K --------------
    yb = relu((conv(cols_xin, b1wa_ref) + conv(im2col(zb), b1wb_ref))
              * b1s_ref[...] + b1h_ref[...])         # Dropout2d(0.1) eval = id
    # --- bottleneck 1x1 (+bias), stored lane-dense channel-major (Co, HW) ------
    o_ref[0] = (jnp.dot(b2w_ref[...], yb.astype(_BF16),
                        preferred_element_type=jnp.float32) + b2b_ref[...])


# --------------------------- pallas_call wrapper ----------------------------- #

def _const_idx(b, n):
    return (0,) * n


def _full_spec(arr):
    return pl.BlockSpec(arr.shape, functools.partial(_const_idx, n=arr.ndim))


_W_NAMES = ("up_w", "up_b",
            "c1_wa", "c1_wb", "c1_b",
            "c2_w", "c2_b",
            "va_w", "va_s", "va_h",
            "vb_w", "vb_s", "vb_h",
            "bt1_wa", "bt1_wb", "bt1_s", "bt1_h",
            "bt2_w", "bt2_b")


def _fused_call(kp, x_cm, low_cm, masks, *, H2, W2, fuse_deconv):
    """x_cm: (B, Ca, H2*W2) bf16, low_cm: (B, Cl, H2*W2) bf16 -> (B, Co, H2*W2) f32."""
    B, Ca, HW = x_cm.shape
    Cl = low_cm.shape[1]
    Co = kp["bt2_b"].shape[0]
    kernel = functools.partial(_fused_kernel, H2=H2, W2=W2,
                               fuse_deconv=fuse_deconv)
    weights = [kp[k] for k in _W_NAMES]
    return pl.pallas_call(
        kernel,
        out_shape=jax.ShapeDtypeStruct((B, Co, HW), jnp.float32),
        grid=(B,),
        in_specs=[pl.BlockSpec((1, Ca, HW), lambda b: (b, 0, 0)),
                  pl.BlockSpec((1, Cl, HW), lambda b: (b, 0, 0)),
                  _full_spec(masks)]
                 + [_full_spec(w) for w in weights],
        out_specs=pl.BlockSpec((1, Co, HW), lambda b: (b, 0, 0)),
        compiler_params=pltpu.CompilerParams(dimension_semantics=("parallel",)),
    )(x_cm, low_cm, masks, *weights)


def _make_masks(H2, W2):
    """(13, H2*W2) f32: rows 0..8 = 3x3 zero-pad masks (tap order (dh, dw)),
    rows 9..12 = deconv output-parity masks (order (di, dj))."""
    hh = jnp.arange(H2, dtype=jnp.int32).reshape(H2, 1)
    ww = jnp.arange(W2, dtype=jnp.int32).reshape(1, W2)
    rows = []
    for dh in (-1, 0, 1):
        for dw in (-1, 0, 1):
            ok = ((hh + dh >= 0) & (hh + dh < H2) &
                  (ww + dw >= 0) & (ww + dw < W2))
            rows.append(ok.reshape(-1))
    for di in (0, 1):
        for dj in (0, 1):
            rows.append(((hh % 2 == di) & (ww % 2 == dj)).reshape(-1))
    return jnp.stack(rows).astype(jnp.float32)


# --------------------------- parameters (deterministic) ---------------------- #

def init_params(key, in_size, out_size):
    inter = out_size // 4
    ks = jax.random.split(key, 14)

    def kaiming(k, shape, fan_in):
        return jax.random.normal(k, shape, jnp.float32) * jnp.sqrt(2.0 / fan_in)

    def small(k, shape):
        return 0.01 * jax.random.normal(k, shape, jnp.float32)

    p = {}
    # up: ConvTranspose2d(in_size, out_size, 2, 2); stored (Cin, di, dj, Co)
    # (internally consistent self-init layout).
    p["up_w"] = kaiming(ks[0], (in_size, 2, 2, out_size), out_size * 4)
    p["up_b"] = small(ks[1], (out_size,))
    # unetConv2(in_size, out_size, is_batchnorm=False): 2x (conv3x3+bias+ReLU)
    p["c1_w"] = kaiming(ks[2], (3, 3, in_size, out_size), in_size * 9)
    p["c1_b"] = small(ks[3], (out_size,))
    p["c2_w"] = kaiming(ks[4], (3, 3, out_size, out_size), out_size * 9)
    p["c2_b"] = small(ks[5], (out_size,))
    # RCCAModule(out_size, out_size); inter = out_size // 4
    p["va_w"] = kaiming(ks[6], (3, 3, out_size, inter), out_size * 9)
    p["va_g"] = 1.0 + 0.02 * jax.random.normal(ks[7], (inter,), jnp.float32)
    p["vb_w"] = kaiming(ks[8], (3, 3, inter, inter), inter * 9)
    p["vb_g"] = 1.0 + 0.02 * jax.random.normal(ks[9], (inter,), jnp.float32)
    p["bt1_w"] = kaiming(ks[10], (3, 3, out_size + inter, inter),
                         (out_size + inter) * 9)
    p["bt1_g"] = 1.0 + 0.02 * jax.random.normal(ks[11], (inter,), jnp.float32)
    p["bt2_w"] = kaiming(ks[12], (inter, out_size), inter)
    p["bt2_b"] = small(ks[13], (out_size,))
    return p


def prepare_params(p):
    """Pack logical params into kernel layouts: channel-major (Cout, K) bf16
    weights, per-channel (C, 1) f32 scales/biases, folded eval-mode BN."""
    Co = p["up_b"].shape[0]

    def fold_bn(gamma):
        # eval-mode BatchNorm at init: running_mean=0, running_var=1, beta=0.
        # TODO(synk): with a loaded checkpoint, fold the real running stats/beta.
        scale = (gamma / jnp.sqrt(1.0 + _BN_EPS)).reshape(-1, 1).astype(jnp.float32)
        return scale, jnp.zeros_like(scale)

    def conv_cm(w):          # (3, 3, Cin, Cout) -> (Cout, 9*Cin), cols (kh, kw, cin)
        co = w.shape[3]
        return jnp.transpose(w, (3, 0, 1, 2)).reshape(co, -1).astype(_BF16)

    def col(v):
        return v.reshape(-1, 1).astype(jnp.float32)

    va_s, va_h = fold_bn(p["va_g"])
    vb_s, vb_h = fold_bn(p["vb_g"])
    b1_s, b1_h = fold_bn(p["bt1_g"])
    return {
        # deconv: (Co, 4*Cin), column blocks ordered (di, dj), cin within block
        "up_w": jnp.transpose(p["up_w"], (3, 1, 2, 0)).reshape(Co, -1).astype(_BF16),
        "up_b": col(p["up_b"]),
        "c1_wa": conv_cm(p["c1_w"][:, :, :Co, :]),     # split-K: up half
        "c1_wb": conv_cm(p["c1_w"][:, :, Co:, :]),     # split-K: low half
        "c1_b": col(p["c1_b"]),
        "c2_w": conv_cm(p["c2_w"]), "c2_b": col(p["c2_b"]),
        "va_w": conv_cm(p["va_w"]), "va_s": va_s, "va_h": va_h,
        "vb_w": conv_cm(p["vb_w"]), "vb_s": vb_s, "vb_h": vb_h,
        "bt1_wa": conv_cm(p["bt1_w"][:, :, :Co, :]),   # split-K: x_in half
        "bt1_wb": conv_cm(p["bt1_w"][:, :, Co:, :]),   # split-K: convb half
        "bt1_s": b1_s, "bt1_h": b1_h,
        "bt2_w": p["bt2_w"].T.astype(_BF16),           # (Co, inter)
        "bt2_b": col(p["bt2_b"]),
    }


# ------------------------------ unetUp forward ------------------------------- #

def unet_up_forward(kp, high_nchw, *low_nchw):
    """high_nchw: (B, in_size, H, W); low_nchw: (B, in_size - out_size, 2H, 2W)."""
    B, Cin, H, W = high_nchw.shape
    H2, W2 = 2 * H, 2 * W
    HW = H2 * W2
    Co = kp["bt2_b"].shape[0]

    if not low_nchw:
        # Rare path (no concat): just the ConvTranspose2d, done in plain XLA.
        w4 = kp["up_w"].reshape(Co, 2, 2, Cin).astype(jnp.float32)
        u = jnp.einsum("bchw,odec->bohdwe", high_nchw, w4)
        return u.reshape(B, Co, H2, W2) + kp["up_b"].reshape(1, Co, 1, 1)

    # Nearest-2x upsample (cheap XLA broadcast).  The 2x2/stride-2 deconv then
    # becomes parity-masked 1x1 matmuls inside the fused kernel, so the up
    # result never round-trips HBM and no NCHW<->NHWC transposes are needed.
    xup = jnp.repeat(jnp.repeat(high_nchw, 2, axis=2), 2, axis=3)
    x_cm = xup.reshape(B, Cin, HW).astype(_BF16)
    masks = _make_masks(H2, W2)      # constant; folded by XLA under jit

    out = None
    fuse_deconv = True
    for feat_nchw in low_nchw:
        low_cm = feat_nchw.reshape(B, feat_nchw.shape[1], HW).astype(_BF16)
        out = _fused_call(kp, x_cm, low_cm, masks, H2=H2, W2=W2,
                          fuse_deconv=fuse_deconv)
        # Multi-concat path: previous chain output feeds the next concat (valid
        # when the extra features match the c1 split-K channel counts).
        x_cm = out.astype(_BF16)
        fuse_deconv = False

    # Output is already channel-major and lane-dense: free reshape to NCHW.
    return out.reshape(B, Co, H2, W2)


# ------------------------------------ main ----------------------------------- #

if __name__ == "__main__":
    in_size, out_size = 64, 32     # out_size divisible by 4 (RCCA inter channels)
    B, H, W = 2, 8, 8              # high_feature spatial; output is 2H x 2W

    key = jax.random.PRNGKey(0)
    k_par, k_hi, k_lo = jax.random.split(key, 3)
    params = init_params(k_par, in_size, out_size)
    kparams = prepare_params(params)

    high_feature = jax.random.normal(k_hi, (B, in_size, H, W), jnp.float32)    # NCHW
    low_feature = jax.random.normal(k_lo, (B, in_size - out_size, 2 * H, 2 * W),
                                    jnp.float32)                                # NCHW

    fwd = jax.jit(unet_up_forward)
    out = jax.block_until_ready(fwd(kparams, high_feature, low_feature))
    assert out.shape == (B, out_size, 2 * H, 2 * W), out.shape
    assert bool(jnp.all(jnp.isfinite(out)))
    print("KERNEL_OK")
</pallas_src>

<mosaic_0001>
module attributes {stable_mosaic.version = 11 : i64} {
  func.func @_fused_kernel(%arg0: i32, %arg1: memref<1x64x256xbf16, #tpu.memory_space<vmem>>, %arg2: memref<1x32x256xbf16, #tpu.memory_space<vmem>>, %arg3: memref<13x256xf32, #tpu.memory_space<vmem>>, %arg4: memref<32x256xbf16, #tpu.memory_space<vmem>>, %arg5: memref<32x1xf32, #tpu.memory_space<vmem>>, %arg6: memref<32x288xbf16, #tpu.memory_space<vmem>>, %arg7: memref<32x288xbf16, #tpu.memory_space<vmem>>, %arg8: memref<32x1xf32, #tpu.memory_space<vmem>>, %arg9: memref<32x288xbf16, #tpu.memory_space<vmem>>, %arg10: memref<32x1xf32, #tpu.memory_space<vmem>>, %arg11: memref<8x288xbf16, #tpu.memory_space<vmem>>, %arg12: memref<8x1xf32, #tpu.memory_space<vmem>>, %arg13: memref<8x1xf32, #tpu.memory_space<vmem>>, %arg14: memref<8x72xbf16, #tpu.memory_space<vmem>>, %arg15: memref<8x1xf32, #tpu.memory_space<vmem>>, %arg16: memref<8x1xf32, #tpu.memory_space<vmem>>, %arg17: memref<8x288xbf16, #tpu.memory_space<vmem>>, %arg18: memref<8x72xbf16, #tpu.memory_space<vmem>>, %arg19: memref<8x1xf32, #tpu.memory_space<vmem>>, %arg20: memref<8x1xf32, #tpu.memory_space<vmem>>, %arg21: memref<32x8xbf16, #tpu.memory_space<vmem>>, %arg22: memref<32x1xf32, #tpu.memory_space<vmem>>, %arg23: memref<1x32x256xf32, #tpu.memory_space<vmem>>) attributes {dimension_semantics = [#tpu.dimension_semantics<parallel>], iteration_bounds = array<i64: 2>, scalar_prefetch = 0 : i64, scratch_operands = 0 : i64, tpu.core_type = #tpu.core_type<tc>, window_params = [{transform_indices = @transform_0, window_bounds = array<i64: 1, 64, 256>}, {transform_indices = @transform_1, window_bounds = array<i64: 1, 32, 256>}, {pipeline_mode = #tpu.pipeline_mode<synchronous>, transform_indices = @transform_2, window_bounds = array<i64: 13, 256>}, {pipeline_mode = #tpu.pipeline_mode<synchronous>, transform_indices = @transform_3, window_bounds = array<i64: 32, 256>}, {pipeline_mode = #tpu.pipeline_mode<synchronous>, transform_indices = @transform_4, window_bounds = array<i64: 32, 1>}, {pipeline_mode = #tpu.pipeline_mode<synchronous>, transform_indices = @transform_5, window_bounds = array<i64: 32, 288>}, {pipeline_mode = #tpu.pipeline_mode<synchronous>, transform_indices = @transform_6, window_bounds = array<i64: 32, 288>}, {pipeline_mode = #tpu.pipeline_mode<synchronous>, transform_indices = @transform_7, window_bounds = array<i64: 32, 1>}, {pipeline_mode = #tpu.pipeline_mode<synchronous>, transform_indices = @transform_8, window_bounds = array<i64: 32, 288>}, {pipeline_mode = #tpu.pipeline_mode<synchronous>, transform_indices = @transform_9, window_bounds = array<i64: 32, 1>}, {pipeline_mode = #tpu.pipeline_mode<synchronous>, transform_indices = @transform_10, window_bounds = array<i64: 8, 288>}, {pipeline_mode = #tpu.pipeline_mode<synchronous>, transform_indices = @transform_11, window_bounds = array<i64: 8, 1>}, {pipeline_mode = #tpu.pipeline_mode<synchronous>, transform_indices = @transform_12, window_bounds = array<i64: 8, 1>}, {pipeline_mode = #tpu.pipeline_mode<synchronous>, transform_indices = @transform_13, window_bounds = array<i64: 8, 72>}, {pipeline_mode = #tpu.pipeline_mode<synchronous>, transform_indices = @transform_14, window_bounds = array<i64: 8, 1>}, {pipeline_mode = #tpu.pipeline_mode<synchronous>, transform_indices = @transform_15, window_bounds = array<i64: 8, 1>}, {pipeline_mode = #tpu.pipeline_mode<synchronous>, transform_indices = @transform_16, window_bounds = array<i64: 8, 288>}, {pipeline_mode = #tpu.pipeline_mode<synchronous>, transform_indices = @transform_17, window_bounds = array<i64: 8, 72>}, {pipeline_mode = #tpu.pipeline_mode<synchronous>, transform_indices = @transform_18, window_bounds = array<i64: 8, 1>}, {pipeline_mode = #tpu.pipeline_mode<synchronous>, transform_indices = @transform_19, window_bounds = array<i64: 8, 1>}, {pipeline_mode = #tpu.pipeline_mode<synchronous>, transform_indices = @transform_20, window_bounds = array<i64: 32, 8>}, {pipeline_mode = #tpu.pipeline_mode<synchronous>, transform_indices = @transform_21, window_bounds = array<i64: 32, 1>}, {transform_indices = @transform_22, window_bounds = array<i64: 1, 32, 256>}]} {
    %c0 = arith.constant 0 : index
    %c0_0 = arith.constant 0 : index
    %0 = vector.load %arg3[%c0, %c0_0] : memref<13x256xf32, #tpu.memory_space<vmem>>, vector<13x256xf32>
    %1 = vector.extract_strided_slice %0 {offsets = [0, 0], sizes = [1, 256], strides = [1, 1]} : vector<13x256xf32> to vector<1x256xf32>
    %2 = vector.extract_strided_slice %0 {offsets = [1, 0], sizes = [1, 256], strides = [1, 1]} : vector<13x256xf32> to vector<1x256xf32>
    %3 = vector.extract_strided_slice %0 {offsets = [2, 0], sizes = [1, 256], strides = [1, 1]} : vector<13x256xf32> to vector<1x256xf32>
    %4 = vector.extract_strided_slice %0 {offsets = [3, 0], sizes = [1, 256], strides = [1, 1]} : vector<13x256xf32> to vector<1x256xf32>
    %5 = vector.extract_strided_slice %0 {offsets = [4, 0], sizes = [1, 256], strides = [1, 1]} : vector<13x256xf32> to vector<1x256xf32>
    %6 = vector.extract_strided_slice %0 {offsets = [5, 0], sizes = [1, 256], strides = [1, 1]} : vector<13x256xf32> to vector<1x256xf32>
    %7 = vector.extract_strided_slice %0 {offsets = [6, 0], sizes = [1, 256], strides = [1, 1]} : vector<13x256xf32> to vector<1x256xf32>
    %8 = vector.extract_strided_slice %0 {offsets = [7, 0], sizes = [1, 256], strides = [1, 1]} : vector<13x256xf32> to vector<1x256xf32>
    %9 = vector.extract_strided_slice %0 {offsets = [8, 0], sizes = [1, 256], strides = [1, 1]} : vector<13x256xf32> to vector<1x256xf32>
    %10 = vector.extract_strided_slice %0 {offsets = [9, 0], sizes = [1, 256], strides = [1, 1]} : vector<13x256xf32> to vector<1x256xf32>
    %11 = vector.extract_strided_slice %0 {offsets = [10, 0], sizes = [1, 256], strides = [1, 1]} : vector<13x256xf32> to vector<1x256xf32>
    %12 = vector.extract_strided_slice %0 {offsets = [11, 0], sizes = [1, 256], strides = [1, 1]} : vector<13x256xf32> to vector<1x256xf32>
    %13 = vector.extract_strided_slice %0 {offsets = [12, 0], sizes = [1, 256], strides = [1, 1]} : vector<13x256xf32> to vector<1x256xf32>
    %c0_1 = arith.constant 0 : index
    %c0_2 = arith.constant 0 : index
    %c0_3 = arith.constant 0 : index
    %14 = vector.load %arg1[%c0_1, %c0_2, %c0_3] : memref<1x64x256xbf16, #tpu.memory_space<vmem>>, vector<1x64x256xbf16>
    %15 = vector.shape_cast %14 : vector<1x64x256xbf16> to vector<64x256xbf16>
    %16 = arith.extf %15 : vector<64x256xbf16> to vector<64x256xf32>
    %17 = vector.broadcast %10 : vector<1x256xf32> to vector<64x256xf32>
    %18 = arith.mulf %16, %17 : vector<64x256xf32>
    %19 = vector.broadcast %11 : vector<1x256xf32> to vector<64x256xf32>
    %20 = arith.mulf %16, %19 : vector<64x256xf32>
    %21 = vector.broadcast %12 : vector<1x256xf32> to vector<64x256xf32>
    %22 = arith.mulf %16, %21 : vector<64x256xf32>
    %23 = vector.broadcast %13 : vector<1x256xf32> to vector<64x256xf32>
    %24 = arith.mulf %16, %23 : vector<64x256xf32>
    %25 = tpu.concatenate %18, %20, %22, %24 in 0 : vector<64x256xf32>, vector<64x256xf32>, vector<64x256xf32>, vector<64x256xf32> -> vector<256x256xf32>
    %26 = arith.truncf %25 : vector<256x256xf32> to vector<256x256xbf16>
    %c0_4 = arith.constant 0 : index
    %c0_5 = arith.constant 0 : index
    %27 = vector.load %arg4[%c0_4, %c0_5] : memref<32x256xbf16, #tpu.memory_space<vmem>>, vector<32x256xbf16>
    %cst = arith.constant dense<0.000000e+00> : vector<32x256xf32>
    %28 = tpu.matmul %27, %26, %cst {dimension_numbers = #tpu.dot_dimension_numbers<[1], [0], [0], [1], [0, 0, 1, 1], [], []>} : vector<32x256xbf16>, vector<256x256xbf16>, vector<32x256xf32> -> vector<32x256xf32>
    %c0_6 = arith.constant 0 : index
    %c0_7 = arith.constant 0 : index
    %29 = vector.load %arg5[%c0_6, %c0_7] : memref<32x1xf32, #tpu.memory_space<vmem>>, vector<32x1xf32>
    %30 = vector.broadcast %29 : vector<32x1xf32> to vector<32x256xf32>
    %31 = arith.addf %28, %30 : vector<32x256xf32>
    %c0_8 = arith.constant 0 : index
    %c0_9 = arith.constant 0 : index
    %c0_10 = arith.constant 0 : index
    %32 = vector.load %arg2[%c0_8, %c0_9, %c0_10] : memref<1x32x256xbf16, #tpu.memory_space<vmem>>, vector<1x32x256xbf16>
    %33 = vector.shape_cast %32 : vector<1x32x256xbf16> to vector<32x256xbf16>
    %34 = arith.extf %33 : vector<32x256xbf16> to vector<32x256xf32>
    %c17_i32 = arith.constant 17 : i32
    %35 = tpu.dynamic_rotate %31 by %c17_i32 dim 1 : vector<32x256xf32>, i32 -> vector<32x256xf32>
    %36 = vector.broadcast %1 : vector<1x256xf32> to vector<32x256xf32>
    %37 = arith.mulf %35, %36 : vector<32x256xf32>
    %c16_i32 = arith.constant 16 : i32
    %38 = tpu.dynamic_rotate %31 by %c16_i32 dim 1 : vector<32x256xf32>, i32 -> vector<32x256xf32>
    %39 = vector.broadcast %2 : vector<1x256xf32> to vector<32x256xf32>
    %40 = arith.mulf %38, %39 : vector<32x256xf32>
    %c15_i32 = arith.constant 15 : i32
    %41 = tpu.dynamic_rotate %31 by %c15_i32 dim 1 : vector<32x256xf32>, i32 -> vector<32x256xf32>
    %42 = vector.broadcast %3 : vector<1x256xf32> to vector<32x256xf32>
    %43 = arith.mulf %41, %42 : vector<32x256xf32>
    %c1_i32 = arith.constant 1 : i32
    %44 = tpu.dynamic_rotate %31 by %c1_i32 dim 1 : vector<32x256xf32>, i32 -> vector<32x256xf32>
    %45 = vector.broadcast %4 : vector<1x256xf32> to vector<32x256xf32>
    %46 = arith.mulf %44, %45 : vector<32x256xf32>
    %47 = vector.broadcast %5 : vector<1x256xf32> to vector<32x256xf32>
    %48 = arith.mulf %31, %47 : vector<32x256xf32>
    %c255_i32 = arith.constant 255 : i32
    %49 = tpu.dynamic_rotate %31 by %c255_i32 dim 1 : vector<32x256xf32>, i32 -> vector<32x256xf32>
    %50 = vector.broadcast %6 : vector<1x256xf32> to vector<32x256xf32>
    %51 = arith.mulf %49, %50 : vector<32x256xf32>
    %c241_i32 = arith.constant 241 : i32
    %52 = tpu.dynamic_rotate %31 by %c241_i32 dim 1 : vector<32x256xf32>, i32 -> vector<32x256xf32>
    %53 = vector.broadcast %7 : vector<1x256xf32> to vector<32x256xf32>
    %54 = arith.mulf %52, %53 : vector<32x256xf32>
    %c240_i32 = arith.constant 240 : i32
    %55 = tpu.dynamic_rotate %31 by %c240_i32 dim 1 : vector<32x256xf32>, i32 -> vector<32x256xf32>
    %56 = vector.broadcast %8 : vector<1x256xf32> to vector<32x256xf32>
    %57 = arith.mulf %55, %56 : vector<32x256xf32>
    %c239_i32 = arith.constant 239 : i32
    %58 = tpu.dynamic_rotate %31 by %c239_i32 dim 1 : vector<32x256xf32>, i32 -> vector<32x256xf32>
    %59 = vector.broadcast %9 : vector<1x256xf32> to vector<32x256xf32>
    %60 = arith.mulf %58, %59 : vector<32x256xf32>
    %61 = tpu.concatenate %37, %40, %43, %46, %48, %51, %54, %57, %60 in 0 : vector<32x256xf32>, vector<32x256xf32>, vector<32x256xf32>, vector<32x256xf32>, vector<32x256xf32>, vector<32x256xf32>, vector<32x256xf32>, vector<32x256xf32>, vector<32x256xf32> -> vector<288x256xf32>
    %62 = arith.truncf %61 : vector<288x256xf32> to vector<288x256xbf16>
    %c0_11 = arith.constant 0 : index
    %c0_12 = arith.constant 0 : index
    %63 = vector.load %arg6[%c0_11, %c0_12] : memref<32x288xbf16, #tpu.memory_space<vmem>>, vector<32x288xbf16>
    %cst_13 = arith.constant dense<0.000000e+00> : vector<32x256xf32>
    %64 = tpu.matmul %63, %62, %cst_13 {dimension_numbers = #tpu.dot_dimension_numbers<[1], [0], [0], [1], [0, 0, 1, 1], [], []>} : vector<32x288xbf16>, vector<288x256xbf16>, vector<32x256xf32> -> vector<32x256xf32>
    %c17_i32_14 = arith.constant 17 : i32
    %65 = tpu.dynamic_rotate %34 by %c17_i32_14 dim 1 : vector<32x256xf32>, i32 -> vector<32x256xf32>
    %66 = vector.broadcast %1 : vector<1x256xf32> to vector<32x256xf32>
    %67 = arith.mulf %65, %66 : vector<32x256xf32>
    %c16_i32_15 = arith.constant 16 : i32
    %68 = tpu.dynamic_rotate %34 by %c16_i32_15 dim 1 : vector<32x256xf32>, i32 -> vector<32x256xf32>
    %69 = vector.broadcast %2 : vector<1x256xf32> to vector<32x256xf32>
    %70 = arith.mulf %68, %69 : vector<32x256xf32>
    %c15_i32_16 = arith.constant 15 : i32
    %71 = tpu.dynamic_rotate %34 by %c15_i32_16 dim 1 : vector<32x256xf32>, i32 -> vector<32x256xf32>
    %72 = vector.broadcast %3 : vector<1x256xf32> to vector<32x256xf32>
    %73 = arith.mulf %71, %72 : vector<32x256xf32>
    %c1_i32_17 = arith.constant 1 : i32
    %74 = tpu.dynamic_rotate %34 by %c1_i32_17 dim 1 : vector<32x256xf32>, i32 -> vector<32x256xf32>
    %75 = vector.broadcast %4 : vector<1x256xf32> to vector<32x256xf32>
    %76 = arith.mulf %74, %75 : vector<32x256xf32>
    %77 = vector.broadcast %5 : vector<1x256xf32> to vector<32x256xf32>
    %78 = arith.mulf %34, %77 : vector<32x256xf32>
    %c255_i32_18 = arith.constant 255 : i32
    %79 = tpu.dynamic_rotate %34 by %c255_i32_18 dim 1 : vector<32x256xf32>, i32 -> vector<32x256xf32>
    %80 = vector.broadcast %6 : vector<1x256xf32> to vector<32x256xf32>
    %81 = arith.mulf %79, %80 : vector<32x256xf32>
    %c241_i32_19 = arith.constant 241 : i32
    %82 = tpu.dynamic_rotate %34 by %c241_i32_19 dim 1 : vector<32x256xf32>, i32 -> vector<32x256xf32>
    %83 = vector.broadcast %7 : vector<1x256xf32> to vector<32x256xf32>
    %84 = arith.mulf %82, %83 : vector<32x256xf32>
    %c240_i32_20 = arith.constant 240 : i32
    %85 = tpu.dynamic_rotate %34 by %c240_i32_20 dim 1 : vector<32x256xf32>, i32 -> vector<32x256xf32>
    %86 = vector.broadcast %8 : vector<1x256xf32> to vector<32x256xf32>
    %87 = arith.mulf %85, %86 : vector<32x256xf32>
    %c239_i32_21 = arith.constant 239 : i32
    %88 = tpu.dynamic_rotate %34 by %c239_i32_21 dim 1 : vector<32x256xf32>, i32 -> vector<32x256xf32>
    %89 = vector.broadcast %9 : vector<1x256xf32> to vector<32x256xf32>
    %90 = arith.mulf %88, %89 : vector<32x256xf32>
    %91 = tpu.concatenate %67, %70, %73, %76, %78, %81, %84, %87, %90 in 0 : vector<32x256xf32>, vector<32x256xf32>, vector<32x256xf32>, vector<32x256xf32>, vector<32x256xf32>, vector<32x256xf32>, vector<32x256xf32>, vector<32x256xf32>, vector<32x256xf32> -> vector<288x256xf32>
    %92 = arith.truncf %91 : vector<288x256xf32> to vector<288x256xbf16>
    %c0_22 = arith.constant 0 : index
    %c0_23 = arith.constant 0 : index
    %93 = vector.load %arg7[%c0_22, %c0_23] : memref<32x288xbf16, #tpu.memory_space<vmem>>, vector<32x288xbf16>
    %cst_24 = arith.constant dense<0.000000e+00> : vector<32x256xf32>
    %94 = tpu.matmul %93, %92, %cst_24 {dimension_numbers = #tpu.dot_dimension_numbers<[1], [0], [0], [1], [0, 0, 1, 1], [], []>} : vector<32x288xbf16>, vector<288x256xbf16>, vector<32x256xf32> -> vector<32x256xf32>
    %95 = arith.addf %64, %94 : vector<32x256xf32>
    %c0_25 = arith.constant 0 : index
    %c0_26 = arith.constant 0 : index
    %96 = vector.load %arg8[%c0_25, %c0_26] : memref<32x1xf32, #tpu.memory_space<vmem>>, vector<32x1xf32>
    %97 = vector.broadcast %96 : vector<32x1xf32> to vector<32x256xf32>
    %98 = arith.addf %95, %97 : vector<32x256xf32>
    %cst_27 = arith.constant 0.000000e+00 : f32
    %99 = vector.broadcast %cst_27 : f32 to vector<32x256xf32>
    %100 = arith.maximumf %98, %99 : vector<32x256xf32>
    %c17_i32_28 = arith.constant 17 : i32
    %101 = tpu.dynamic_rotate %100 by %c17_i32_28 dim 1 : vector<32x256xf32>, i32 -> vector<32x256xf32>
    %102 = vector.broadcast %1 : vector<1x256xf32> to vector<32x256xf32>
    %103 = arith.mulf %101, %102 : vector<32x256xf32>
    %c16_i32_29 = arith.constant 16 : i32
    %104 = tpu.dynamic_rotate %100 by %c16_i32_29 dim 1 : vector<32x256xf32>, i32 -> vector<32x256xf32>
    %105 = vector.broadcast %2 : vector<1x256xf32> to vector<32x256xf32>
    %106 = arith.mulf %104, %105 : vector<32x256xf32>
    %c15_i32_30 = arith.constant 15 : i32
    %107 = tpu.dynamic_rotate %100 by %c15_i32_30 dim 1 : vector<32x256xf32>, i32 -> vector<32x256xf32>
    %108 = vector.broadcast %3 : vector<1x256xf32> to vector<32x256xf32>
    %109 = arith.mulf %107, %108 : vector<32x256xf32>
    %c1_i32_31 = arith.constant 1 : i32
    %110 = tpu.dynamic_rotate %100 by %c1_i32_31 dim 1 : vector<32x256xf32>, i32 -> vector<32x256xf32>
    %111 = vector.broadcast %4 : vector<1x256xf32> to vector<32x256xf32>
    %112 = arith.mulf %110, %111 : vector<32x256xf32>
    %113 = vector.broadcast %5 : vector<1x256xf32> to vector<32x256xf32>
    %114 = arith.mulf %100, %113 : vector<32x256xf32>
    %c255_i32_32 = arith.constant 255 : i32
    %115 = tpu.dynamic_rotate %100 by %c255_i32_32 dim 1 : vector<32x256xf32>, i32 -> vector<32x256xf32>
    %116 = vector.broadcast %6 : vector<1x256xf32> to vector<32x256xf32>
    %117 = arith.mulf %115, %116 : vector<32x256xf32>
    %c241_i32_33 = arith.constant 241 : i32
    %118 = tpu.dynamic_rotate %100 by %c241_i32_33 dim 1 : vector<32x256xf32>, i32 -> vector<32x256xf32>
    %119 = vector.broadcast %7 : vector<1x256xf32> to vector<32x256xf32>
    %120 = arith.mulf %118, %119 : vector<32x256xf32>
    %c240_i32_34 = arith.constant 240 : i32
    %121 = tpu.dynamic_rotate %100 by %c240_i32_34 dim 1 : vector<32x256xf32>, i32 -> vector<32x256xf32>
    %122 = vector.broadcast %8 : vector<1x256xf32> to vector<32x256xf32>
    %123 = arith.mulf %121, %122 : vector<32x256xf32>
    %c239_i32_35 = arith.constant 239 : i32
    %124 = tpu.dynamic_rotate %100 by %c239_i32_35 dim 1 : vector<32x256xf32>, i32 -> vector<32x256xf32>
    %125 = vector.broadcast %9 : vector<1x256xf32> to vector<32x256xf32>
    %126 = arith.mulf %124, %125 : vector<32x256xf32>
    %127 = tpu.concatenate %103, %106, %109, %112, %114, %117, %120, %123, %126 in 0 : vector<32x256xf32>, vector<32x256xf32>, vector<32x256xf32>, vector<32x256xf32>, vector<32x256xf32>, vector<32x256xf32>, vector<32x256xf32>, vector<32x256xf32>, vector<32x256xf32> -> vector<288x256xf32>
    %128 = arith.truncf %127 : vector<288x256xf32> to vector<288x256xbf16>
    %c0_36 = arith.constant 0 : index
    %c0_37 = arith.constant 0 : index
    %129 = vector.load %arg9[%c0_36, %c0_37] : memref<32x288xbf16, #tpu.memory_space<vmem>>, vector<32x288xbf16>
    %cst_38 = arith.constant dense<0.000000e+00> : vector<32x256xf32>
    %130 = tpu.matmul %129, %128, %cst_38 {dimension_numbers = #tpu.dot_dimension_numbers<[1], [0], [0], [1], [0, 0, 1, 1], [], []>} : vector<32x288xbf16>, vector<288x256xbf16>, vector<32x256xf32> -> vector<32x256xf32>
    %c0_39 = arith.constant 0 : index
    %c0_40 = arith.constant 0 : index
    %131 = vector.load %arg10[%c0_39, %c0_40] : memref<32x1xf32, #tpu.memory_space<vmem>>, vector<32x1xf32>
    %132 = vector.broadcast %131 : vector<32x1xf32> to vector<32x256xf32>
    %133 = arith.addf %130, %132 : vector<32x256xf32>
    %cst_41 = arith.constant 0.000000e+00 : f32
    %134 = vector.broadcast %cst_41 : f32 to vector<32x256xf32>
    %135 = arith.maximumf %133, %134 : vector<32x256xf32>
    %c17_i32_42 = arith.constant 17 : i32
    %136 = tpu.dynamic_rotate %135 by %c17_i32_42 dim 1 : vector<32x256xf32>, i32 -> vector<32x256xf32>
    %137 = vector.broadcast %1 : vector<1x256xf32> to vector<32x256xf32>
    %138 = arith.mulf %136, %137 : vector<32x256xf32>
    %c16_i32_43 = arith.constant 16 : i32
    %139 = tpu.dynamic_rotate %135 by %c16_i32_43 dim 1 : vector<32x256xf32>, i32 -> vector<32x256xf32>
    %140 = vector.broadcast %2 : vector<1x256xf32> to vector<32x256xf32>
    %141 = arith.mulf %139, %140 : vector<32x256xf32>
    %c15_i32_44 = arith.constant 15 : i32
    %142 = tpu.dynamic_rotate %135 by %c15_i32_44 dim 1 : vector<32x256xf32>, i32 -> vector<32x256xf32>
    %143 = vector.broadcast %3 : vector<1x256xf32> to vector<32x256xf32>
    %144 = arith.mulf %142, %143 : vector<32x256xf32>
    %c1_i32_45 = arith.constant 1 : i32
    %145 = tpu.dynamic_rotate %135 by %c1_i32_45 dim 1 : vector<32x256xf32>, i32 -> vector<32x256xf32>
    %146 = vector.broadcast %4 : vector<1x256xf32> to vector<32x256xf32>
    %147 = arith.mulf %145, %146 : vector<32x256xf32>
    %148 = vector.broadcast %5 : vector<1x256xf32> to vector<32x256xf32>
    %149 = arith.mulf %135, %148 : vector<32x256xf32>
    %c255_i32_46 = arith.constant 255 : i32
    %150 = tpu.dynamic_rotate %135 by %c255_i32_46 dim 1 : vector<32x256xf32>, i32 -> vector<32x256xf32>
    %151 = vector.broadcast %6 : vector<1x256xf32> to vector<32x256xf32>
    %152 = arith.mulf %150, %151 : vector<32x256xf32>
    %c241_i32_47 = arith.constant 241 : i32
    %153 = tpu.dynamic_rotate %135 by %c241_i32_47 dim 1 : vector<32x256xf32>, i32 -> vector<32x256xf32>
    %154 = vector.broadcast %7 : vector<1x256xf32> to vector<32x256xf32>
    %155 = arith.mulf %153, %154 : vector<32x256xf32>
    %c240_i32_48 = arith.constant 240 : i32
    %156 = tpu.dynamic_rotate %135 by %c240_i32_48 dim 1 : vector<32x256xf32>, i32 -> vector<32x256xf32>
    %157 = vector.broadcast %8 : vector<1x256xf32> to vector<32x256xf32>
    %158 = arith.mulf %156, %157 : vector<32x256xf32>
    %c239_i32_49 = arith.constant 239 : i32
    %159 = tpu.dynamic_rotate %135 by %c239_i32_49 dim 1 : vector<32x256xf32>, i32 -> vector<32x256xf32>
    %160 = vector.broadcast %9 : vector<1x256xf32> to vector<32x256xf32>
    %161 = arith.mulf %159, %160 : vector<32x256xf32>
    %162 = tpu.concatenate %138, %141, %144, %147, %149, %152, %155, %158, %161 in 0 : vector<32x256xf32>, vector<32x256xf32>, vector<32x256xf32>, vector<32x256xf32>, vector<32x256xf32>, vector<32x256xf32>, vector<32x256xf32>, vector<32x256xf32>, vector<32x256xf32> -> vector<288x256xf32>
    %163 = arith.truncf %162 : vector<288x256xf32> to vector<288x256xbf16>
    %c0_50 = arith.constant 0 : index
    %c0_51 = arith.constant 0 : index
    %164 = vector.load %arg11[%c0_50, %c0_51] : memref<8x288xbf16, #tpu.memory_space<vmem>>, vector<8x288xbf16>
    %cst_52 = arith.constant dense<0.000000e+00> : vector<8x256xf32>
    %165 = tpu.matmul %164, %163, %cst_52 {dimension_numbers = #tpu.dot_dimension_numbers<[1], [0], [0], [1], [0, 0, 1, 1], [], []>} : vector<8x288xbf16>, vector<288x256xbf16>, vector<8x256xf32> -> vector<8x256xf32>
    %c0_53 = arith.constant 0 : index
    %c0_54 = arith.constant 0 : index
    %166 = vector.load %arg12[%c0_53, %c0_54] : memref<8x1xf32, #tpu.memory_space<vmem>>, vector<8x1xf32>
    %167 = vector.broadcast %166 : vector<8x1xf32> to vector<8x256xf32>
    %168 = arith.mulf %165, %167 : vector<8x256xf32>
    %c0_55 = arith.constant 0 : index
    %c0_56 = arith.constant 0 : index
    %169 = vector.load %arg13[%c0_55, %c0_56] : memref<8x1xf32, #tpu.memory_space<vmem>>, vector<8x1xf32>
    %170 = vector.broadcast %169 : vector<8x1xf32> to vector<8x256xf32>
    %171 = arith.addf %168, %170 : vector<8x256xf32>
    %cst_57 = arith.constant 0.000000e+00 : f32
    %172 = vector.broadcast %cst_57 : f32 to vector<8x256xf32>
    %173 = arith.maximumf %171, %172 : vector<8x256xf32>
    %c17_i32_58 = arith.constant 17 : i32
    %174 = tpu.dynamic_rotate %173 by %c17_i32_58 dim 1 : vector<8x256xf32>, i32 -> vector<8x256xf32>
    %175 = vector.broadcast %1 : vector<1x256xf32> to vector<8x256xf32>
    %176 = arith.mulf %174, %175 : vector<8x256xf32>
    %c16_i32_59 = arith.constant 16 : i32
    %177 = tpu.dynamic_rotate %173 by %c16_i32_59 dim 1 : vector<8x256xf32>, i32 -> vector<8x256xf32>
    %178 = vector.broadcast %2 : vector<1x256xf32> to vector<8x256xf32>
    %179 = arith.mulf %177, %178 : vector<8x256xf32>
    %c15_i32_60 = arith.constant 15 : i32
    %180 = tpu.dynamic_rotate %173 by %c15_i32_60 dim 1 : vector<8x256xf32>, i32 -> vector<8x256xf32>
    %181 = vector.broadcast %3 : vector<1x256xf32> to vector<8x256xf32>
    %182 = arith.mulf %180, %181 : vector<8x256xf32>
    %c1_i32_61 = arith.constant 1 : i32
    %183 = tpu.dynamic_rotate %173 by %c1_i32_61 dim 1 : vector<8x256xf32>, i32 -> vector<8x256xf32>
    %184 = vector.broadcast %4 : vector<1x256xf32> to vector<8x256xf32>
    %185 = arith.mulf %183, %184 : vector<8x256xf32>
    %186 = vector.broadcast %5 : vector<1x256xf32> to vector<8x256xf32>
    %187 = arith.mulf %173, %186 : vector<8x256xf32>
    %c255_i32_62 = arith.constant 255 : i32
    %188 = tpu.dynamic_rotate %173 by %c255_i32_62 dim 1 : vector<8x256xf32>, i32 -> vector<8x256xf32>
    %189 = vector.broadcast %6 : vector<1x256xf32> to vector<8x256xf32>
    %190 = arith.mulf %188, %189 : vector<8x256xf32>
    %c241_i32_63 = arith.constant 241 : i32
    %191 = tpu.dynamic_rotate %173 by %c241_i32_63 dim 1 : vector<8x256xf32>, i32 -> vector<8x256xf32>
    %192 = vector.broadcast %7 : vector<1x256xf32> to vector<8x256xf32>
    %193 = arith.mulf %191, %192 : vector<8x256xf32>
    %c240_i32_64 = arith.constant 240 : i32
    %194 = tpu.dynamic_rotate %173 by %c240_i32_64 dim 1 : vector<8x256xf32>, i32 -> vector<8x256xf32>
    %195 = vector.broadcast %8 : vector<1x256xf32> to vector<8x256xf32>
    %196 = arith.mulf %194, %195 : vector<8x256xf32>
    %c239_i32_65 = arith.constant 239 : i32
    %197 = tpu.dynamic_rotate %173 by %c239_i32_65 dim 1 : vector<8x256xf32>, i32 -> vector<8x256xf32>
    %198 = vector.broadcast %9 : vector<1x256xf32> to vector<8x256xf32>
    %199 = arith.mulf %197, %198 : vector<8x256xf32>
    %200 = tpu.concatenate %176, %179, %182, %185, %187, %190, %193, %196, %199 in 0 : vector<8x256xf32>, vector<8x256xf32>, vector<8x256xf32>, vector<8x256xf32>, vector<8x256xf32>, vector<8x256xf32>, vector<8x256xf32>, vector<8x256xf32>, vector<8x256xf32> -> vector<72x256xf32>
    %201 = arith.truncf %200 : vector<72x256xf32> to vector<72x256xbf16>
    %c0_66 = arith.constant 0 : index
    %c0_67 = arith.constant 0 : index
    %202 = vector.load %arg14[%c0_66, %c0_67] : memref<8x72xbf16, #tpu.memory_space<vmem>>, vector<8x72xbf16>
    %cst_68 = arith.constant dense<0.000000e+00> : vector<8x256xf32>
    %203 = tpu.matmul %202, %201, %cst_68 {dimension_numbers = #tpu.dot_dimension_numbers<[1], [0], [0], [1], [0, 0, 1, 1], [], []>} : vector<8x72xbf16>, vector<72x256xbf16>, vector<8x256xf32> -> vector<8x256xf32>
    %c0_69 = arith.constant 0 : index
    %c0_70 = arith.constant 0 : index
    %204 = vector.load %arg15[%c0_69, %c0_70] : memref<8x1xf32, #tpu.memory_space<vmem>>, vector<8x1xf32>
    %205 = vector.broadcast %204 : vector<8x1xf32> to vector<8x256xf32>
    %206 = arith.mulf %203, %205 : vector<8x256xf32>
    %c0_71 = arith.constant 0 : index
    %c0_72 = arith.constant 0 : index
    %207 = vector.load %arg16[%c0_71, %c0_72] : memref<8x1xf32, #tpu.memory_space<vmem>>, vector<8x1xf32>
    %208 = vector.broadcast %207 : vector<8x1xf32> to vector<8x256xf32>
    %209 = arith.addf %206, %208 : vector<8x256xf32>
    %cst_73 = arith.constant 0.000000e+00 : f32
    %210 = vector.broadcast %cst_73 : f32 to vector<8x256xf32>
    %211 = arith.maximumf %209, %210 : vector<8x256xf32>
    %c0_74 = arith.constant 0 : index
    %c0_75 = arith.constant 0 : index
    %212 = vector.load %arg17[%c0_74, %c0_75] : memref<8x288xbf16, #tpu.memory_space<vmem>>, vector<8x288xbf16>
    %cst_76 = arith.constant dense<0.000000e+00> : vector<8x256xf32>
    %213 = tpu.matmul %212, %163, %cst_76 {dimension_numbers = #tpu.dot_dimension_numbers<[1], [0], [0], [1], [0, 0, 1, 1], [], []>} : vector<8x288xbf16>, vector<288x256xbf16>, vector<8x256xf32> -> vector<8x256xf32>
    %c17_i32_77 = arith.constant 17 : i32
    %214 = tpu.dynamic_rotate %211 by %c17_i32_77 dim 1 : vector<8x256xf32>, i32 -> vector<8x256xf32>
    %215 = vector.broadcast %1 : vector<1x256xf32> to vector<8x256xf32>
    %216 = arith.mulf %214, %215 : vector<8x256xf32>
    %c16_i32_78 = arith.constant 16 : i32
    %217 = tpu.dynamic_rotate %211 by %c16_i32_78 dim 1 : vector<8x256xf32>, i32 -> vector<8x256xf32>
    %218 = vector.broadcast %2 : vector<1x256xf32> to vector<8x256xf32>
    %219 = arith.mulf %217, %218 : vector<8x256xf32>
    %c15_i32_79 = arith.constant 15 : i32
    %220 = tpu.dynamic_rotate %211 by %c15_i32_79 dim 1 : vector<8x256xf32>, i32 -> vector<8x256xf32>
    %221 = vector.broadcast %3 : vector<1x256xf32> to vector<8x256xf32>
    %222 = arith.mulf %220, %221 : vector<8x256xf32>
    %c1_i32_80 = arith.constant 1 : i32
    %223 = tpu.dynamic_rotate %211 by %c1_i32_80 dim 1 : vector<8x256xf32>, i32 -> vector<8x256xf32>
    %224 = vector.broadcast %4 : vector<1x256xf32> to vector<8x256xf32>
    %225 = arith.mulf %223, %224 : vector<8x256xf32>
    %226 = vector.broadcast %5 : vector<1x256xf32> to vector<8x256xf32>
    %227 = arith.mulf %211, %226 : vector<8x256xf32>
    %c255_i32_81 = arith.constant 255 : i32
    %228 = tpu.dynamic_rotate %211 by %c255_i32_81 dim 1 : vector<8x256xf32>, i32 -> vector<8x256xf32>
    %229 = vector.broadcast %6 : vector<1x256xf32> to vector<8x256xf32>
    %230 = arith.mulf %228, %229 : vector<8x256xf32>
    %c241_i32_82 = arith.constant 241 : i32
    %231 = tpu.dynamic_rotate %211 by %c241_i32_82 dim 1 : vector<8x256xf32>, i32 -> vector<8x256xf32>
    %232 = vector.broadcast %7 : vector<1x256xf32> to vector<8x256xf32>
    %233 = arith.mulf %231, %232 : vector<8x256xf32>
    %c240_i32_83 = arith.constant 240 : i32
    %234 = tpu.dynamic_rotate %211 by %c240_i32_83 dim 1 : vector<8x256xf32>, i32 -> vector<8x256xf32>
    %235 = vector.broadcast %8 : vector<1x256xf32> to vector<8x256xf32>
    %236 = arith.mulf %234, %235 : vector<8x256xf32>
    %c239_i32_84 = arith.constant 239 : i32
    %237 = tpu.dynamic_rotate %211 by %c239_i32_84 dim 1 : vector<8x256xf32>, i32 -> vector<8x256xf32>
    %238 = vector.broadcast %9 : vector<1x256xf32> to vector<8x256xf32>
    %239 = arith.mulf %237, %238 : vector<8x256xf32>
    %240 = tpu.concatenate %216, %219, %222, %225, %227, %230, %233, %236, %239 in 0 : vector<8x256xf32>, vector<8x256xf32>, vector<8x256xf32>, vector<8x256xf32>, vector<8x256xf32>, vector<8x256xf32>, vector<8x256xf32>, vector<8x256xf32>, vector<8x256xf32> -> vector<72x256xf32>
    %241 = arith.truncf %240 : vector<72x256xf32> to vector<72x256xbf16>
    %c0_85 = arith.constant 0 : index
    %c0_86 = arith.constant 0 : index
    %242 = vector.load %arg18[%c0_85, %c0_86] : memref<8x72xbf16, #tpu.memory_space<vmem>>, vector<8x72xbf16>
    %cst_87 = arith.constant dense<0.000000e+00> : vector<8x256xf32>
    %243 = tpu.matmul %242, %241, %cst_87 {dimension_numbers = #tpu.dot_dimension_numbers<[1], [0], [0], [1], [0, 0, 1, 1], [], []>} : vector<8x72xbf16>, vector<72x256xbf16>, vector<8x256xf32> -> vector<8x256xf32>
    %244 = arith.addf %213, %243 : vector<8x256xf32>
    %c0_88 = arith.constant 0 : index
    %c0_89 = arith.constant 0 : index
    %245 = vector.load %arg19[%c0_88, %c0_89] : memref<8x1xf32, #tpu.memory_space<vmem>>, vector<8x1xf32>
    %246 = vector.broadcast %245 : vector<8x1xf32> to vector<8x256xf32>
    %247 = arith.mulf %244, %246 : vector<8x256xf32>
    %c0_90 = arith.constant 0 : index
    %c0_91 = arith.constant 0 : index
    %248 = vector.load %arg20[%c0_90, %c0_91] : memref<8x1xf32, #tpu.memory_space<vmem>>, vector<8x1xf32>
    %249 = vector.broadcast %248 : vector<8x1xf32> to vector<8x256xf32>
    %250 = arith.addf %247, %249 : vector<8x256xf32>
    %cst_92 = arith.constant 0.000000e+00 : f32
    %251 = vector.broadcast %cst_92 : f32 to vector<8x256xf32>
    %252 = arith.maximumf %250, %251 : vector<8x256xf32>
    %c0_93 = arith.constant 0 : index
    %c0_94 = arith.constant 0 : index
    %253 = vector.load %arg21[%c0_93, %c0_94] : memref<32x8xbf16, #tpu.memory_space<vmem>>, vector<32x8xbf16>
    %254 = arith.truncf %252 : vector<8x256xf32> to vector<8x256xbf16>
    %cst_95 = arith.constant dense<0.000000e+00> : vector<32x256xf32>
    %255 = tpu.matmul %253, %254, %cst_95 {dimension_numbers = #tpu.dot_dimension_numbers<[1], [0], [0], [1], [0, 0, 1, 1], [], []>} : vector<32x8xbf16>, vector<8x256xbf16>, vector<32x256xf32> -> vector<32x256xf32>
    %c0_96 = arith.constant 0 : index
    %c0_97 = arith.constant 0 : index
    %256 = vector.load %arg22[%c0_96, %c0_97] : memref<32x1xf32, #tpu.memory_space<vmem>>, vector<32x1xf32>
    %257 = vector.broadcast %256 : vector<32x1xf32> to vector<32x256xf32>
    %258 = arith.addf %255, %257 : vector<32x256xf32>
    %c0_98 = arith.constant 0 : index
    %c0_99 = arith.constant 0 : index
    %c0_100 = arith.constant 0 : index
    %259 = vector.load %arg23[%c0_98, %c0_99, %c0_100] : memref<1x32x256xf32, #tpu.memory_space<vmem>>, vector<1x32x256xf32>
    %260 = vector.shape_cast %259 : vector<1x32x256xf32> to vector<32x256xf32>
    %261 = vector.shape_cast %258 : vector<32x256xf32> to vector<1x32x256xf32>
    tpu.vector_store %arg23[%c0_98, %c0_99, %c0_100], %261 {strides = array<i32>} : memref<1x32x256xf32, #tpu.memory_space<vmem>>, vector<1x32x256xf32>,
    return
  }
  func.func @transform_0(%arg0: i32) -> (i32, i32, i32) {
    %c0_i32 = arith.constant 0 : i32
    %c0_i32_0 = arith.constant 0 : i32
    %c0_i32_1 = arith.constant 0 : i32
    return %arg0, %c0_i32, %c0_i32_0 : i32, i32, i32
  }
  func.func @transform_1(%arg0: i32) -> (i32, i32, i32) {
    %c0_i32 = arith.constant 0 : i32
    %c0_i32_0 = arith.constant 0 : i32
    %c0_i32_1 = arith.constant 0 : i32
    return %arg0, %c0_i32, %c0_i32_0 : i32, i32, i32
  }
  func.func @transform_2(%arg0: i32) -> (i32, i32) {
    %c0_i32 = arith.constant 0 : i32
    %c0_i32_0 = arith.constant 0 : i32
    %c0_i32_1 = arith.constant 0 : i32
    return %c0_i32, %c0_i32_0 : i32, i32
  }
  func.func @transform_3(%arg0: i32) -> (i32, i32) {
    %c0_i32 = arith.constant 0 : i32
    %c0_i32_0 = arith.constant 0 : i32
    %c0_i32_1 = arith.constant 0 : i32
    return %c0_i32, %c0_i32_0 : i32, i32
  }
  func.func @transform_4(%arg0: i32) -> (i32, i32) {
    %c0_i32 = arith.constant 0 : i32
    %c0_i32_0 = arith.constant 0 : i32
    %c0_i32_1 = arith.constant 0 : i32
    return %c0_i32, %c0_i32_0 : i32, i32
  }
  func.func @transform_5(%arg0: i32) -> (i32, i32) {
    %c0_i32 = arith.constant 0 : i32
    %c0_i32_0 = arith.constant 0 : i32
    %c0_i32_1 = arith.constant 0 : i32
    return %c0_i32, %c0_i32_0 : i32, i32
  }
  func.func @transform_6(%arg0: i32) -> (i32, i32) {
    %c0_i32 = arith.constant 0 : i32
    %c0_i32_0 = arith.constant 0 : i32
    %c0_i32_1 = arith.constant 0 : i32
    return %c0_i32, %c0_i32_0 : i32, i32
  }
  func.func @transform_7(%arg0: i32) -> (i32, i32) {
    %c0_i32 = arith.constant 0 : i32
    %c0_i32_0 = arith.constant 0 : i32
    %c0_i32_1 = arith.constant 0 : i32
    return %c0_i32, %c0_i32_0 : i32, i32
  }
  func.func @transform_8(%arg0: i32) -> (i32, i32) {
    %c0_i32 = arith.constant 0 : i32
    %c0_i32_0 = arith.constant 0 : i32
    %c0_i32_1 = arith.constant 0 : i32
    return %c0_i32, %c0_i32_0 : i32, i32
  }
  func.func @transform_9(%arg0: i32) -> (i32, i32) {
    %c0_i32 = arith.constant 0 : i32
    %c0_i32_0 = arith.constant 0 : i32
    %c0_i32_1 = arith.constant 0 : i32
    return %c0_i32, %c0_i32_0 : i32, i32
  }
  func.func @transform_10(%arg0: i32) -> (i32, i32) {
    %c0_i32 = arith.constant 0 : i32
    %c0_i32_0 = arith.constant 0 : i32
    %c0_i32_1 = arith.constant 0 : i32
    return %c0_i32, %c0_i32_0 : i32, i32
  }
  func.func @transform_11(%arg0: i32) -> (i32, i32) {
    %c0_i32 = arith.constant 0 : i32
    %c0_i32_0 = arith.constant 0 : i32
    %c0_i32_1 = arith.constant 0 : i32
    return %c0_i32, %c0_i32_0 : i32, i32
  }
  func.func @transform_12(%arg0: i32) -> (i32, i32) {
    %c0_i32 = arith.constant 0 : i32
    %c0_i32_0 = arith.constant 0 : i32
    %c0_i32_1 = arith.constant 0 : i32
    return %c0_i32, %c0_i32_0 : i32, i32
  }
  func.func @transform_13(%arg0: i32) -> (i32, i32) {
    %c0_i32 = arith.constant 0 : i32
    %c0_i32_0 = arith.constant 0 : i32
    %c0_i32_1 = arith.constant 0 : i32
    return %c0_i32, %c0_i32_0 : i32, i32
  }
  func.func @transform_14(%arg0: i32) -> (i32, i32) {
    %c0_i32 = arith.constant 0 : i32
    %c0_i32_0 = arith.constant 0 : i32
    %c0_i32_1 = arith.constant 0 : i32
    return %c0_i32, %c0_i32_0 : i32, i32
  }
  func.func @transform_15(%arg0: i32) -> (i32, i32) {
    %c0_i32 = arith.constant 0 : i32
    %c0_i32_0 = arith.constant 0 : i32
    %c0_i32_1 = arith.constant 0 : i32
    return %c0_i32, %c0_i32_0 : i32, i32
  }
  func.func @transform_16(%arg0: i32) -> (i32, i32) {
    %c0_i32 = arith.constant 0 : i32
    %c0_i32_0 = arith.constant 0 : i32
    %c0_i32_1 = arith.constant 0 : i32
    return %c0_i32, %c0_i32_0 : i32, i32
  }
  func.func @transform_17(%arg0: i32) -> (i32, i32) {
    %c0_i32 = arith.constant 0 : i32
    %c0_i32_0 = arith.constant 0 : i32
    %c0_i32_1 = arith.constant 0 : i32
    return %c0_i32, %c0_i32_0 : i32, i32
  }
  func.func @transform_18(%arg0: i32) -> (i32, i32) {
    %c0_i32 = arith.constant 0 : i32
    %c0_i32_0 = arith.constant 0 : i32
    %c0_i32_1 = arith.constant 0 : i32
    return %c0_i32, %c0_i32_0 : i32, i32
  }
  func.func @transform_19(%arg0: i32) -> (i32, i32) {
    %c0_i32 = arith.constant 0 : i32
    %c0_i32_0 = arith.constant 0 : i32
    %c0_i32_1 = arith.constant 0 : i32
    return %c0_i32, %c0_i32_0 : i32, i32
  }
  func.func @transform_20(%arg0: i32) -> (i32, i32) {
    %c0_i32 = arith.constant 0 : i32
    %c0_i32_0 = arith.constant 0 : i32
    %c0_i32_1 = arith.constant 0 : i32
    return %c0_i32, %c0_i32_0 : i32, i32
  }
  func.func @transform_21(%arg0: i32) -> (i32, i32) {
    %c0_i32 = arith.constant 0 : i32
    %c0_i32_0 = arith.constant 0 : i32
    %c0_i32_1 = arith.constant 0 : i32
    return %c0_i32, %c0_i32_0 : i32, i32
  }
  func.func @transform_22(%arg0: i32) -> (i32, i32, i32) {
    %c0_i32 = arith.constant 0 : i32
    %c0_i32_0 = arith.constant 0 : i32
    %c0_i32_1 = arith.constant 0 : i32
    return %arg0, %c0_i32, %c0_i32_0 : i32, i32, i32
  }
}

</mosaic_0001>

<bundles_post_ra>
// kernel: unet_up_forward.1
= control target key start
LH: loop header
LB: loop body
LE: loop exit
PB: predicated region body
PF: predicated region fallthrough
CT: control target
= control target key end

     0   :  { %s6248_s0 = inlined_call_operand.vmem [shape: bf16[2,64,256], index: 0, kind: input, shape index: {}]   ;;  %s6249_s1 = inlined_call_operand.vmem [shape: bf16[2,32,256], index: 1, kind: input, shape index: {}]   ;;  %s6250_s2 = inlined_call_operand.vmem [shape: f32[13,256], index: 2, kind: input, shape index: {}]   ;;  %s6251_s3 = inlined_call_operand.vmem [shape: bf16[32,256], index: 3, kind: input, shape index: {}]   ;;  %s6252_s4 = inlined_call_operand.vmem [shape: f32[32,1], index: 4, kind: input, shape index: {}]   ;;  %s6253_s5 = inlined_call_operand.vmem [shape: bf16[32,288], index: 5, kind: input, shape index: {}]   ;;  %s6254_s6 = inlined_call_operand.vmem [shape: bf16[32,288], index: 6, kind: input, shape index: {}]   ;;  %s6255_s7 = inlined_call_operand.vmem [shape: f32[32,1], index: 7, kind: input, shape index: {}]   ;;  %s6256_s8 = inlined_call_operand.vmem [shape: bf16[32,288], index: 8, kind: input, shape index: {}]   ;;  %s6257_s9 = inlined_call_operand.vmem [shape: f32[32,1], index: 9, kind: input, shape index: {}]   ;;  %s6258_s10 = inlined_call_operand.vmem [shape: bf16[8,288], index: 10, kind: input, shape index: {}]   ;;  %s6259_s11 = inlined_call_operand.vmem [shape: f32[8,1], index: 11, kind: input, shape index: {}]   ;;  %s6260_s12 = inlined_call_operand.vmem [shape: f32[8,1], index: 12, kind: input, shape index: {}]   ;;  %s6261_s13 = inlined_call_operand.vmem [shape: bf16[8,72], index: 13, kind: input, shape index: {}]   ;;  %s6262_s14 = inlined_call_operand.vmem [shape: f32[8,1], index: 14, kind: input, shape index: {}]   ;;  %s6263_s15 = inlined_call_operand.vmem [shape: f32[8,1], index: 15, kind: input, shape index: {}]   ;;  %s6264_s16 = inlined_call_operand.vmem [shape: bf16[8,288], index: 16, kind: input, shape index: {}]   ;;  %s6265_s17 = inlined_call_operand.vmem [shape: bf16[8,72], index: 17, kind: input, shape index: {}]   ;;  %s6266_s18 = inlined_call_operand.vmem [shape: f32[8,1], index: 18, kind: input, shape index: {}]   ;;  %s6267_s19 = inlined_call_operand.vmem [shape: f32[8,1], index: 19, kind: input, shape index: {}]   ;;  %s6268_s20 = inlined_call_operand.vmem [shape: bf16[32,8], index: 20, kind: input, shape index: {}]   ;;  %s6269_s21 = inlined_call_operand.vmem [shape: f32[32,1], index: 21, kind: input, shape index: {}]   ;;  %s6270_s22 = inlined_call_operand.vmem [shape: f32[2,32,256], index: 22, kind: output, shape index: {}]  }
   0x1   :  { %6318 = sst [smem:[#allocation12_spill]] %s6248_s0 }
   0x2   :  { %6319 = sst [smem:[#allocation13_spill]] %s6249_s1 }
   0x3   :  { %6320 = sst [smem:[#allocation14_spill]] %s6250_s2 }
   0x4   :  { %6321 = sst [smem:[#allocation15_spill]] %s6251_s3  ;;  %s3926_s3 = smov 0  }
   0x5   :  { %6322 = sst [smem:[#allocation16_spill]] %s6252_s4 }
   0x6   :  { %6323 = sst [smem:[#allocation17_spill]] %s6253_s5 }
   0x7   :  { %6324 = sst [smem:[#allocation18_spill]] %s6254_s6 }
   0x8   :  { %6325 = sst [smem:[#allocation19_spill]] %s6255_s7 }
   0x9 LB: > { %s3464_s28 = sadd.s32 4294967295, %s3800_s3   ;;  %p3468_p0 = scmp.ge.s32.totalorder %s3800_s3, 1  ;;  %s3800_s3 = sphi %s3926_s3, %s32_s3  }
   0xa   : > { %p622_p1 = scmp.lt.s32.totalorder %s3800_s3, 3 }
   0xc   : > { %p623_p2 = pnand %p3468_p0, %p622_p1 }
   0xe   : > { %626 = sbr.rel (%p623_p2) target bundleno = 2765 (0xacd), region = 108 }
  0x15   : > { %p689_p3 = scmp.lt.s32.totalorder %s3464_s28, 1  ;;  %v6278_v0 = vlaneseq  ;;  %v6276_v2 = vmov 0   ;;  %s6326_s4 = sld [smem:[#allocation14_spill]]  ;;  %vm1702_vm8 = vcmask 261120   ;;  %vm2975_vm9 = vcmask 1043456  }
  0x16   : > { %3625 = vset.pattern.permute.xlu1 %v6276_v2  ;;  %3619 = vset.pattern.permute.xlu0 %v6276_v2  ;;  %s6327_s1 = sld [smem:[#allocation15_spill]]  ;;  %s6328_s25 = sld [smem:[#allocation12_spill]]  ;;  %vm2971_vm10 = vcmask 588800   ;;  %vm3323_vm11 = vcmask 64512  }
  0x17   : > { %s6373_s28 = smov (!%p689_p3, %s3464_s28), 1  ;;  %v3937_v1 = vshrl.u32 %v6278_v0, 7  ;;  %s6300_s27 = smov 17  }
  0x18   : > { %s6285_s5 = sshll.u32 %s6373_s28, 6  ;;  %s3523_s24 = sshll.u32 %s6373_s28, 5 }
  0x19   : > { %v3951_v5 = vsub.s32 1, %v3937_v1  ;;  %v3967_v13 = vsub.s32 0, %v3937_v1  ;;  %v4025_v55 = vsub.s32 2, %v3937_v1  ;;  %v783_v57 = vsub.s32 3, %v3937_v1  ;;  %s6298_s29 = smov 16   ;;  %s6330_s23 = sld [smem:[#allocation16_spill]] }
  0x1a   : > { %s6296_s0 = smov 15   ;;  %s6294_s6 = smov 127  }
  0x1b   : > { %v3944_v3 = vld [vmem:[%s6326_s4 + $0x18] sm:$0x1f]  ;;  %v3972_v14 = vld [vmem:[%s6326_s4 + $0x10] sm:$0x1f]  ;;  %v4030_v56 = vld [vmem:[%s6326_s4] sm:$0xff]  ;;  %s6286_s30 = smov 111  }
  0x1c   : > { %v3758_v4 = vld [vmem:[%s6327_s1 + $0x4] ss:$8 sps:$4 sm:$0xff]   ;;  %s693_s26 = scalar_lea.vmem %s6328_s25, %s6285_s5  ;;  %v740_v8 = vrot.slane %v3944_v3, %v3951_v5  ;;  %v3976_v20 = vrot.slane %v3944_v3, %v3967_v13  ;;  %v736_v23 = vrot.slane %v3972_v14, %v3951_v5  ;;  %v3986_v24 = vrot.slane %v3972_v14, %v3967_v13  ;;  %s6290_s25 = smov 113  }
  0x1d   : > { %941 = vmatprep.mubr.bf16.mxu0 %v3758_v4  ;;  %v709_v6 = vld [vmem:[%s693_s26] sm:$0xff]  ;;  %v710_v7 = vld [vmem:[%s693_s26 + $0x8] sm:$0xff]  ;;  %v711_v15 = vld [vmem:[%s693_s26 + $0x10] sm:$0xff]  ;;  %v764_v59 = vrot.slane %v3944_v3, %v4025_v55  ;;  %v4037_v60 = vrot.slane %v4030_v56, %v4025_v55  ;;  %v760_v63 = vrot.slane %v3972_v14, %v4025_v55  ;;  %v4044_v4 = vrot.slane %v4030_v56, %v783_v57  ;;  %s6343_s5 = smov 111   ;;  %s6344_s7 = sld [smem:[#allocation19_spill]] }
  0x1e   : > { %v3960_v9 = vunpack.c.h.bf16 %v709_v6  ;;  %v3962_v10 = vunpack.c.h.bf16 %v710_v7  ;;  %v712_v16 = vld [vmem:[%s693_s26 + $0x18] sm:$0xff]  ;;  %v713_v17 = vld [vmem:[%s693_s26 + $0x20] sm:$0xff]  ;;  %v714_v18 = vld [vmem:[%s693_s26 + $0x28] sm:$0xff]  ;;  %v3978_v21 = vunpack.c.l.bf16 %v709_v6  ;;  %v3980_v22 = vunpack.c.l.bf16 %v710_v7 }
  0x1f   : > { %v3988_v25 = vunpack.c.h.bf16 %v711_v15  ;;  %v3990_v26 = vunpack.c.h.bf16 %v712_v16  ;;  %v715_v27 = vld [vmem:[%s693_s26 + $0x30] sm:$0xff]  ;;  %v716_v28 = vld [vmem:[%s693_s26 + $0x38] sm:$0xff]  ;;  %v3992_v29 = vunpack.c.l.bf16 %v711_v15  ;;  %v3994_v30 = vunpack.c.l.bf16 %v712_v16  ;;  %s6329_s26 = sld [smem:[#allocation13_spill]] }
  0x20   : > { %v742_v11 = vmul.f32 %v740_v8, %v3960_v9  ;;  %v744_v12 = vmul.f32 %v740_v8, %v3962_v10  ;;  %v3996_v31 = vunpack.c.h.bf16 %v713_v17  ;;  %v3998_v32 = vunpack.c.h.bf16 %v714_v18 }
  0x21   : > { %v741_v33 = vmul.f32 %v736_v23, %v3978_v21  ;;  %v743_v34 = vmul.f32 %v736_v23, %v3980_v22  ;;  %v746_v35 = vmul.f32 %v740_v8, %v3988_v25  ;;  %v748_v36 = vmul.f32 %v740_v8, %v3990_v26 }
  0x22   : > { %v830_v19 = vpack.c.bf16 %v744_v12, %v742_v11  ;;  %v745_v37 = vmul.f32 %v736_v23, %v3992_v29  ;;  %v747_v38 = vmul.f32 %v736_v23, %v3994_v30  ;;  %v750_v39 = vmul.f32 %v740_v8, %v3996_v31 }
  0x23   : > { %v752_v40 = vmul.f32 %v740_v8, %v3998_v32  ;;  %v829_v41 = vpack.c.bf16 %v743_v34, %v741_v33  ;;  %v832_v42 = vpack.c.bf16 %v748_v36, %v746_v35  ;;  %v4008_v43 = vunpack.c.l.bf16 %v713_v17 }
  0x24   : > { %909 = vmatprep.subr.bf16.mxu0 %v830_v19  ;;  %v4010_v44 = vunpack.c.l.bf16 %v714_v18  ;;  %v831_v45 = vpack.c.bf16 %v747_v38, %v745_v37  ;;  %v4012_v46 = vunpack.c.h.bf16 %v715_v27  ;;  %v4014_v47 = vunpack.c.h.bf16 %v716_v28  ;;  %v4055_v19 = vld [vmem:[%s6326_s4 + $0x8] sm:$0xff] }
  0x25   : > { %910 = vmatpush1.bf16.msra.mxu0 %v829_v41  ;;  %v749_v48 = vmul.f32 %v736_v23, %v4008_v43  ;;  %v4018_v50 = vunpack.c.l.bf16 %v715_v27  ;;  %v4020_v51 = vunpack.c.l.bf16 %v716_v28  ;;  %v834_v52 = vpack.c.bf16 %v752_v40, %v750_v39  ;;  %s698_s2 = scalar_lea.vmem %s6329_s26, %s3523_s24  ;;  %s6288_s26 = smov 112  }
  0x26   : > { %v751_v49 = vmul.f32 %v736_v23, %v4010_v44  ;;  %911 = vmatprep.subr.bf16.mxu0 %v832_v42  ;;  %v754_v53 = vmul.f32 %v740_v8, %v4012_v46  ;;  %v756_v54 = vmul.f32 %v740_v8, %v4014_v47  ;;  %v766_v7 = vmul.f32 %v764_v59, %v3960_v9  ;;  %s6341_s24 = smov 112  }
  0x27   : > { %v753_v61 = vmul.f32 %v736_v23, %v4018_v50  ;;  %v755_v62 = vmul.f32 %v736_v23, %v4020_v51  ;;  %v768_v8 = vmul.f32 %v764_v59, %v3962_v10  ;;  %v765_v12 = vmul.f32 %v760_v63, %v3978_v21 }
  0x28   : > { %v833_v58 = vpack.c.bf16 %v751_v49, %v749_v48  ;;  %v836_v6 = vpack.c.bf16 %v756_v54, %v754_v53  ;;  %v767_v15 = vmul.f32 %v760_v63, %v3980_v22  ;;  %v770_v17 = vmul.f32 %v764_v59, %v3988_v25  ;;  %v4079_v54 = vld [vmem:[%s698_s2] sm:$0xff] }
  0x29   : > { %912 = vmatpush1.bf16.msra.mxu0 %v831_v45  ;;  %v835_v11 = vpack.c.bf16 %v755_v62, %v753_v61  ;;  %v838_v16 = vpack.c.bf16 %v768_v8, %v766_v7  ;;  %v772_v18 = vmul.f32 %v764_v59, %v3990_v26  ;;  %v4058_v23 = vrot.slane %v4055_v19, %v783_v57  ;;  %v4097_v7 = vld [vmem:[%s698_s2 + $0x18] sm:$0xff] }
  0x2a   : > { %913 = vmatprep.subr.bf16.mxu0 %v834_v52  ;;  %v837_v27 = vpack.c.bf16 %v767_v15, %v765_v12  ;;  %v769_v28 = vmul.f32 %v760_v63, %v3992_v29  ;;  %v771_v33 = vmul.f32 %v760_v63, %v3994_v30  ;;  %v774_v35 = vmul.f32 %v764_v59, %v3996_v31 }
  0x2b   : > { %v840_v34 = vpack.c.bf16 %v772_v18, %v770_v17  ;;  %v776_v36 = vmul.f32 %v764_v59, %v3998_v32  ;;  %v1183_v37 = vsub.s32 5, %v3937_v1  ;;  %v1224_v38 = vsub.s32 6, %v3937_v1 }
  0x2c   : > { %v773_v39 = vmul.f32 %v760_v63, %v4008_v43  ;;  %v775_v40 = vmul.f32 %v760_v63, %v4010_v44  ;;  %v1265_v41 = vsub.s32 7, %v3937_v1  ;;  %v839_v42 = vpack.c.bf16 %v771_v33, %v769_v28 }
  0x2d   : > { %914 = vmatpush1.bf16.msra.mxu0 %v833_v58  ;;  %v4074_v45 = vsub.s32 4, %v3937_v1  ;;  %v842_v48 = vpack.c.bf16 %v776_v36, %v774_v35  ;;  %v778_v49 = vmul.f32 %v764_v59, %v4012_v46  ;;  %v780_v52 = vmul.f32 %v764_v59, %v4014_v47  ;;  %v4095_v59 = vld [vmem:[%s698_s2 + $0x10] sm:$0xff] }
  0x2e   : > { %915 = vmatprep.subr.bf16.mxu0 %v836_v6  ;;  %v788_v53 = vrot.slane %v3944_v3, %v783_v57  ;;  %v777_v58 = vmul.f32 %v760_v63, %v4018_v50  ;;  %v4091_v62 = vrot.slane %v4030_v56, %v1183_v37  ;;  %v4093_v6 = vld [vmem:[%s698_s2 + $0x8] sm:$0xff]  ;;  %v841_v8 = vpack.c.bf16 %v775_v40, %v773_v39  ;;  %s6292_s2 = smov 1  }
  0x2f   : > { %v4084_v61 = vrot.slane %v4030_v56, %v4074_v45  ;;  %v4088_v1 = vrot.slane %v4055_v19, %v4074_v45  ;;  %v4101_v12 = vrot.slane %v4055_v19, %v1183_v37  ;;  %v4104_v15 = vrot.slane %v4030_v56, %v1224_v38 }
  0x30   : > { %v4108_v17 = vrot.slane %v4055_v19, %v1224_v38  ;;  %v4111_v18 = vrot.slane %v4030_v56, %v1265_v41  ;;  %v790_v28 = vmul.f32 %v788_v53, %v3960_v9  ;;  %v792_v33 = vmul.f32 %v788_v53, %v3962_v10 }
  0x31   : > { %916 = vmatpush1.bf16.msra.mxu0 %v835_v11  ;;  %v779_v11 = vmul.f32 %v760_v63, %v4020_v51  ;;  %v844_v63 = vpack.c.bf16 %v780_v52, %v778_v49  ;;  %v6281_v35 = vunpack.c.l.bf16 %v4093_v6  ;;  %v6279_v36 = vunpack.c.l.bf16 %v4097_v7 }
  0x32   : > { %917 = vmatprep.subr.bf16.mxu0 %v838_v16  ;;  %v784_v16 = vrot.slane %v3972_v14, %v783_v57  ;;  %v6280_v57 = vunpack.c.l.bf16 %v4095_v59  ;;  %v967_v37 = vunpack.c.h.bf16 %v4079_v54  ;;  %v969_v38 = vunpack.c.h.bf16 %v4093_v6 }
  0x33   : > { %v6284_v39 = vunpack.c.h.bf16 %v4095_v59  ;;  %v843_v40 = vpack.c.bf16 %v779_v11, %v777_v58  ;;  %v846_v49 = vpack.c.bf16 %v792_v33, %v790_v28  ;;  %v794_v52 = vmul.f32 %v788_v53, %v3988_v25 }
  0x34   : > { %v796_v2 = vmul.f32 %v788_v53, %v3990_v26  ;;  %v4140_v58 = vpack.i.bf16 %v6279_v36, %v6280_v57  ;;  %v798_v11 = vmul.f32 %v788_v53, %v3996_v31  ;;  %v795_v28 = vmul.f32 %v784_v16, %v3994_v30 }
  0x35   : > { %918 = vmatpush1.bf16.msra.mxu0 %v837_v27  ;;  %v4114_v27 = vrot.slane %v4055_v19, %v1265_v41  ;;  %v789_v41 = vmul.f32 %v784_v16, %v3978_v21  ;;  %v4151_v33 = vpack.i.bf16 %v969_v38, %v967_v37  ;;  %v800_v57 = vmul.f32 %v788_v53, %v3998_v32 }
  0x36   : > { %919 = vmatprep.subr.bf16.mxu0 %v840_v34  ;;  %v6282_v34 = vunpack.c.l.bf16 %v4079_v54  ;;  %v848_v36 = vpack.c.bf16 %v796_v2, %v794_v52  ;;  %3605 = vrot.lane.b32.xlu1 %v4140_v58, %s6300_s27 }
  0x37   : > { %v850_v52 = vpack.c.bf16 %v800_v57, %v798_v11 }
  0x38   : > { %v4134_v0 = vpack.i.bf16 %v6281_v35, %v6282_v34  ;;  %v812_v35 = vrot.slane %v3944_v3, %v4074_v45  ;;  %v804_v34 = vmul.f32 %v788_v53, %v4014_v47 }
  0x39   : > { %920 = vmatpush1.bf16.msra.mxu0 %v839_v42  ;;  %v791_v42 = vmul.f32 %v784_v16, %v3980_v22 }
  0x3a   : > { %921 = vmatprep.subr.bf16.mxu0 %v842_v48  ;;  %v6283_v48 = vunpack.c.h.bf16 %v4097_v7  ;;  %3595 = vrot.lane.b32.xlu0 %v4134_v0, %s6300_s27  ;;  %v814_v3 = vmul.f32 %v812_v35, %v3960_v9  ;;  %v865_v9 = vld [vmem:[%s6330_s23] sm:$0xff] }
  0x3d   : > { %922 = vmatpush1.bf16.msra.mxu0 %v841_v8  ;;  %v793_v8 = vmul.f32 %v784_v16, %v3992_v29 }
  0x3e   : > { %923 = vmatprep.subr.bf16.mxu0 %v844_v63  ;;  %v845_v63 = vpack.c.bf16 %v791_v42, %v789_v41  ;;  %v797_v41 = vmul.f32 %v784_v16, %v4008_v43  ;;  %v799_v42 = vmul.f32 %v784_v16, %v4010_v44  ;;  %3600 = vrot.lane.b32.xlu0 %v4151_v33, %s6300_s27 }
  0x3f   : > { %v847_v2 = vpack.c.bf16 %v795_v28, %v793_v8  ;;  %v816_v8 = vmul.f32 %v812_v35, %v3962_v10  ;;  %v808_v28 = vrot.slane %v3972_v14, %v4074_v45  ;;  %v866_v10 = vld [vmem:[%s6330_s23 + $0x8] sm:$0xff] }
  0x41   : > { %924 = vmatpush1.bf16.msra.mxu0 %v843_v40  ;;  %v4160_v40 = vpack.i.bf16 %v6283_v48, %v6284_v39  ;;  %v801_v48 = vmul.f32 %v784_v16, %v4018_v50  ;;  %v803_v39 = vmul.f32 %v784_v16, %v4020_v51  ;;  %v854_v57 = vpack.c.bf16 %v816_v8, %v814_v3 }
  0x42   : > { %925 = vmatprep.subr.bf16.mxu0 %v846_v49  ;;  %v802_v49 = vmul.f32 %v788_v53, %v4012_v46  ;;  %3615 = vrot.lane.b32.xlu0 %v4134_v0, %s6298_s29  ;;  %v813_v14 = vmul.f32 %v808_v28, %v3978_v21  ;;  %v815_v45 = vmul.f32 %v808_v28, %v3980_v22 }
  0x43   : > { %3610 = vrot.lane.b32.xlu1 %v4160_v40, %s6300_s27  ;;  %v851_v16 = vpack.c.bf16 %v803_v39, %v801_v48  ;;  %v822_v22 = vmul.f32 %v812_v35, %v3996_v31  ;;  %v824_v39 = vmul.f32 %v812_v35, %v3998_v32  ;;  %v826_v31 = vmul.f32 %v812_v35, %v4012_v46  ;;  %v3756_v46 = vld [vmem:[%s6327_s1] ss:$8 sps:$4 sm:$0xff]  }
  0x44   : > { %v852_v53 = vpack.c.bf16 %v804_v34, %v802_v49  ;;  %v818_v34 = vmul.f32 %v812_v35, %v3988_v25  ;;  %v853_v11 = vpack.c.bf16 %v815_v45, %v813_v14  ;;  %v868_v25 = vld [vmem:[%s6330_s23 + $0x18] sm:$0xff]  ;;  %v827_v3 = vmul.f32 %v808_v28, %v4020_v51 }
  0x45   : > { %926 = vmatpush1.bf16.msra.mxu0 %v845_v63  ;;  %v849_v63 = vpack.c.bf16 %v799_v42, %v797_v41  ;;  %v817_v41 = vmul.f32 %v808_v28, %v3992_v29  ;;  %v819_v42 = vmul.f32 %v808_v28, %v3994_v30  ;;  %v821_v29 = vmul.f32 %v808_v28, %v4008_v43 }
  0x46   : > { %927 = vmatprep.subr.bf16.mxu0 %v848_v36  ;;  %871 = vperm.xlu0 %3619, %v865_v9   ;;  %v820_v36 = vmul.f32 %v812_v35, %v3990_v26  ;;  %v867_v26 = vld [vmem:[%s6330_s23 + $0x10] sm:$0xff]  ;;  %v823_v30 = vmul.f32 %v808_v28, %v4010_v44  ;;  %v858_v32 = vpack.c.bf16 %v824_v39, %v822_v22  ;;  %v6331_v51 = vlaneseq }
  0x47   : > { %3621 = vrot.lane.b32.xlu1 %v4151_v33, %s6298_s29  ;;  %v855_v48 = vpack.c.bf16 %v819_v42, %v817_v41  ;;  %v4284_v14 = vrot.slane %v4030_v56, %v3951_v5  ;;  %v4288_v45 = vrot.slane %v4055_v19, %v3951_v5 }
  0x48   : > { %v856_v21 = vpack.c.bf16 %v820_v36, %v818_v34  ;;  %v857_v49 = vpack.c.bf16 %v823_v30, %v821_v29 }
  0x49   : > { %928 = vmatpush1.bf16.msra.mxu0 %v847_v2  ;;  %v828_v2 = vmul.f32 %v812_v35, %v4014_v47  ;;  %v3759_v47 = vld [vmem:[%s6327_s1 + $0x14] ss:$8 sps:$4 sm:$0xff]   ;;  %v4270_v35 = vand.u32 127, %v6331_v51 }
  0x4a   : > { %929 = vmatprep.subr.bf16.mxu0 %v850_v52  ;;  %3632 = vrot.lane.b32.xlu0 %v4160_v40, %s6298_s29  ;;  %v825_v52 = vmul.f32 %v808_v28, %v4018_v50  ;;  %v3761_v50 = vld [vmem:[%s6327_s1 + $0x10] ss:$8 sps:$4 sm:$0xff]   ;;  %s6347_s1 = smov 15  }
  0x4b   : > { %876 = vperm.xlu1 %3625, %v866_v10   ;;  %v860_v43 = vpack.c.bf16 %v828_v2, %v826_v31  ;;  %vm992_vm0 = vcmp.lt.s32.totalorder %v4270_v35, 17  ;;  %vm1033_vm1 = vcmp.lt.s32.totalorder %v4270_v35, 16  ;;  %vm1074_vm2 = vcmp.lt.s32.totalorder %v4270_v35, 15 }
  0x4c   : > { %v859_v44 = vpack.c.bf16 %v827_v3, %v825_v52  ;;  %vm1115_vm3 = vcmp.lt.s32.totalorder %v4270_v35, 1  ;;  %vm1172_vm4 = vcmp.lt.s32.totalorder %v4270_v35, 127  ;;  %vm1213_vm5 = vcmp.lt.s32.totalorder %v4270_v35, 113 }
  0x4d   : > { %930 = vmatpush1.bf16.msra.mxu0 %v849_v63  ;;  %vm1254_vm6 = vcmp.lt.s32.totalorder %v4270_v35, 112  ;;  %vm1295_vm7 = vcmp.lt.s32.totalorder %v4270_v35, 111  ;;  %v3119_v35 = vld [vmem:[%s6265_s17] sm:$0xf] }
  0x4e   : > { %931 = vmatprep.subr.bf16.mxu0 %v852_v53  ;;  %886 = vperm.xlu0 %3619, %v868_v25  }
  0x4f   : > { %3627 = vrot.lane.b32.xlu1 %v4140_v58, %s6298_s29 }
  0x51   : > { %932 = vmatpush1.bf16.msra.mxu0 %v851_v16 }
  0x52   : > { %933 = vmatprep.subr.bf16.mxu0 %v854_v57  ;;  %3642 = vrot.lane.b32.xlu0 %v4151_v33, %s6296_s0 }
  0x53   : > { %881 = vperm.xlu1 %3625, %v867_v26  }
  0x55   : > { %934 = vmatpush1.bf16.msra.mxu0 %v853_v11 }
  0x56   : > { %935 = vmatprep.subr.bf16.mxu0 %v856_v21  ;;  %3652 = vrot.lane.b32.xlu0 %v4160_v40, %s6296_s0 }
  0x57   : > { %3637 = vrot.lane.b32.xlu1 %v4134_v0, %s6296_s0 }
  0x59   : > { %936 = vmatpush1.bf16.msra.mxu0 %v855_v48 }
  0x5a   : > { %937 = vmatprep.subr.bf16.mxu0 %v858_v32  ;;  %3662 = vrot.lane.b32.xlu0 %v4151_v33, %s6292_s2 }
  0x5b   : > { %3647 = vrot.lane.b32.xlu1 %v4140_v58, %s6296_s0 }
  0x5d   : > { %938 = vmatpush1.bf16.msra.mxu0 %v857_v49 }
  0x5e   : > { %939 = vmatprep.subr.bf16.mxu0 %v860_v43  ;;  %3672 = vrot.lane.b32.xlu0 %v4160_v40, %s6292_s2 }
  0x5f   : > { %3657 = vrot.lane.b32.xlu1 %v4134_v0, %s6292_s2 }
  0x61   : > { %940 = vmatpush1.bf16.msra.mxu0 %v859_v44 }
  0x62   : > { %3682 = vrot.lane.b32.xlu0 %v4151_v33, %s6294_s6 }
  0x63   : > { %3667 = vrot.lane.b32.xlu1 %v4140_v58, %s6292_s2 }
  0x64   : > { %942 = vmatmul.mubr.bf16.vlgmr.msra.gmra.mrb[0].mxu0 %v3756_v46 }
  0x65   : > { %951 = vmatprep.mubr.bf16.mxu0 %v3759_v47 }
  0x66   : > { %3692 = vrot.lane.b32.xlu0 %v4160_v40, %s6294_s6 }
  0x67   : > { %3677 = vrot.lane.b32.xlu1 %v4134_v0, %s6294_s6 }
  0x6a   : > { %3702 = vrot.lane.b32.xlu0 %v4151_v33, %s6290_s25 }
  0x6b   : > { %3687 = vrot.lane.b32.xlu1 %v4140_v58, %s6294_s6 }
  0x6c   : > { %952 = vmatmul.mubr.bf16.gmra.mrb[4].mxu0 %v3761_v50 }
  0x6e   : > { %3712 = vrot.lane.b32.xlu0 %v4160_v40, %s6290_s25 }
  0x6f   : > { %3697 = vrot.lane.b32.xlu1 %v4134_v0, %s6290_s25 }
  0x72   : > { %3722 = vrot.lane.b32.xlu0 %v4151_v33, %s6288_s26 }
  0x73   : > { %3707 = vrot.lane.b32.xlu1 %v4140_v58, %s6290_s25 }
  0x76   : > { %3732 = vrot.lane.b32.xlu0 %v4160_v40, %s6288_s26 }
  0x77   : > { %3717 = vrot.lane.b32.xlu1 %v4134_v0, %s6288_s26 }
  0x7a   : > { %3742 = vrot.lane.b32.xlu0 %v4151_v33, %s6286_s30  ;;  %v4280_v33 = vrot.slane %v4055_v19, %v3967_v13 }
  0x7b   : > { %3727 = vrot.lane.b32.xlu1 %v4140_v58, %s6288_s26  ;;  %s6340_s26 = smov 113  }
  0x7e   : > { %3752 = vrot.lane.b32.xlu0 %v4160_v40, %s6286_s30 }
  0x7f   : > { %3737 = vrot.lane.b32.xlu1 %v4134_v0, %s6286_s30  ;;  %v4276_v0 = vrot.slane %v4030_v56, %v3967_v13 }
  0x83   : > { %3747 = vrot.lane.b32.xlu1 %v4140_v58, %s6286_s30  ;;  %s6338_s30 = sld [smem:[#allocation18_spill]] }
  0xa8   : > { %v3606_v63 = vpop.permute.xlu1 %3605 }
  0xa9   : > { %v3608_v40 = vunpack.i.h.bf16 %v3606_v63  ;;  %v3607_v9 = vunpack.i.l.bf16 %v3606_v63 }
  0xac   : > { %v3596_v8 = vpop.permute.xlu0 %3595 }
  0xad   : > { %v3598_v28 = vunpack.i.h.bf16 %v3596_v8  ;;  %v3597_v53 = vunpack.i.l.bf16 %v3596_v8 }
  0xb0   : > { %v3601_v58 = vpop.permute.xlu0 %3600 }
  0xb1   : > { %v3603_v10 = vunpack.i.h.bf16 %v3601_v58  ;;  %v3602_v16 = vunpack.i.l.bf16 %v3601_v58 }
  0xb3   : > { %v1380_v13 = vsel %vm992_vm0, %v3597_v53, %v3602_v16  ;;  %v1381_v11 = vsel %vm992_vm0, %v3598_v28, %v3603_v10  ;;  %v1384_v41 = vsel %vm992_vm0, %v3602_v16, %v3597_v53  ;;  %v1385_v42 = vsel %vm992_vm0, %v3603_v10, %v3598_v28 }
  0xb4   : > { %v1389_v56 = vmul.f32 %v1380_v13, %v4280_v33  ;;  %v1391_v21 = vmul.f32 %v1381_v11, %v4280_v33  ;;  %v1388_v5 = vmul.f32 %v1384_v41, %v4276_v0  ;;  %v1390_v22 = vmul.f32 %v1385_v42, %v4276_v0  ;;  %v3616_v39 = vpop.permute.xlu0 %3615 }
  0xb5   : > { %v3611_v57 = vpop.permute.xlu1 %3610  ;;  %v3618_v26 = vunpack.i.h.bf16 %v3616_v39  ;;  %v3617_v29 = vunpack.i.l.bf16 %v3616_v39 }
  0xb6   : > { %v3613_v34 = vunpack.i.h.bf16 %v3611_v57  ;;  %v3612_v36 = vunpack.i.l.bf16 %v3611_v57  ;;  %v1629_v31 = vpack.c.bf16 %v1391_v21, %v1389_v56  ;;  %v1628_v32 = vpack.c.bf16 %v1390_v22, %v1388_v5 }
  0xb8   : > { %v1382_v30 = vsel %vm992_vm0, %v3607_v9, %v3612_v36  ;;  %v1383_v48 = vsel %vm992_vm0, %v3608_v40, %v3613_v34  ;;  %v1386_v43 = vsel %vm992_vm0, %v3612_v36, %v3607_v9  ;;  %v1387_v44 = vsel %vm992_vm0, %v3613_v34, %v3608_v40  ;;  %1709 = vmatprep.subr.bf16.mxu1 %v1629_v31 }
  0xb9   : > { %v3622_v25 = vpop.permute.xlu1 %3621  ;;  %v1393_v52 = vmul.f32 %v1382_v30, %v4280_v33  ;;  %v1395_v3 = vmul.f32 %v1383_v48, %v4280_v33  ;;  %v1392_v46 = vmul.f32 %v1386_v43, %v4276_v0  ;;  %v1394_v47 = vmul.f32 %v1387_v44, %v4276_v0  ;;  %1710 = vmatpush1.bf16.msra.mxu1 %v1628_v32 }
  0xba   : > { %v3624_v2 = vunpack.i.h.bf16 %v3622_v25  ;;  %v3623_v49 = vunpack.i.l.bf16 %v3622_v25 }
  0xbb   : > { %v1631_v8 = vpack.c.bf16 %v1395_v3, %v1393_v52  ;;  %v1630_v58 = vpack.c.bf16 %v1394_v47, %v1392_v46 }
  0xbc   : > { %v1412_v50 = vsel %vm1033_vm1, %v3617_v29, %v3623_v49  ;;  %v1413_v51 = vsel %vm1033_vm1, %v3618_v26, %v3624_v2  ;;  %v1416_v53 = vsel %vm1033_vm1, %v3623_v49, %v3617_v29  ;;  %v1417_v40 = vsel %vm1033_vm1, %v3624_v2, %v3618_v26 }
  0xbd   : > { %v1421_v63 = vmul.f32 %v1412_v50, %v4288_v45  ;;  %v1423_v28 = vmul.f32 %v1413_v51, %v4288_v45  ;;  %v1420_v9 = vmul.f32 %v1416_v53, %v4284_v14  ;;  %1711 = vmatprep.subr.bf16.mxu1 %v1631_v8  ;;  %v1422_v16 = vmul.f32 %v1417_v40, %v4284_v14 }
  0xbe   : > { %1712 = vmatpush1.bf16.msra.mxu1 %v1630_v58  ;;  %v4349_v50 = vrot.slane %v4055_v19, %v4025_v55 }
  0xbf   : > { %v1633_v10 = vpack.c.bf16 %v1423_v28, %v1421_v63  ;;  %v1632_v57 = vpack.c.bf16 %v1422_v16, %v1420_v9 }
  0xc1   : > { %1713 = vmatprep.subr.bf16.mxu1 %v1633_v10 }
  0xc2   : > { %1714 = vmatpush1.bf16.msra.mxu1 %v1632_v57 }
  0xc5   : > { %v4326_v34 = vpop.permute.xlu0 %871 }
  0xc9   : > { %v3633_v13 = vpop.permute.xlu0 %3632 }
  0xca   : > { %v4328_v36 = vpop.permute.xlu1 %876  ;;  %v3635_v41 = vunpack.i.h.bf16 %v3633_v13  ;;  %v3634_v42 = vunpack.i.l.bf16 %v3633_v13 }
  0xcd   : > { %v4344_v49 = vpop.permute.xlu0 %886 }
  0xce   : > { %v3628_v11 = vpop.permute.xlu1 %3627 }
  0xcf   : > { %v3630_v56 = vunpack.i.h.bf16 %v3628_v11  ;;  %v3629_v21 = vunpack.i.l.bf16 %v3628_v11 }
  0xd1   : > { %v1414_v5 = vsel %vm1033_vm1, %v3629_v21, %v3634_v42  ;;  %v1415_v22 = vsel %vm1033_vm1, %v3630_v56, %v3635_v41  ;;  %v1418_v39 = vsel %vm1033_vm1, %v3634_v42, %v3629_v21  ;;  %v1419_v25 = vsel %vm1033_vm1, %v3635_v41, %v3630_v56  ;;  %v3643_v3 = vpop.permute.xlu0 %3642 }
  0xd2   : > { %v1425_v26 = vmul.f32 %v1414_v5, %v4288_v45  ;;  %v1427_v29 = vmul.f32 %v1415_v22, %v4288_v45  ;;  %v1424_v30 = vmul.f32 %v1418_v39, %v4284_v14  ;;  %v1426_v48 = vmul.f32 %v1419_v25, %v4284_v14  ;;  %v4342_v2 = vpop.permute.xlu1 %881 }
  0xd3   : > { %v3645_v46 = vunpack.i.h.bf16 %v3643_v3  ;;  %v3644_v47 = vunpack.i.l.bf16 %v3643_v3 }
  0xd4   : > { %v1635_v31 = vpack.c.bf16 %v1427_v29, %v1425_v26  ;;  %v1634_v32 = vpack.c.bf16 %v1426_v48, %v1424_v30 }
  0xd5   : > { %v3653_v8 = vpop.permute.xlu0 %3652 }
  0xd6   : > { %1715 = vmatprep.subr.bf16.mxu1 %v1635_v31  ;;  %v3638_v52 = vpop.permute.xlu1 %3637  ;;  %v3655_v40 = vunpack.i.h.bf16 %v3653_v8  ;;  %v3654_v9 = vunpack.i.l.bf16 %v3653_v8 }
  0xd7   : > { %1716 = vmatpush1.bf16.msra.mxu1 %v1634_v32  ;;  %v3640_v43 = vunpack.i.h.bf16 %v3638_v52  ;;  %v3639_v44 = vunpack.i.l.bf16 %v3638_v52 }
  0xd9   : > { %v1444_v63 = vsel %vm1074_vm2, %v3639_v44, %v3644_v47  ;;  %v1445_v28 = vsel %vm1074_vm2, %v3640_v43, %v3645_v46  ;;  %v1448_v55 = vsel %vm1074_vm2, %v3644_v47, %v3639_v44  ;;  %v1449_v19 = vsel %vm1074_vm2, %v3645_v46, %v3640_v43  ;;  %v3663_v41 = vpop.permute.xlu0 %3662 }
  0xda   : > { %v3648_v51 = vpop.permute.xlu1 %3647  ;;  %v1453_v10 = vmul.f32 %v1444_v63, %v4349_v50  ;;  %v1455_v16 = vmul.f32 %v1445_v28, %v4349_v50  ;;  %v1452_v57 = vmul.f32 %v1448_v55, %v4037_v60  ;;  %v1454_v13 = vmul.f32 %v1449_v19, %v4037_v60 }
  0xdb   : > { %v3650_v53 = vunpack.i.h.bf16 %v3648_v51  ;;  %v3649_v58 = vunpack.i.l.bf16 %v3648_v51  ;;  %v3665_v39 = vunpack.i.h.bf16 %v3663_v41  ;;  %v3664_v25 = vunpack.i.l.bf16 %v3663_v41 }
  0xdc   : > { %v1637_v42 = vpack.c.bf16 %v1455_v16, %v1453_v10  ;;  %v1636_v26 = vpack.c.bf16 %v1454_v13, %v1452_v57 }
  0xdd   : > { %v1446_v56 = vsel %vm1074_vm2, %v3649_v58, %v3654_v9  ;;  %v1447_v21 = vsel %vm1074_vm2, %v3650_v53, %v3655_v40  ;;  %v1450_v48 = vsel %vm1074_vm2, %v3654_v9, %v3649_v58  ;;  %v1451_v31 = vsel %vm1074_vm2, %v3655_v40, %v3650_v53  ;;  %v3673_v3 = vpop.permute.xlu0 %3672 }
  0xde   : > { %v3658_v11 = vpop.permute.xlu1 %3657  ;;  %1717 = vmatprep.subr.bf16.mxu1 %v1637_v42  ;;  %v1457_v29 = vmul.f32 %v1446_v56, %v4349_v50  ;;  %v1459_v30 = vmul.f32 %v1447_v21, %v4349_v50  ;;  %v1456_v32 = vmul.f32 %v1450_v48, %v4037_v60  ;;  %v1458_v44 = vmul.f32 %v1451_v31, %v4037_v60 }
  0xdf   : > { %v3660_v5 = vunpack.i.h.bf16 %v3658_v11  ;;  %v3659_v22 = vunpack.i.l.bf16 %v3658_v11  ;;  %1718 = vmatpush1.bf16.msra.mxu1 %v1636_v26  ;;  %v3675_v63 = vunpack.i.h.bf16 %v3673_v3  ;;  %v3674_v28 = vunpack.i.l.bf16 %v3673_v3 }
  0xe0   : > { %v1639_v43 = vpack.c.bf16 %v1459_v30, %v1457_v29  ;;  %v1638_v53 = vpack.c.bf16 %v1458_v44, %v1456_v32  ;;  %v1493_v26 = vmul.f32 %v4088_v1, %v967_v37  ;;  %v1495_v29 = vmul.f32 %v4088_v1, %v969_v38 }
  0xe1   : > { %v1476_v46 = vsel %vm1115_vm3, %v3659_v22, %v3664_v25  ;;  %v1477_v47 = vsel %vm1115_vm3, %v3660_v5, %v3665_v39  ;;  %v1480_v9 = vsel %vm1115_vm3, %v3664_v25, %v3659_v22  ;;  %v1481_v10 = vsel %vm1115_vm3, %v3665_v39, %v3660_v5  ;;  %v3683_v37 = vpop.permute.xlu0 %3682 }
  0xe2   : > { %v3668_v52 = vpop.permute.xlu1 %3667  ;;  %1719 = vmatprep.subr.bf16.mxu1 %v1639_v43  ;;  %v1485_v58 = vmul.f32 %v1476_v46, %v4058_v23  ;;  %v1487_v40 = vmul.f32 %v1477_v47, %v4058_v23  ;;  %v1484_v16 = vmul.f32 %v1480_v9, %v4044_v4  ;;  %v1486_v19 = vmul.f32 %v1481_v10, %v4044_v4 }
  0xe3   : > { %v3670_v51 = vunpack.i.h.bf16 %v3668_v52  ;;  %v3669_v8 = vunpack.i.l.bf16 %v3668_v52  ;;  %1720 = vmatpush1.bf16.msra.mxu1 %v1638_v53  ;;  %v6332_v48 = vunpack.c.l.bf16 %v4079_v54  ;;  %v6333_v32 = vunpack.c.l.bf16 %v4093_v6 }
  0xe4   : > { %v1641_v55 = vpack.c.bf16 %v1487_v40, %v1485_v58  ;;  %v1640_v21 = vpack.c.bf16 %v1486_v19, %v1484_v16  ;;  %v1645_v3 = vpack.c.bf16 %v1495_v29, %v1493_v26  ;;  %v3685_v47 = vunpack.i.h.bf16 %v3683_v37 }
  0xe5   : > { %v1478_v57 = vsel %vm1115_vm3, %v3669_v8, %v3674_v28  ;;  %v1479_v13 = vsel %vm1115_vm3, %v3670_v51, %v3675_v63  ;;  %v1482_v42 = vsel %vm1115_vm3, %v3674_v28, %v3669_v8  ;;  %v1483_v56 = vsel %vm1115_vm3, %v3675_v63, %v3670_v51 }
  0xe6   : > { %v1489_v11 = vmul.f32 %v1478_v57, %v4058_v23  ;;  %v1491_v41 = vmul.f32 %v1479_v13, %v4058_v23  ;;  %1721 = vmatprep.subr.bf16.mxu1 %v1641_v55  ;;  %v1488_v5 = vmul.f32 %v1482_v42, %v4044_v4  ;;  %v1490_v22 = vmul.f32 %v1483_v56, %v4044_v4  ;;  %v3678_v30 = vpop.permute.xlu1 %3677  ;;  %v3693_v55 = vpop.permute.xlu0 %3692 }
  0xe7   : > { %1722 = vmatpush1.bf16.msra.mxu1 %v1640_v21  ;;  %v1492_v31 = vmul.f32 %v4084_v61, %v6332_v48  ;;  %v1494_v52 = vmul.f32 %v4084_v61, %v6333_v32  ;;  %v3680_v43 = vunpack.i.h.bf16 %v3678_v30  ;;  %v3679_v44 = vunpack.i.l.bf16 %v3678_v30 }
  0xe8   : > { %v1643_v39 = vpack.c.bf16 %v1491_v41, %v1489_v11  ;;  %v1642_v25 = vpack.c.bf16 %v1490_v22, %v1488_v5  ;;  %v3684_v51 = vunpack.i.l.bf16 %v3683_v37  ;;  %v6334_v38 = vunpack.c.h.bf16 %v4095_v59 }
  0xe9   : > { %v1644_v46 = vpack.c.bf16 %v1494_v52, %v1492_v31  ;;  %v6335_v8 = vunpack.c.h.bf16 %v4097_v7  ;;  %v6336_v28 = vunpack.c.l.bf16 %v4095_v59  ;;  %v6337_v58 = vunpack.c.l.bf16 %v4097_v7 }
  0xea   : > { %1723 = vmatprep.subr.bf16.mxu1 %v1643_v39  ;;  %v1497_v54 = vmul.f32 %v4088_v1, %v6334_v38  ;;  %v3688_v63 = vpop.permute.xlu1 %3687  ;;  %v1520_v57 = vsel %vm1172_vm4, %v3684_v51, %v3679_v44  ;;  %v1521_v13 = vsel %vm1172_vm4, %v3685_v47, %v3680_v43  ;;  %v3695_v11 = vunpack.i.h.bf16 %v3693_v55  ;;  %v3703_v26 = vpop.permute.xlu0 %3702 }
  0xeb   : > { %1724 = vmatpush1.bf16.msra.mxu1 %v1642_v25  ;;  %v1499_v6 = vmul.f32 %v4088_v1, %v6335_v8  ;;  %v1496_v53 = vmul.f32 %v4084_v61, %v6336_v28  ;;  %v1498_v40 = vmul.f32 %v4084_v61, %v6337_v58  ;;  %v3690_v9 = vunpack.i.h.bf16 %v3688_v63 }
  0xec   : > { %1725 = vmatprep.subr.bf16.mxu1 %v1645_v3  ;;  %v3689_v16 = vunpack.i.l.bf16 %v3688_v63  ;;  %v3694_v59 = vunpack.i.l.bf16 %v3693_v55  ;;  %v1525_v41 = vmul.f32 %v1520_v57, %v4101_v12  ;;  %v1527_v7 = vmul.f32 %v1521_v13, %v4101_v12 }
  0xed   : > { %v1647_v10 = vpack.c.bf16 %v1499_v6, %v1497_v54  ;;  %v1646_v19 = vpack.c.bf16 %v1498_v40, %v1496_v53  ;;  %v1516_v56 = vsel %vm1172_vm4, %v3679_v44, %v3684_v51  ;;  %v1517_v21 = vsel %vm1172_vm4, %v3680_v43, %v3685_v47 }
  0xee   : > { %v3698_v42 = vpop.permute.xlu1 %3697  ;;  %v1649_v22 = vpack.c.bf16 %v1527_v7, %v1525_v41  ;;  %v1524_v39 = vmul.f32 %v1516_v56, %v4091_v62  ;;  %v1526_v29 = vmul.f32 %v1517_v21, %v4091_v62  ;;  %v1522_v30 = vsel %vm1172_vm4, %v3694_v59, %v3689_v16  ;;  %v3713_v8 = vpop.permute.xlu0 %3712 }
  0xef   : > { %1726 = vmatpush1.bf16.msra.mxu1 %v1644_v46  ;;  %v3700_v5 = vunpack.i.h.bf16 %v3698_v42  ;;  %v3699_v25 = vunpack.i.l.bf16 %v3698_v42  ;;  %v1523_v48 = vsel %vm1172_vm4, %v3695_v11, %v3690_v9  ;;  %v3705_v31 = vunpack.i.h.bf16 %v3703_v26 }
  0xf0   : > { %1727 = vmatprep.subr.bf16.mxu1 %v1647_v10  ;;  %v3704_v32 = vunpack.i.l.bf16 %v3703_v26  ;;  %v1529_v52 = vmul.f32 %v1522_v30, %v4101_v12  ;;  %v1531_v3 = vmul.f32 %v1523_v48, %v4101_v12  ;;  %v1648_v43 = vpack.c.bf16 %v1526_v29, %v1524_v39 }
  0xf1   : > { %v1518_v37 = vsel %vm1172_vm4, %v3689_v16, %v3694_v59  ;;  %v1519_v46 = vsel %vm1172_vm4, %v3690_v9, %v3695_v11  ;;  %v1553_v28 = vsel %vm1213_vm5, %v3705_v31, %v3700_v5  ;;  %v3715_v53 = vunpack.i.h.bf16 %v3713_v8 }
  0xf2   : > { %v3708_v44 = vpop.permute.xlu1 %3707  ;;  %v1651_v51 = vpack.c.bf16 %v1531_v3, %v1529_v52  ;;  %v1528_v38 = vmul.f32 %v1518_v37, %v4091_v62  ;;  %v1530_v6 = vmul.f32 %v1519_v46, %v4091_v62  ;;  %v1552_v63 = vsel %vm1213_vm5, %v3704_v32, %v3699_v25  ;;  %v3723_v41 = vpop.permute.xlu0 %3722 }
  0xf3   : > { %1728 = vmatpush1.bf16.msra.mxu1 %v1646_v19  ;;  %v3710_v47 = vunpack.i.h.bf16 %v3708_v44  ;;  %v3709_v54 = vunpack.i.l.bf16 %v3708_v44  ;;  %v3714_v58 = vunpack.i.l.bf16 %v3713_v8  ;;  %v1557_v40 = vmul.f32 %v1552_v63, %v4108_v17 }
  0xf4   : > { %1729 = vmatprep.subr.bf16.mxu1 %v1649_v22  ;;  %v1559_v9 = vmul.f32 %v1553_v28, %v4108_v17  ;;  %v1650_v10 = vpack.c.bf16 %v1530_v6, %v1528_v38  ;;  %v1548_v55 = vsel %vm1213_vm5, %v3699_v25, %v3704_v32  ;;  %v1549_v19 = vsel %vm1213_vm5, %v3700_v5, %v3705_v31 }
  0xf5   : > { %v1556_v11 = vmul.f32 %v1548_v55, %v4104_v15  ;;  %v1558_v7 = vmul.f32 %v1549_v19, %v4104_v15  ;;  %v1554_v42 = vsel %vm1213_vm5, %v3714_v58, %v3709_v54  ;;  %v1555_v56 = vsel %vm1213_vm5, %v3715_v53, %v3710_v47 }
  0xf6   : > { %v3718_v16 = vpop.permute.xlu1 %3717  ;;  %v1653_v13 = vpack.c.bf16 %v1559_v9, %v1557_v40  ;;  %v3725_v21 = vunpack.i.h.bf16 %v3723_v41  ;;  %v3724_v22 = vunpack.i.l.bf16 %v3723_v41  ;;  %v1561_v5 = vmul.f32 %v1554_v42, %v4108_v17  ;;  %v3733_v3 = vpop.permute.xlu0 %3732 }
  0xf7   : > { %1730 = vmatpush1.bf16.msra.mxu1 %v1648_v43  ;;  %v3720_v57 = vunpack.i.h.bf16 %v3718_v16  ;;  %v3719_v59 = vunpack.i.l.bf16 %v3718_v16  ;;  %v1563_v39 = vmul.f32 %v1555_v56, %v4108_v17  ;;  %v1652_v25 = vpack.c.bf16 %v1558_v7, %v1556_v11 }
  0xf8   : > { %1731 = vmatprep.subr.bf16.mxu1 %v1651_v51  ;;  %v1550_v29 = vsel %vm1213_vm5, %v3709_v54, %v3714_v58  ;;  %v1551_v30 = vsel %vm1213_vm5, %v3710_v47, %v3715_v53  ;;  %v3735_v46 = vunpack.i.h.bf16 %v3733_v3  ;;  %v3734_v51 = vunpack.i.l.bf16 %v3733_v3 }
  0xf9   : > { %v1655_v31 = vpack.c.bf16 %v1563_v39, %v1561_v5  ;;  %v1560_v32 = vmul.f32 %v1550_v29, %v4104_v15  ;;  %v1562_v43 = vmul.f32 %v1551_v30, %v4104_v15  ;;  %v1584_v44 = vsel %vm1254_vm6, %v3724_v22, %v3719_v59 }
  0xfa   : > { %v3728_v26 = vpop.permute.xlu1 %3727  ;;  %v1585_v37 = vsel %vm1254_vm6, %v3725_v21, %v3720_v57  ;;  %v1589_v47 = vmul.f32 %v1584_v44, %v4114_v27  ;;  %v1580_v6 = vsel %vm1254_vm6, %v3719_v59, %v3724_v22  ;;  %v1581_v63 = vsel %vm1254_vm6, %v3720_v57, %v3725_v21  ;;  %v3743_v9 = vpop.permute.xlu0 %3742 }
  0xfb   : > { %1732 = vmatpush1.bf16.msra.mxu1 %v1650_v10  ;;  %v3730_v48 = vunpack.i.h.bf16 %v3728_v26  ;;  %v3729_v52 = vunpack.i.l.bf16 %v3728_v26  ;;  %v1591_v38 = vmul.f32 %v1585_v37, %v4114_v27  ;;  %v1654_v54 = vpack.c.bf16 %v1562_v43, %v1560_v32 }
  0xfc   : > { %1733 = vmatprep.subr.bf16.mxu1 %v1653_v13  ;;  %v1588_v40 = vmul.f32 %v1580_v6, %v4111_v18  ;;  %v1590_v10 = vmul.f32 %v1581_v63, %v4111_v18  ;;  %v3745_v19 = vunpack.i.h.bf16 %v3743_v9  ;;  %v3744_v13 = vunpack.i.l.bf16 %v3743_v9 }
  0xfd   : > { %v1657_v58 = vpack.c.bf16 %v1591_v38, %v1589_v47  ;;  %v1586_v16 = vsel %vm1254_vm6, %v3734_v51, %v3729_v52  ;;  %v1587_v55 = vsel %vm1254_vm6, %v3735_v46, %v3730_v48  ;;  %v1582_v7 = vsel %vm1254_vm6, %v3729_v52, %v3734_v51  ;;  %v3764_v51 = vld [vmem:[%s6338_s30 + $0x4] ss:$12 sps:$4 sm:$0xff]  }
  0xfe   : > { %v3738_v8 = vpop.permute.xlu1 %3737  ;;  %v1593_v57 = vmul.f32 %v1586_v16, %v4114_v27  ;;  %v1595_v11 = vmul.f32 %v1587_v55, %v4114_v27  ;;  %v1656_v59 = vpack.c.bf16 %v1590_v10, %v1588_v40  ;;  %v1583_v42 = vsel %vm1254_vm6, %v3730_v48, %v3735_v46  ;;  %v3753_v26 = vpop.permute.xlu0 %3752  ;;  %1741 = vmatprep.mubr.bf16.mxu1 %v3764_v51  ;;  %v1959_v51 = vld [vmem:[%s6344_s7 + $0x10] sm:$0xff] }
  0xff   : > { %1734 = vmatpush1.bf16.msra.mxu1 %v1652_v25  ;;  %v3740_v28 = vunpack.i.h.bf16 %v3738_v8  ;;  %v3739_v53 = vunpack.i.l.bf16 %v3738_v8  ;;  %v1592_v30 = vmul.f32 %v1582_v7, %v4111_v18  ;;  %v3754_v32 = vunpack.i.l.bf16 %v3753_v26  ;;  %v3762_v8 = vld [vmem:[%s6338_s30] ss:$12 sps:$4 sm:$0xff]   ;;  %v3767_v7 = vld [vmem:[%s6338_s30 + $0x18] ss:$12 sps:$4 sm:$0xff]  }
 0x100   : > { %1735 = vmatprep.subr.bf16.mxu1 %v1655_v31  ;;  %v1659_v29 = vpack.c.bf16 %v1595_v11, %v1593_v57  ;;  %v3755_v31 = vunpack.i.h.bf16 %v3753_v26  ;;  %v1594_v48 = vmul.f32 %v1583_v42, %v4111_v18 }
 0x101   : > { %v1613_v56 = vsel %vm1295_vm7, %v3740_v28, %v3745_v19  ;;  %v1612_v21 = vsel %vm1295_vm7, %v3739_v53, %v3744_v13  ;;  %v1616_v52 = vsel %vm1295_vm7, %v3744_v13, %v3739_v53  ;;  %v1617_v3 = vsel %vm1295_vm7, %v3745_v19, %v3740_v28 }
 0x102   : > { %v3748_v41 = vpop.permute.xlu1 %3747  ;;  %v1622_v39 = vmul.f32 %v1613_v56, %v3986_v24  ;;  %v1620_v25 = vmul.f32 %v1612_v21, %v3986_v24  ;;  %v1621_v43 = vmul.f32 %v1616_v52, %v3976_v20  ;;  %v1658_v46 = vpack.c.bf16 %v1594_v48, %v1592_v30 }
 0x103   : > { %1736 = vmatpush1.bf16.msra.mxu1 %v1654_v54  ;;  %v3750_v22 = vunpack.i.h.bf16 %v3748_v41  ;;  %v3749_v5 = vunpack.i.l.bf16 %v3748_v41  ;;  %v1623_v47 = vmul.f32 %v1617_v3, %v3976_v20 }
 0x104   : > { %1737 = vmatprep.subr.bf16.mxu1 %v1657_v58  ;;  %v1660_v6 = vpack.c.bf16 %v1622_v39, %v1620_v25 }
 0x105   : > { %v1615_v44 = vsel %vm1295_vm7, %v3750_v22, %v3755_v31  ;;  %v1614_v37 = vsel %vm1295_vm7, %v3749_v5, %v3754_v32  ;;  %v1618_v63 = vsel %vm1295_vm7, %v3754_v32, %v3749_v5  ;;  %v1661_v28 = vpack.c.bf16 %v1623_v47, %v1621_v43  ;;  %v3768_v5 = vld [vmem:[%s6338_s30 + $0x8] ss:$12 sps:$4 sm:$0xff]   ;;  %v1957_v43 = vld [vmem:[%s6344_s7] sm:$0xff] }
 0x106   : > { %v1626_v38 = vmul.f32 %v1615_v44, %v3986_v24  ;;  %v1624_v54 = vmul.f32 %v1614_v37, %v3986_v24  ;;  %v1619_v53 = vsel %vm1295_vm7, %v3755_v31, %v3750_v22  ;;  %v1625_v58 = vmul.f32 %v1618_v63, %v3976_v20  ;;  %v1958_v37 = vld [vmem:[%s6344_s7 + $0x8] sm:$0xff] }
 0x107   : > { %1738 = vmatpush1.bf16.msra.mxu1 %v1656_v59  ;;  %v1627_v40 = vmul.f32 %v1619_v53, %v3976_v20  ;;  %v3765_v59 = vld [vmem:[%s6338_s30 + $0x1c] ss:$12 sps:$4 sm:$0xff]   ;;  %v6339_v22 = vmov 0  }
 0x108   : > { %1739 = vmatprep.subr.bf16.mxu1 %v1659_v29  ;;  %v1662_v10 = vpack.c.bf16 %v1626_v38, %v1624_v54  ;;  %v1960_v38 = vld [vmem:[%s6344_s7 + $0x18] sm:$0xff] }
 0x109   : > { %v1663_v9 = vpack.c.bf16 %v1627_v40, %v1625_v58 }
 0x10b   : > { %1740 = vmatpush1.bf16.msra.mxu1 %v1658_v46 }
 0x10c   : > { %1762 = vmatprep.subr.bf16.mxu1 %v1661_v28 }
 0x10e   : > { %1742 = vmatmul.mubr.bf16.vlgmr.msra.gmra.mrb[0].mxu1 %v3762_v8 }
 0x10f   : > { %1763 = vmatpush1.bf16.msra.mxu1 %v1660_v6  ;;  %1751 = vmatprep.mubr.bf16.mxu1 %v3765_v59 }
 0x110   : > { %1764 = vmatprep.subr.bf16.mxu1 %v1663_v9 }
 0x113   : > { %1765 = vmatpush1.bf16.msra.mxu1 %v1662_v10 }
 0x116   : > { %1752 = vmatmul.mubr.bf16.gmra.mrb[4].mxu1 %v3767_v7 }
 0x117   : > { %1794 = vmatprep.mubr.bf16.mxu1 %v6339_v22 }
 0x11e   : > { %3485 = vmatmul.mubr.msk.bf16.vlgmr.msra.gmra.mrb[0].mxu1 %vm1702_vm8, %v3768_v5 }
 0x11f   : > { %1804 = vmatprep.mubr.bf16.mxu1 %v6339_v22 }
 0x137   : > { %v943_v16 = vpop.f32.mrb[0].mxu0 }
 0x138   : > { %v4531_v55 = vadd.f32 %v943_v16, %v4326_v34  ;;  %v945_v19 = vpop.f32.mrb[1].mxu0 }
 0x139   : > { %v947_v13 = vpop.f32.mrb[2].mxu0  ;;  %v4567_v39 = vadd.f32 %v945_v19, %v4326_v34 }
 0x13a   : > { %v4534_v57 = vadd.f32 %v947_v13, %v4328_v36  ;;  %v949_v11 = vpop.f32.mrb[3].mxu0  ;;  %974 = vrot.lane.b32.xlu1 %v4531_v55, %s6300_s27 }
 0x13b   : > { %v4572_v25 = vadd.f32 %v949_v11, %v4328_v36 }
 0x13c   : > { %976 = vrot.lane.b32.xlu0 %v4534_v57, %s6300_s27 }
 0x13e   : > { %1017 = vrot.lane.b32.xlu1 %v4531_v55, %s6298_s29 }
 0x13f   : > { %v953_v41 = vpop.f32.mrb[4].mxu0 }
 0x140   : > { %v955_v42 = vpop.f32.mrb[5].mxu0  ;;  %1019 = vrot.lane.b32.xlu0 %v4534_v57, %s6298_s29  ;;  %v4589_v34 = vadd.f32 %v953_v41, %v4342_v2 }
 0x141   : > { %v957_v56 = vpop.f32.mrb[6].mxu0  ;;  %v4611_v26 = vadd.f32 %v955_v42, %v4342_v2  ;;  %v3769_v2 = vld [vmem:[%s6338_s30 + $0x20] ss:$12 sps:$4 sm:$0xff]  }
 0x142   : > { %v959_v21 = vpop.f32.mrb[7].mxu0  ;;  %1058 = vrot.lane.b32.xlu1 %v4531_v55, %s6296_s0  ;;  %v4594_v36 = vadd.f32 %v957_v56, %v4344_v49  ;;  %3486 = vmatmul.mubr.msk.bf16.gmra.mrb[4].mxu1 %vm1702_vm8, %v3769_v2 }
 0x143   : > { %v4616_v29 = vadd.f32 %v959_v21, %v4344_v49 }
 0x144   : > { %1060 = vrot.lane.b32.xlu0 %v4534_v57, %s6296_s0 }
 0x146   : > { %1099 = vrot.lane.b32.xlu1 %v4531_v55, %s6292_s2 }
 0x148   : > { %1101 = vrot.lane.b32.xlu0 %v4534_v57, %s6292_s2 }
 0x14a   : > { %1156 = vrot.lane.b32.xlu1 %v4531_v55, %s6294_s6 }
 0x14c   : > { %1158 = vrot.lane.b32.xlu0 %v4534_v57, %s6294_s6 }
 0x14e   : > { %982 = vrot.lane.b32.xlu1 %v4567_v39, %s6300_s27 }
 0x150   : > { %984 = vrot.lane.b32.xlu0 %v4572_v25, %s6300_s27 }
 0x152   : > { %1025 = vrot.lane.b32.xlu1 %v4567_v39, %s6298_s29 }
 0x154   : > { %1027 = vrot.lane.b32.xlu0 %v4572_v25, %s6298_s29 }
 0x156   : > { %1066 = vrot.lane.b32.xlu1 %v4567_v39, %s6296_s0 }
 0x158   : > { %1068 = vrot.lane.b32.xlu0 %v4572_v25, %s6296_s0 }
 0x15a   : > { %1107 = vrot.lane.b32.xlu1 %v4567_v39, %s6292_s2 }
 0x15c   : > { %1109 = vrot.lane.b32.xlu0 %v4572_v25, %s6292_s2 }
 0x15e   : > { %978 = vrot.lane.b32.xlu1 %v4589_v34, %s6300_s27 }
 0x160   : > { %980 = vrot.lane.b32.xlu0 %v4594_v36, %s6300_s27 }
 0x162   : > { %1021 = vrot.lane.b32.xlu1 %v4589_v34, %s6298_s29 }
 0x164   : > { %1023 = vrot.lane.b32.xlu0 %v4594_v36, %s6298_s29 }
 0x166   : > { %1062 = vrot.lane.b32.xlu1 %v4589_v34, %s6296_s0 }
 0x168   : > { %1064 = vrot.lane.b32.xlu0 %v4594_v36, %s6296_s0 }
 0x16a   : > { %1103 = vrot.lane.b32.xlu1 %v4589_v34, %s6292_s2 }
 0x16c   : > { %1105 = vrot.lane.b32.xlu0 %v4594_v36, %s6292_s2 }
 0x16e   : > { %986 = vrot.lane.b32.xlu1 %v4611_v26, %s6300_s27 }
 0x170   : > { %988 = vrot.lane.b32.xlu0 %v4616_v29, %s6300_s27  ;;  %s6348_s27 = smov 1  }
 0x172   : > { %1164 = vrot.lane.b32.xlu1 %v4567_v39, %s6294_s6 }
 0x174   : > { %1166 = vrot.lane.b32.xlu0 %v4572_v25, %s6294_s6 }
 0x176   : > { %1029 = vrot.lane.b32.xlu1 %v4611_v26, %s6298_s29 }
 0x178   : > { %1031 = vrot.lane.b32.xlu0 %v4616_v29, %s6298_s29  ;;  %s6349_s29 = smov 127  }
 0x17a   : > { %1070 = vrot.lane.b32.xlu1 %v4611_v26, %s6296_s0 }
 0x17c   : > { %1162 = vrot.lane.b32.xlu0 %v4594_v36, %s6294_s6 }
 0x17e   : > { %1111 = vrot.lane.b32.xlu1 %v4611_v26, %s6292_s2 }
 0x180   : > { %1072 = vrot.lane.b32.xlu0 %v4616_v29, %s6296_s0  ;;  %s6342_s0 = sld [smem:[#allocation17_spill]] }
 0x182   : > { %1160 = vrot.lane.b32.xlu1 %v4589_v34, %s6294_s6 }
 0x184   : > { %1199 = vrot.lane.b32.xlu0 %v4534_v57, %s6340_s26 }
 0x186   : > { %1168 = vrot.lane.b32.xlu1 %v4611_v26, %s6294_s6  ;;  %v3772_v49 = vld [vmem:[%s6342_s0 + $0x4] ss:$12 sps:$4 sm:$0xff]  }
 0x187   : > { %1883 = vmatprep.mubr.bf16.mxu1 %v3772_v49 }
 0x188   : > { %1113 = vrot.lane.b32.xlu0 %v4616_v29, %s6292_s2  ;;  %s6345_s2 = smov 17  }
 0x18a   : > { %1197 = vrot.lane.b32.xlu1 %v4531_v55, %s6340_s26 }
 0x18c   : > { %1207 = vrot.lane.b32.xlu0 %v4572_v25, %s6340_s26 }
 0x18e   : > { %1205 = vrot.lane.b32.xlu1 %v4567_v39, %s6340_s26 }
 0x190   : > { %1203 = vrot.lane.b32.xlu0 %v4594_v36, %s6340_s26 }
 0x192   : > { %1201 = vrot.lane.b32.xlu1 %v4589_v34, %s6340_s26 }
 0x194   : > { %1240 = vrot.lane.b32.xlu0 %v4534_v57, %s6341_s24 }
 0x196   : > { %1209 = vrot.lane.b32.xlu1 %v4611_v26, %s6340_s26 }
 0x198   : > { %1170 = vrot.lane.b32.xlu0 %v4616_v29, %s6294_s6  ;;  %s6346_s6 = smov 16  }
 0x19a   : > { %1238 = vrot.lane.b32.xlu1 %v4531_v55, %s6341_s24 }
 0x19c   : > { %1248 = vrot.lane.b32.xlu0 %v4572_v25, %s6341_s24 }
 0x19e   : > { %1246 = vrot.lane.b32.xlu1 %v4567_v39, %s6341_s24 }
 0x1a0   : > { %1211 = vrot.lane.b32.xlu0 %v4616_v29, %s6340_s26 }
 0x1a2   : > { %1242 = vrot.lane.b32.xlu1 %v4589_v34, %s6341_s24 }
 0x1a4   : > { %1244 = vrot.lane.b32.xlu0 %v4594_v36, %s6341_s24 }
 0x1a6   : > { %1250 = vrot.lane.b32.xlu1 %v4611_v26, %s6341_s24 }
 0x1a8   : > { %1252 = vrot.lane.b32.xlu0 %v4616_v29, %s6341_s24 }
 0x1aa   : > { %1279 = vrot.lane.b32.xlu1 %v4531_v55, %s6343_s5 }
 0x1ac   : > { %1281 = vrot.lane.b32.xlu0 %v4534_v57, %s6343_s5  ;;  %v975_v30 = vpop.permute.xlu1 %974 }
 0x1ae   : > { %v977_v31 = vpop.permute.xlu0 %976  ;;  %1287 = vrot.lane.b32.xlu1 %v4567_v39, %s6343_s5 }
 0x1b0   : > { %1289 = vrot.lane.b32.xlu0 %v4572_v25, %s6343_s5  ;;  %v4693_v32 = vpop.permute.xlu1 %1017 }
 0x1b2   : > { %v1020_v48 = vpop.permute.xlu0 %1019  ;;  %1283 = vrot.lane.b32.xlu1 %v4589_v34, %s6343_s5 }
 0x1b4   : > { %1285 = vrot.lane.b32.xlu0 %v4594_v36, %s6343_s5  ;;  %v4699_v52 = vpop.permute.xlu1 %1058 }
 0x1b6   : > { %v4701_v3 = vpop.permute.xlu0 %1060  ;;  %1291 = vrot.lane.b32.xlu1 %v4611_v26, %s6343_s5 }
 0x1b8   : > { %1293 = vrot.lane.b32.xlu0 %v4616_v29, %s6343_s5  ;;  %v4710_v44 = vpop.permute.xlu1 %1099 }
 0x1ba   : > { %v4715_v46 = vpop.permute.xlu0 %1101  ;;  %1963 = vperm.xlu1 %3625, %v1957_v43  }
 0x1bc   : > { %1968 = vperm.xlu0 %3619, %v1958_v37   ;;  %v4720_v47 = vpop.permute.xlu1 %1156 }
 0x1be   : > { %v4725_v54 = vpop.permute.xlu0 %1158  ;;  %1973 = vperm.xlu1 %3625, %v1959_v51  }
 0x1c0   : > { %1978 = vperm.xlu0 %3619, %v1960_v38   ;;  %v983_v8 = vpop.permute.xlu1 %982 }
 0x1c1   : > { %v993_v6 = vsel %vm992_vm0, %v975_v30, %v983_v8  ;;  %v997_v63 = vsel %vm992_vm0, %v983_v8, %v975_v30 }
 0x1c2   : > { %v985_v28 = vpop.permute.xlu0 %984  ;;  %v1009_v40 = vmul.f32 %v4276_v0, %v997_v63  ;;  %v1010_v9 = vmul.f32 %v4280_v33, %v993_v6 }
 0x1c3   : > { %v994_v53 = vsel %vm992_vm0, %v977_v31, %v985_v28  ;;  %v998_v58 = vsel %vm992_vm0, %v985_v28, %v977_v31 }
 0x1c4   : > { %v1011_v10 = vmul.f32 %v4276_v0, %v998_v58  ;;  %v1012_v16 = vmul.f32 %v4280_v33, %v994_v53  ;;  %v1026_v19 = vpop.permute.xlu1 %1025 }
 0x1c5   : > { %v1034_v63 = vsel %vm1033_vm1, %v4693_v32, %v1026_v19 }
 0x1c6   : > { %v1320_v13 = vpack.c.bf16 %v1011_v10, %v1009_v40  ;;  %v1028_v11 = vpop.permute.xlu0 %1027  ;;  %v1321_v59 = vpack.c.bf16 %v1012_v16, %v1010_v9 }
 0x1c7   : > { %v1035_v51 = vsel %vm1033_vm1, %v1020_v48, %v1028_v11  ;;  %v1039_v53 = vsel %vm1033_vm1, %v1028_v11, %v1020_v48  ;;  %v1038_v48 = vsel %vm1033_vm1, %v1026_v19, %v4693_v32  ;;  %v1051_v11 = vmul.f32 %v4288_v45, %v1034_v63 }
 0x1c8   : > { %1851 = vmatprep.subr.bf16.mxu1 %v1321_v59  ;;  %v1067_v41 = vpop.permute.xlu1 %1066  ;;  %v1053_v58 = vmul.f32 %v4288_v45, %v1035_v51  ;;  %v1052_v51 = vmul.f32 %v4284_v14, %v1039_v53 }
 0x1c9   : > { %1852 = vmatpush1.bf16.msra.mxu1 %v1320_v13  ;;  %v1075_v53 = vsel %vm1074_vm2, %v4699_v52, %v1067_v41 }
 0x1ca   : > { %v1069_v7 = vpop.permute.xlu0 %1068 }
 0x1cc   : > { %v4739_v42 = vpop.permute.xlu1 %1107 }
 0x1ce   : > { %v4741_v56 = vpop.permute.xlu0 %1109 }
 0x1d0   : > { %v979_v21 = vpop.permute.xlu1 %978 }
 0x1d2   : > { %v981_v5 = vpop.permute.xlu0 %980 }
 0x1d4   : > { %v1022_v2 = vpop.permute.xlu1 %1021 }
 0x1d6   : > { %v1024_v49 = vpop.permute.xlu0 %1023 }
 0x1d8   : > { %v1063_v30 = vpop.permute.xlu1 %1062 }
 0x1da   : > { %v4743_v31 = vpop.permute.xlu0 %1064 }
 0x1dc   : > { %v4745_v43 = vpop.permute.xlu1 %1103 }
 0x1de   : > { %v4747_v37 = vpop.permute.xlu0 %1105 }
 0x1e0   : > { %v987_v38 = vpop.permute.xlu1 %986 }
 0x1e1   : > { %v995_v8 = vsel %vm992_vm0, %v979_v21, %v987_v38  ;;  %v999_v6 = vsel %vm992_vm0, %v987_v38, %v979_v21 }
 0x1e2   : > { %v989_v28 = vpop.permute.xlu0 %988  ;;  %v1013_v10 = vmul.f32 %v4276_v0, %v999_v6  ;;  %v1014_v16 = vmul.f32 %v4280_v33, %v995_v8  ;;  %v1050_v8 = vmul.f32 %v4284_v14, %v1038_v48 }
 0x1e3   : > { %v996_v40 = vsel %vm992_vm0, %v981_v5, %v989_v28  ;;  %v1000_v9 = vsel %vm992_vm0, %v989_v28, %v981_v5  ;;  %v1076_v28 = vsel %vm1074_vm2, %v4701_v3, %v1069_v7 }
 0x1e4   : > { %v1015_v13 = vmul.f32 %v4276_v0, %v1000_v9  ;;  %v1016_v59 = vmul.f32 %v4280_v33, %v996_v40  ;;  %v4769_v21 = vpop.permute.xlu1 %1164  ;;  %v1325_v9 = vpack.c.bf16 %v1053_v58, %v1051_v11  ;;  %v1324_v63 = vpack.c.bf16 %v1052_v51, %v1050_v8 }
 0x1e5   : > { %v1094_v58 = vmul.f32 %v4349_v50, %v1076_v28 }
 0x1e6   : > { %v1322_v38 = vpack.c.bf16 %v1015_v13, %v1013_v10  ;;  %v4776_v5 = vpop.permute.xlu0 %1166  ;;  %v1323_v6 = vpack.c.bf16 %v1016_v59, %v1014_v16  ;;  %v1080_v16 = vsel %vm1074_vm2, %v1069_v7, %v4701_v3  ;;  %v1079_v3 = vsel %vm1074_vm2, %v1067_v41, %v4699_v52 }
 0x1e7   : > { %v1092_v7 = vmul.f32 %v4349_v50, %v1075_v53  ;;  %v1116_v53 = vsel %vm1115_vm3, %v4710_v44, %v4739_v42 }
 0x1e8   : > { %1853 = vmatprep.subr.bf16.mxu1 %v1323_v6  ;;  %v1030_v40 = vpop.permute.xlu1 %1029  ;;  %v1093_v6 = vmul.f32 %v4037_v60, %v1080_v16  ;;  %v1121_v16 = vsel %vm1115_vm3, %v4741_v56, %v4715_v46 }
 0x1e9   : > { %v1036_v32 = vsel %vm1033_vm1, %v1022_v2, %v1030_v40  ;;  %v1040_v19 = vsel %vm1033_vm1, %v1030_v40, %v1022_v2  ;;  %1854 = vmatpush1.bf16.msra.mxu1 %v1322_v38  ;;  %v1091_v40 = vmul.f32 %v4037_v60, %v1079_v3 }
 0x1ea   : > { %v1032_v10 = vpop.permute.xlu0 %1031  ;;  %1855 = vmatprep.subr.bf16.mxu1 %v1325_v9  ;;  %v1054_v59 = vmul.f32 %v4284_v14, %v1040_v19  ;;  %v1055_v48 = vmul.f32 %v4288_v45, %v1036_v32  ;;  %v1117_v9 = vsel %vm1115_vm3, %v4715_v46, %v4741_v56  ;;  %v1329_v19 = vpack.c.bf16 %v1094_v58, %v1092_v7 }
 0x1eb   : > { %v1037_v13 = vsel %vm1033_vm1, %v1024_v49, %v1032_v10  ;;  %v1041_v2 = vsel %vm1033_vm1, %v1032_v10, %v1024_v49  ;;  %v1135_v58 = vmul.f32 %v4058_v23, %v1117_v9  ;;  %v1120_v46 = vsel %vm1115_vm3, %v4739_v42, %v4710_v44 }
 0x1ec   : > { %v1056_v11 = vmul.f32 %v4284_v14, %v1041_v2  ;;  %v1057_v51 = vmul.f32 %v4288_v45, %v1037_v13  ;;  %v1071_v38 = vpop.permute.xlu1 %1070  ;;  %v1133_v56 = vmul.f32 %v4058_v23, %v1116_v53  ;;  %v1134_v7 = vmul.f32 %v4044_v4, %v1121_v16 }
 0x1ed   : > { %1856 = vmatpush1.bf16.msra.mxu1 %v1324_v63  ;;  %v1077_v52 = vsel %vm1074_vm2, %v1063_v30, %v1071_v38  ;;  %v1081_v41 = vsel %vm1074_vm2, %v1071_v38, %v1063_v30  ;;  %v1328_v63 = vpack.c.bf16 %v1093_v6, %v1091_v40 }
 0x1ee   : > { %v1326_v8 = vpack.c.bf16 %v1056_v11, %v1054_v59  ;;  %v4806_v49 = vpop.permute.xlu0 %1162  ;;  %v1327_v28 = vpack.c.bf16 %v1057_v51, %v1055_v48  ;;  %v1095_v2 = vmul.f32 %v4037_v60, %v1081_v41  ;;  %v1096_v59 = vmul.f32 %v4349_v50, %v1077_v52 }
 0x1ef   : > { %v1151_v41 = vmul.f32 %v4088_v1, %v4572_v25 }
 0x1f0   : > { %1857 = vmatprep.subr.bf16.mxu1 %v1327_v28  ;;  %v1112_v32 = vpop.permute.xlu1 %1111  ;;  %v1132_v28 = vmul.f32 %v4044_v4, %v1120_v46 }
 0x1f1   : > { %1858 = vmatpush1.bf16.msra.mxu1 %v1326_v8  ;;  %v1333_v8 = vpack.c.bf16 %v1135_v58, %v1133_v56  ;;  %v1118_v40 = vsel %vm1115_vm3, %v4745_v43, %v1112_v32  ;;  %v1122_v44 = vsel %vm1115_vm3, %v1112_v32, %v4745_v43 }
 0x1f2   : > { %v1073_v10 = vpop.permute.xlu0 %1072  ;;  %1859 = vmatprep.subr.bf16.mxu1 %v1329_v19  ;;  %v1332_v9 = vpack.c.bf16 %v1134_v7, %v1132_v28  ;;  %v1137_v53 = vmul.f32 %v4058_v23, %v1118_v40 }
 0x1f3   : > { %v1078_v30 = vsel %vm1074_vm2, %v4743_v31, %v1073_v10  ;;  %v1082_v13 = vsel %vm1074_vm2, %v1073_v10, %v4743_v31 }
 0x1f4   : > { %v1097_v48 = vmul.f32 %v4037_v60, %v1082_v13  ;;  %v1098_v11 = vmul.f32 %v4349_v50, %v1078_v30  ;;  %v1161_v51 = vpop.permute.xlu1 %1160  ;;  %v1149_v13 = vmul.f32 %v4088_v1, %v4567_v39  ;;  %v1177_v39 = vsel %vm1172_vm4, %v4769_v21, %v4720_v47 }
 0x1f5   : > { %1860 = vmatpush1.bf16.msra.mxu1 %v1328_v63  ;;  %v1136_v63 = vmul.f32 %v4044_v4, %v1122_v44  ;;  %v1190_v28 = vmul.f32 %v4101_v12, %v1177_v39 }
 0x1f6   : > { %v1330_v38 = vpack.c.bf16 %v1097_v48, %v1095_v2  ;;  %v4841_v3 = vpop.permute.xlu0 %1199  ;;  %v1331_v31 = vpack.c.bf16 %v1098_v11, %v1096_v59  ;;  %v1337_v2 = vpack.c.bf16 %v1151_v41, %v1149_v13  ;;  %v1155_v59 = vmul.f32 %v4088_v1, %v4616_v29 }
 0x1f7   : > { %v1178_v48 = vsel %vm1172_vm4, %v4776_v5, %v4725_v54  ;;  %v1148_v11 = vmul.f32 %v4084_v61, %v4531_v55  ;;  %v1174_v29 = vsel %vm1172_vm4, %v4725_v54, %v4776_v5 }
 0x1f8   : > { %1861 = vmatprep.subr.bf16.mxu1 %v1331_v31  ;;  %v1169_v6 = vpop.permute.xlu1 %1168  ;;  %v1192_v55 = vmul.f32 %v4101_v12, %v1178_v48  ;;  %v1191_v54 = vmul.f32 %v4091_v62, %v1174_v29 }
 0x1f9   : > { %1862 = vmatpush1.bf16.msra.mxu1 %v1330_v38  ;;  %v1154_v38 = vmul.f32 %v4084_v61, %v4594_v36  ;;  %v1175_v36 = vsel %vm1172_vm4, %v1161_v51, %v1169_v6 }
 0x1fa   : > { %v1114_v42 = vpop.permute.xlu0 %1113  ;;  %1863 = vmatprep.subr.bf16.mxu1 %v1333_v8  ;;  %v1152_v8 = vmul.f32 %v4084_v61, %v4589_v34 }
 0x1fb   : > { %v1119_v19 = vsel %vm1115_vm3, %v4747_v37, %v1114_v42  ;;  %v1123_v52 = vsel %vm1115_vm3, %v1114_v42, %v4747_v37  ;;  %v1150_v37 = vmul.f32 %v4084_v61, %v4534_v57  ;;  %v1153_v57 = vmul.f32 %v4088_v1, %v4611_v26 }
 0x1fc   : > { %v1138_v43 = vmul.f32 %v4044_v4, %v1123_v52  ;;  %v1139_v32 = vmul.f32 %v4058_v23, %v1119_v19  ;;  %v1198_v10 = vpop.permute.xlu1 %1197  ;;  %v1173_v26 = vsel %vm1172_vm4, %v4720_v47, %v4769_v21  ;;  %v1338_v40 = vpack.c.bf16 %v1154_v38, %v1152_v8 }
 0x1fd   : > { %1864 = vmatpush1.bf16.msra.mxu1 %v1332_v9  ;;  %v1336_v56 = vpack.c.bf16 %v1150_v37, %v1148_v11  ;;  %v1339_v7 = vpack.c.bf16 %v1155_v59, %v1153_v57  ;;  %v1189_v44 = vmul.f32 %v4091_v62, %v1173_v26  ;;  %v1341_v9 = vpack.c.bf16 %v1192_v55, %v1190_v28 }
 0x1fe   : > { %v1334_v16 = vpack.c.bf16 %v1138_v43, %v1136_v63  ;;  %v1208_v58 = vpop.permute.xlu0 %1207  ;;  %v1335_v30 = vpack.c.bf16 %v1139_v32, %v1137_v53  ;;  %v1179_v47 = vsel %vm1172_vm4, %v1169_v6, %v1161_v51  ;;  %v1193_v19 = vmul.f32 %v4091_v62, %v1175_v36 }
 0x1ff   : > { %v1340_v21 = vpack.c.bf16 %v1191_v54, %v1189_v44  ;;  %v1219_v41 = vsel %vm1213_vm5, %v1208_v58, %v4841_v3  ;;  %v1194_v53 = vmul.f32 %v4101_v12, %v1179_v47 }
 0x200   : > { %1865 = vmatprep.subr.bf16.mxu1 %v1335_v30  ;;  %v1206_v25 = vpop.permute.xlu1 %1205  ;;  %v1233_v13 = vmul.f32 %v4108_v17, %v1219_v41 }
 0x201   : > { %1866 = vmatpush1.bf16.msra.mxu1 %v1334_v16  ;;  %v1218_v34 = vsel %vm1213_vm5, %v1206_v25, %v1198_v10  ;;  %v1214_v63 = vsel %vm1213_vm5, %v1198_v10, %v1206_v25  ;;  %v1215_v10 = vsel %vm1213_vm5, %v4841_v3, %v1208_v58 }
 0x202   : > { %v1204_v46 = vpop.permute.xlu0 %1203  ;;  %1867 = vmatprep.subr.bf16.mxu1 %v1337_v2  ;;  %v1231_v43 = vmul.f32 %v4108_v17, %v1218_v34  ;;  %v1230_v37 = vmul.f32 %v4104_v15, %v1214_v63  ;;  %v1232_v48 = vmul.f32 %v4104_v15, %v1215_v10 }
 0x204   : > { %v1202_v31 = vpop.permute.xlu1 %1201  ;;  %v1345_v39 = vpack.c.bf16 %v1233_v13, %v1231_v43  ;;  %v1344_v58 = vpack.c.bf16 %v1232_v48, %v1230_v37  ;;  %v3773_v48 = vld [vmem:[%s6342_s0 + $0x1c] ss:$12 sps:$4 sm:$0xff]  }
 0x205   : > { %1868 = vmatpush1.bf16.msra.mxu1 %v1336_v56 }
 0x206   : > { %v1241_v5 = vpop.permute.xlu0 %1240  ;;  %1869 = vmatprep.subr.bf16.mxu1 %v1339_v7 }
 0x208   : > { %v1210_v42 = vpop.permute.xlu1 %1209 }
 0x209   : > { %1870 = vmatpush1.bf16.msra.mxu1 %v1338_v40  ;;  %v1216_v59 = vsel %vm1213_vm5, %v1202_v31, %v1210_v42  ;;  %v1220_v11 = vsel %vm1213_vm5, %v1210_v42, %v1202_v31 }
 0x20a   : > { %v1171_v52 = vpop.permute.xlu0 %1170  ;;  %1871 = vmatprep.subr.bf16.mxu1 %v1341_v9  ;;  %v1234_v29 = vmul.f32 %v4104_v15, %v1216_v59  ;;  %v1235_v38 = vmul.f32 %v4108_v17, %v1220_v11 }
 0x20b   : > { %v1176_v51 = vsel %vm1172_vm4, %v4806_v49, %v1171_v52  ;;  %v1180_v6 = vsel %vm1172_vm4, %v1171_v52, %v4806_v49 }
 0x20c   : > { %v1195_v32 = vmul.f32 %v4091_v62, %v1176_v51  ;;  %v1196_v16 = vmul.f32 %v4101_v12, %v1180_v6  ;;  %v1239_v30 = vpop.permute.xlu1 %1238 }
 0x20d   : > { %1872 = vmatpush1.bf16.msra.mxu1 %v1340_v21 }
 0x20e   : > { %v1342_v25 = vpack.c.bf16 %v1195_v32, %v1193_v19  ;;  %v1249_v49 = vpop.permute.xlu0 %1248  ;;  %v1343_v2 = vpack.c.bf16 %v1196_v16, %v1194_v53 }
 0x20f   : > { %v1260_v55 = vsel %vm1254_vm6, %v1249_v49, %v1241_v5  ;;  %v1256_v40 = vsel %vm1254_vm6, %v1241_v5, %v1249_v49  ;;  %v3770_v49 = vld [vmem:[%s6342_s0] ss:$12 sps:$4 sm:$0xff]  }
 0x210   : > { %v1247_v57 = vpop.permute.xlu1 %1246  ;;  %1873 = vmatprep.subr.bf16.mxu1 %v1343_v2  ;;  %v1274_v44 = vmul.f32 %v4114_v27, %v1260_v55  ;;  %v1273_v19 = vmul.f32 %v4111_v18, %v1256_v40 }
 0x211   : > { %v1259_v3 = vsel %vm1254_vm6, %v1247_v57, %v1239_v30  ;;  %1874 = vmatpush1.bf16.msra.mxu1 %v1342_v25  ;;  %v1255_v26 = vsel %vm1254_vm6, %v1239_v30, %v1247_v57 }
 0x212   : > { %v1212_v56 = vpop.permute.xlu0 %1211  ;;  %1875 = vmatprep.subr.bf16.mxu1 %v1345_v39  ;;  %v1272_v8 = vmul.f32 %v4114_v27, %v1259_v3 }
 0x213   : > { %v1217_v31 = vsel %vm1213_vm5, %v1204_v46, %v1212_v56  ;;  %v1221_v7 = vsel %vm1213_vm5, %v1212_v56, %v1204_v46  ;;  %v1271_v46 = vmul.f32 %v4111_v18, %v1255_v26 }
 0x214   : > { %v1236_v28 = vmul.f32 %v4104_v15, %v1217_v31  ;;  %v1237_v54 = vmul.f32 %v4108_v17, %v1221_v7  ;;  %v1243_v36 = vpop.permute.xlu1 %1242  ;;  %v1349_v21 = vpack.c.bf16 %v1274_v44, %v1272_v8  ;;  %v3775_v8 = vld [vmem:[%s6342_s0 + $0x18] ss:$12 sps:$4 sm:$0xff]  }
 0x215   : > { %1876 = vmatpush1.bf16.msra.mxu1 %v1344_v58  ;;  %v1348_v63 = vpack.c.bf16 %v1273_v19, %v1271_v46  ;;  %v3776_v19 = vld [vmem:[%s6342_s0 + $0x8] ss:$12 sps:$4 sm:$0xff]  }
 0x216   : > { %v1346_v42 = vpack.c.bf16 %v1236_v28, %v1234_v29  ;;  %v1245_v9 = vpop.permute.xlu0 %1244  ;;  %v1347_v47 = vpack.c.bf16 %v1237_v54, %v1235_v38 }
 0x218   : > { %v1251_v34 = vpop.permute.xlu1 %1250  ;;  %1877 = vmatprep.subr.bf16.mxu1 %v1347_v47 }
 0x219   : > { %v1257_v52 = vsel %vm1254_vm6, %v1243_v36, %v1251_v34  ;;  %v1261_v41 = vsel %vm1254_vm6, %v1251_v34, %v1243_v36  ;;  %1878 = vmatpush1.bf16.msra.mxu1 %v1346_v42 }
 0x21a   : > { %v1253_v5 = vpop.permute.xlu0 %1252  ;;  %1879 = vmatprep.subr.bf16.mxu1 %v1349_v21  ;;  %v1275_v53 = vmul.f32 %v4111_v18, %v1257_v52  ;;  %v1276_v43 = vmul.f32 %v4114_v27, %v1261_v41  ;;  %v3777_v52 = vld [vmem:[%s6342_s0 + $0x20] ss:$12 sps:$4 sm:$0xff]  }
 0x21b   : > { %v1258_v51 = vsel %vm1254_vm6, %v1245_v9, %v1253_v5  ;;  %v1262_v6 = vsel %vm1254_vm6, %v1253_v5, %v1245_v9 }
 0x21c   : > { %v1277_v32 = vmul.f32 %v4111_v18, %v1258_v51  ;;  %v1278_v16 = vmul.f32 %v4114_v27, %v1262_v6  ;;  %v1280_v30 = vpop.permute.xlu1 %1279 }
 0x21d   : > { %1880 = vmatpush1.bf16.msra.mxu1 %v1348_v63 }
 0x21e   : > { %v1350_v10 = vpack.c.bf16 %v1277_v32, %v1275_v53  ;;  %v1282_v13 = vpop.permute.xlu0 %1281  ;;  %v1351_v37 = vpack.c.bf16 %v1278_v16, %v1276_v43 }
 0x220   : > { %v1288_v25 = vpop.permute.xlu1 %1287  ;;  %1881 = vmatprep.subr.bf16.mxu1 %v1351_v37 }
 0x221   : > { %v1296_v2 = vsel %vm1295_vm7, %v1280_v30, %v1288_v25  ;;  %v1300_v59 = vsel %vm1295_vm7, %v1288_v25, %v1280_v30  ;;  %1882 = vmatpush1.bf16.msra.mxu1 %v1350_v10 }
 0x222   : > { %v1290_v11 = vpop.permute.xlu0 %1289  ;;  %v1312_v3 = vmul.f32 %v3986_v24, %v1296_v2  ;;  %v1313_v58 = vmul.f32 %v3976_v20, %v1300_v59 }
 0x223   : > { %v1297_v57 = vsel %vm1295_vm7, %v1282_v13, %v1290_v11  ;;  %v1301_v39 = vsel %vm1295_vm7, %v1290_v11, %v1282_v13 }
 0x224   : > { %v1314_v29 = vmul.f32 %v3986_v24, %v1297_v57  ;;  %v1315_v56 = vmul.f32 %v3976_v20, %v1301_v39  ;;  %v1284_v38 = vpop.permute.xlu1 %1283  ;;  %1884 = vmatmul.mubr.bf16.vlgmr.msra.gmra.mrb[0].mxu1 %v3770_v49 }
 0x225   : > { %1893 = vmatprep.mubr.bf16.mxu1 %v3773_v48 }
 0x226   : > { %v1352_v55 = vpack.c.bf16 %v1314_v29, %v1312_v3  ;;  %v1286_v31 = vpop.permute.xlu0 %1285  ;;  %v1353_v7 = vpack.c.bf16 %v1315_v56, %v1313_v58 }
 0x228   : > { %v1292_v26 = vpop.permute.xlu1 %1291  ;;  %1904 = vmatprep.subr.bf16.mxu1 %v1353_v7  ;;  %v3780_v7 = vld [vmem:[%s6256_s8 + $0x4] ss:$12 sps:$4 sm:$0xff]  }
 0x229   : > { %v1298_v28 = vsel %vm1295_vm7, %v1284_v38, %v1292_v26  ;;  %v1302_v54 = vsel %vm1295_vm7, %v1292_v26, %v1284_v38  ;;  %1905 = vmatpush1.bf16.msra.mxu1 %v1352_v55  ;;  %2397 = vmatprep.mubr.bf16.mxu0 %v3780_v7 }
 0x22a   : > { %v1294_v36 = vpop.permute.xlu0 %1293  ;;  %v1316_v42 = vmul.f32 %v3986_v24, %v1298_v28  ;;  %v1317_v9 = vmul.f32 %v3976_v20, %v1302_v54 }
 0x22b   : > { %v1299_v40 = vsel %vm1295_vm7, %v1286_v31, %v1294_v36  ;;  %v1303_v44 = vsel %vm1295_vm7, %v1294_v36, %v1286_v31 }
 0x22c   : > { %v1318_v47 = vmul.f32 %v3986_v24, %v1299_v40  ;;  %v1319_v46 = vmul.f32 %v3976_v20, %v1303_v44  ;;  %1894 = vmatmul.mubr.bf16.gmra.mrb[4].mxu1 %v3775_v8  ;;  %v2305_v44 = vld [vmem:[%s6257_s9] sm:$0xff] }
 0x22d   : > { %1936 = vmatprep.mubr.bf16.mxu1 %v6339_v22 }
 0x22e   : > { %v1354_v34 = vpack.c.bf16 %v1318_v47, %v1316_v42  ;;  %v1355_v21 = vpack.c.bf16 %v1319_v46, %v1317_v9  ;;  %v2306_v9 = vld [vmem:[%s6257_s9 + $0x8] sm:$0xff]  ;;  %v2307_v46 = vld [vmem:[%s6257_s9 + $0x10] sm:$0xff] }
 0x230   : > { %1906 = vmatprep.subr.bf16.mxu1 %v1355_v21  ;;  %v2308_v21 = vld [vmem:[%s6257_s9 + $0x18] sm:$0xff] }
 0x231   : > { %1907 = vmatpush1.bf16.msra.mxu1 %v1354_v34 }
 0x234   : > { %3493 = vmatmul.mubr.msk.bf16.vlgmr.msra.gmra.mrb[0].mxu1 %vm1702_vm8, %v3776_v19 }
 0x235   : > { %1946 = vmatprep.mubr.bf16.mxu1 %v6339_v22 }
 0x239   : > { %v1964_v41 = vpop.permute.xlu1 %1963 }
 0x23b   : > { %v1969_v6 = vpop.permute.xlu0 %1968 }
 0x23c   : > { %3494 = vmatmul.mubr.msk.bf16.gmra.mrb[4].mxu1 %vm1702_vm8, %v3777_v52 }
 0x23d   : > { %3161 = vmatprep.mubr.bf16.mxu1 %v6339_v22  ;;  %v1974_v11 = vpop.permute.xlu1 %1973 }
 0x23f   : > { %v1979_v39 = vpop.permute.xlu0 %1978 }
 0x307   : > { %v1938_v5 = vpop.f32.mrb[0].mxu1 }
 0x308   : > { %v1981_v63 = vadd.f32 %v1964_v41, %v1938_v5  ;;  %v1940_v51 = vpop.f32.mrb[1].mxu1 }
 0x309   : > { %v1942_v53 = vpop.f32.mrb[2].mxu1  ;;  %v1982_v49 = vadd.f32 %v1964_v41, %v1940_v51 }
 0x30a   : > { %v5005_v43 = vmax.f32 %v1981_v63, 0.0  ;;  %v1983_v32 = vadd.f32 %v1969_v6, %v1942_v53  ;;  %v1944_v16 = vpop.f32.mrb[3].mxu1 }
 0x30b   : > { %v1984_v2 = vadd.f32 %v1969_v6, %v1944_v16  ;;  %v5027_v59 = vmax.f32 %v1982_v49, 0.0 }
 0x30c   : > { %v5007_v30 = vmax.f32 %v1983_v32, 0.0  ;;  %1997 = vrot.lane.b32.xlu1 %v5005_v43, %s6345_s2 }
 0x30d   : > { %v5031_v48 = vmax.f32 %v1984_v2, 0.0 }
 0x30e   : > { %1999 = vrot.lane.b32.xlu0 %v5007_v30, %s6345_s2 }
 0x30f   : > { %v1948_v10 = vpop.f32.mrb[4].mxu1 }
 0x310   : > { %2029 = vrot.lane.b32.xlu1 %v5005_v43, %s6346_s6  ;;  %v1950_v13 = vpop.f32.mrb[5].mxu1  ;;  %v1985_v57 = vadd.f32 %v1974_v11, %v1948_v10 }
 0x311   : > { %v1952_v37 = vpop.f32.mrb[6].mxu1  ;;  %v1986_v56 = vadd.f32 %v1974_v11, %v1950_v13 }
 0x312   : > { %2031 = vrot.lane.b32.xlu0 %v5007_v30, %s6346_s6  ;;  %v1954_v25 = vpop.f32.mrb[7].mxu1  ;;  %v1987_v3 = vadd.f32 %v1979_v39, %v1952_v37  ;;  %v5047_v58 = vmax.f32 %v1985_v57, 0.0 }
 0x313   : > { %v1988_v38 = vadd.f32 %v1979_v39, %v1954_v25  ;;  %v5067_v55 = vmax.f32 %v1986_v56, 0.0 }
 0x314   : > { %2061 = vrot.lane.b32.xlu1 %v5005_v43, %s6347_s1  ;;  %v5051_v29 = vmax.f32 %v1987_v3, 0.0 }
 0x315   : > { %v5071_v31 = vmax.f32 %v1988_v38, 0.0 }
 0x316   : > { %2063 = vrot.lane.b32.xlu0 %v5007_v30, %s6347_s1 }
 0x318   : > { %2093 = vrot.lane.b32.xlu1 %v5005_v43, %s6348_s27 }
 0x31a   : > { %2095 = vrot.lane.b32.xlu0 %v5007_v30, %s6348_s27 }
 0x31c   : > { %2133 = vrot.lane.b32.xlu1 %v5005_v43, %s6349_s29 }
 0x31e   : > { %2135 = vrot.lane.b32.xlu0 %v5007_v30, %s6349_s29 }
 0x320   : > { %2005 = vrot.lane.b32.xlu1 %v5027_v59, %s6345_s2 }
 0x322   : > { %2007 = vrot.lane.b32.xlu0 %v5031_v48, %s6345_s2 }
 0x324   : > { %2037 = vrot.lane.b32.xlu1 %v5027_v59, %s6346_s6 }
 0x326   : > { %2039 = vrot.lane.b32.xlu0 %v5031_v48, %s6346_s6 }
 0x328   : > { %2069 = vrot.lane.b32.xlu1 %v5027_v59, %s6347_s1 }
 0x32a   : > { %2071 = vrot.lane.b32.xlu0 %v5031_v48, %s6347_s1 }
 0x32c   : > { %2101 = vrot.lane.b32.xlu1 %v5027_v59, %s6348_s27 }
 0x32e   : > { %2103 = vrot.lane.b32.xlu0 %v5031_v48, %s6348_s27 }
 0x330   : > { %2001 = vrot.lane.b32.xlu1 %v5047_v58, %s6345_s2 }
 0x332   : > { %2003 = vrot.lane.b32.xlu0 %v5051_v29, %s6345_s2 }
 0x334   : > { %2033 = vrot.lane.b32.xlu1 %v5047_v58, %s6346_s6 }
 0x336   : > { %2035 = vrot.lane.b32.xlu0 %v5051_v29, %s6346_s6 }
 0x338   : > { %2065 = vrot.lane.b32.xlu1 %v5047_v58, %s6347_s1 }
 0x33a   : > { %2067 = vrot.lane.b32.xlu0 %v5051_v29, %s6347_s1 }
 0x33c   : > { %2097 = vrot.lane.b32.xlu1 %v5047_v58, %s6348_s27 }
 0x33e   : > { %2099 = vrot.lane.b32.xlu0 %v5051_v29, %s6348_s27 }
 0x340   : > { %2009 = vrot.lane.b32.xlu1 %v5067_v55, %s6345_s2 }
 0x342   : > { %2011 = vrot.lane.b32.xlu0 %v5071_v31, %s6345_s2 }
 0x344   : > { %2141 = vrot.lane.b32.xlu1 %v5027_v59, %s6349_s29 }
 0x346   : > { %2143 = vrot.lane.b32.xlu0 %v5031_v48, %s6349_s29 }
 0x348   : > { %2041 = vrot.lane.b32.xlu1 %v5067_v55, %s6346_s6 }
 0x34a   : > { %2043 = vrot.lane.b32.xlu0 %v5071_v31, %s6346_s6 }
 0x34c   : > { %2073 = vrot.lane.b32.xlu1 %v5067_v55, %s6347_s1 }
 0x34e   : > { %2139 = vrot.lane.b32.xlu0 %v5051_v29, %s6349_s29 }
 0x350   : > { %2105 = vrot.lane.b32.xlu1 %v5067_v55, %s6348_s27 }
 0x352   : > { %2075 = vrot.lane.b32.xlu0 %v5071_v31, %s6347_s1 }
 0x354   : > { %2137 = vrot.lane.b32.xlu1 %v5047_v58, %s6349_s29 }
 0x356   : > { %2167 = vrot.lane.b32.xlu0 %v5007_v30, %s6340_s26 }
 0x358   : > { %2145 = vrot.lane.b32.xlu1 %v5067_v55, %s6349_s29 }
 0x35a   : > { %2107 = vrot.lane.b32.xlu0 %v5071_v31, %s6348_s27 }
 0x35c   : > { %2165 = vrot.lane.b32.xlu1 %v5005_v43, %s6340_s26 }
 0x35e   : > { %2175 = vrot.lane.b32.xlu0 %v5031_v48, %s6340_s26 }
 0x360   : > { %2173 = vrot.lane.b32.xlu1 %v5027_v59, %s6340_s26 }
 0x362   : > { %2171 = vrot.lane.b32.xlu0 %v5051_v29, %s6340_s26 }
 0x364   : > { %2169 = vrot.lane.b32.xlu1 %v5047_v58, %s6340_s26 }
 0x366   : > { %2199 = vrot.lane.b32.xlu0 %v5007_v30, %s6341_s24 }
 0x368   : > { %2177 = vrot.lane.b32.xlu1 %v5067_v55, %s6340_s26 }
 0x36a   : > { %2147 = vrot.lane.b32.xlu0 %v5071_v31, %s6349_s29 }
 0x36c   : > { %2197 = vrot.lane.b32.xlu1 %v5005_v43, %s6341_s24 }
 0x36e   : > { %2207 = vrot.lane.b32.xlu0 %v5031_v48, %s6341_s24 }
 0x370   : > { %2205 = vrot.lane.b32.xlu1 %v5027_v59, %s6341_s24 }
 0x372   : > { %2179 = vrot.lane.b32.xlu0 %v5071_v31, %s6340_s26 }
 0x374   : > { %2201 = vrot.lane.b32.xlu1 %v5047_v58, %s6341_s24 }
 0x376   : > { %2203 = vrot.lane.b32.xlu0 %v5051_v29, %s6341_s24 }
 0x378   : > { %2209 = vrot.lane.b32.xlu1 %v5067_v55, %s6341_s24 }
 0x37a   : > { %2211 = vrot.lane.b32.xlu0 %v5071_v31, %s6341_s24 }
 0x37c   : > { %2229 = vrot.lane.b32.xlu1 %v5005_v43, %s6343_s5 }
 0x37e   : > { %v1998_v26 = vpop.permute.xlu1 %1997  ;;  %2231 = vrot.lane.b32.xlu0 %v5007_v30, %s6343_s5 }
 0x380   : > { %v2000_v8 = vpop.permute.xlu0 %1999  ;;  %2237 = vrot.lane.b32.xlu1 %v5027_v59, %s6343_s5 }
 0x382   : > { %v5142_v28 = vpop.permute.xlu1 %2029  ;;  %2239 = vrot.lane.b32.xlu0 %v5031_v48, %s6343_s5 }
 0x384   : > { %v2032_v54 = vpop.permute.xlu0 %2031  ;;  %2233 = vrot.lane.b32.xlu1 %v5047_v58, %s6343_s5 }
 0x386   : > { %v5148_v36 = vpop.permute.xlu1 %2061  ;;  %2235 = vrot.lane.b32.xlu0 %v5051_v29, %s6343_s5 }
 0x388   : > { %v5152_v40 = vpop.permute.xlu0 %2063  ;;  %2241 = vrot.lane.b32.xlu1 %v5067_v55, %s6343_s5 }
 0x38a   : > { %v5159_v42 = vpop.permute.xlu1 %2093  ;;  %2243 = vrot.lane.b32.xlu0 %v5071_v31, %s6343_s5 }
 0x38c   : > { %v5166_v47 = vpop.permute.xlu0 %2095  ;;  %2311 = vperm.xlu1 %3625, %v2305_v44  }
 0x38e   : > { %v5171_v34 = vpop.permute.xlu1 %2133  ;;  %2316 = vperm.xlu0 %3619, %v2306_v9  }
 0x390   : > { %v5176_v19 = vpop.permute.xlu0 %2135  ;;  %2321 = vperm.xlu1 %3625, %v2307_v46  }
 0x392   : > { %v2006_v52 = vpop.permute.xlu1 %2005  ;;  %2326 = vperm.xlu0 %3619, %v2308_v21  }
 0x393   : > { %v2013_v41 = vsel %vm992_vm0, %v1998_v26, %v2006_v52  ;;  %v2017_v5 = vsel %vm992_vm0, %v2006_v52, %v1998_v26 }
 0x394   : > { %v2008_v63 = vpop.permute.xlu0 %2007  ;;  %v2021_v53 = vmul.f32 %v2017_v5, %v4276_v0  ;;  %v2022_v32 = vmul.f32 %v2013_v41, %v4280_v33 }
 0x395   : > { %v2014_v51 = vsel %vm992_vm0, %v2000_v8, %v2008_v63  ;;  %v2018_v6 = vsel %vm992_vm0, %v2008_v63, %v2000_v8 }
 0x396   : > { %v2023_v16 = vmul.f32 %v2018_v6, %v4276_v0  ;;  %v2024_v10 = vmul.f32 %v2014_v51, %v4280_v33  ;;  %v2038_v13 = vpop.permute.xlu1 %2037 }
 0x397   : > { %v2045_v5 = vsel %vm1033_vm1, %v5142_v28, %v2038_v13 }
 0x398   : > { %v2261_v37 = vpack.c.bf16 %v2023_v16, %v2021_v53  ;;  %v2040_v25 = vpop.permute.xlu0 %2039  ;;  %v2262_v49 = vpack.c.bf16 %v2024_v10, %v2022_v32 }
 0x399   : > { %v2046_v46 = vsel %vm1033_vm1, %v2032_v54, %v2040_v25  ;;  %v2050_v51 = vsel %vm1033_vm1, %v2040_v25, %v2032_v54  ;;  %v2049_v54 = vsel %vm1033_vm1, %v2038_v13, %v5142_v28  ;;  %v2054_v25 = vmul.f32 %v2045_v5, %v4288_v45 }
 0x39a   : > { %v2070_v2 = vpop.permute.xlu1 %2069  ;;  %2365 = vmatprep.subr.bf16.mxu0 %v2262_v49  ;;  %v2056_v6 = vmul.f32 %v2046_v46, %v4288_v45  ;;  %v2055_v46 = vmul.f32 %v2050_v51, %v4284_v14 }
 0x39b   : > { %2366 = vmatpush1.bf16.msra.mxu0 %v2261_v37  ;;  %v2077_v51 = vsel %vm1074_vm2, %v5148_v36, %v2070_v2 }
 0x39c   : > { %v2072_v11 = vpop.permute.xlu0 %2071 }
 0x39e   : > { %v5190_v57 = vpop.permute.xlu1 %2101 }
 0x3a0   : > { %v5192_v39 = vpop.permute.xlu0 %2103 }
 0x3a2   : > { %v2002_v3 = vpop.permute.xlu1 %2001 }
 0x3a4   : > { %v2004_v56 = vpop.permute.xlu0 %2003 }
 0x3a6   : > { %v2034_v38 = vpop.permute.xlu1 %2033 }
 0x3a8   : > { %v2036_v7 = vpop.permute.xlu0 %2035 }
 0x3aa   : > { %v2066_v26 = vpop.permute.xlu1 %2065 }
 0x3ac   : > { %v5194_v8 = vpop.permute.xlu0 %2067 }
 0x3ae   : > { %v5196_v44 = vpop.permute.xlu1 %2097 }
 0x3b0   : > { %v5198_v9 = vpop.permute.xlu0 %2099 }
 0x3b2   : > { %v2010_v21 = vpop.permute.xlu1 %2009 }
 0x3b3   : > { %v2015_v52 = vsel %vm992_vm0, %v2002_v3, %v2010_v21  ;;  %v2019_v41 = vsel %vm992_vm0, %v2010_v21, %v2002_v3 }
 0x3b4   : > { %v2012_v63 = vpop.permute.xlu0 %2011  ;;  %v2025_v16 = vmul.f32 %v2019_v41, %v4276_v0  ;;  %v2026_v10 = vmul.f32 %v2015_v52, %v4280_v33  ;;  %v2053_v52 = vmul.f32 %v2049_v54, %v4284_v14 }
 0x3b5   : > { %v2016_v53 = vsel %vm992_vm0, %v2004_v56, %v2012_v63  ;;  %v2020_v32 = vsel %vm992_vm0, %v2012_v63, %v2004_v56  ;;  %v2078_v63 = vsel %vm1074_vm2, %v5152_v40, %v2072_v11 }
 0x3b6   : > { %v2027_v37 = vmul.f32 %v2020_v32, %v4276_v0  ;;  %v2028_v49 = vmul.f32 %v2016_v53, %v4280_v33  ;;  %v5220_v3 = vpop.permute.xlu1 %2141  ;;  %v2266_v32 = vpack.c.bf16 %v2056_v6, %v2054_v25  ;;  %v2265_v5 = vpack.c.bf16 %v2055_v46, %v2053_v52 }
 0x3b7   : > { %v2088_v6 = vmul.f32 %v2078_v63, %v4349_v50 }
 0x3b8   : > { %v2263_v21 = vpack.c.bf16 %v2027_v37, %v2025_v16  ;;  %v5227_v56 = vpop.permute.xlu0 %2143  ;;  %v2264_v41 = vpack.c.bf16 %v2028_v49, %v2026_v10  ;;  %v2082_v10 = vsel %vm1074_vm2, %v2072_v11, %v5152_v40  ;;  %v2081_v40 = vsel %vm1074_vm2, %v2070_v2, %v5148_v36 }
 0x3b9   : > { %v2086_v11 = vmul.f32 %v2077_v51, %v4349_v50  ;;  %v2109_v51 = vsel %vm1115_vm3, %v5159_v42, %v5190_v57 }
 0x3ba   : > { %v2042_v53 = vpop.permute.xlu1 %2041  ;;  %2367 = vmatprep.subr.bf16.mxu0 %v2264_v41  ;;  %v2087_v41 = vmul.f32 %v2082_v10, %v4037_v60  ;;  %v2114_v10 = vsel %vm1115_vm3, %v5192_v39, %v5166_v47 }
 0x3bb   : > { %v2047_v28 = vsel %vm1033_vm1, %v2034_v38, %v2042_v53  ;;  %v2051_v13 = vsel %vm1033_vm1, %v2042_v53, %v2034_v38  ;;  %2368 = vmatpush1.bf16.msra.mxu0 %v2263_v21  ;;  %v2085_v53 = vmul.f32 %v2081_v40, %v4037_v60 }
 0x3bc   : > { %2369 = vmatprep.subr.bf16.mxu0 %v2266_v32  ;;  %v2044_v16 = vpop.permute.xlu0 %2043  ;;  %v2057_v49 = vmul.f32 %v2051_v13, %v4284_v14  ;;  %v2058_v54 = vmul.f32 %v2047_v28, %v4288_v45  ;;  %v2110_v32 = vsel %vm1115_vm3, %v5166_v47, %v5192_v39  ;;  %v2270_v13 = vpack.c.bf16 %v2088_v6, %v2086_v11 }
 0x3bd   : > { %v2048_v37 = vsel %vm1033_vm1, %v2036_v7, %v2044_v16  ;;  %v2052_v38 = vsel %vm1033_vm1, %v2044_v16, %v2036_v7  ;;  %v2120_v6 = vmul.f32 %v2110_v32, %v4058_v23  ;;  %v2113_v47 = vsel %vm1115_vm3, %v5190_v57, %v5159_v42 }
 0x3be   : > { %v2059_v25 = vmul.f32 %v2052_v38, %v4284_v14  ;;  %v2060_v46 = vmul.f32 %v2048_v37, %v4288_v45  ;;  %v2074_v21 = vpop.permute.xlu1 %2073  ;;  %v2118_v39 = vmul.f32 %v2109_v51, %v4058_v23  ;;  %v2119_v11 = vmul.f32 %v2114_v10, %v4044_v4 }
 0x3bf   : > { %2370 = vmatpush1.bf16.msra.mxu0 %v2265_v5  ;;  %v2079_v36 = vsel %vm1074_vm2, %v2066_v26, %v2074_v21  ;;  %v2083_v2 = vsel %vm1074_vm2, %v2074_v21, %v2066_v26  ;;  %v2269_v5 = vpack.c.bf16 %v2087_v41, %v2085_v53 }
 0x3c0   : > { %v2267_v52 = vpack.c.bf16 %v2059_v25, %v2057_v49  ;;  %v5257_v7 = vpop.permute.xlu0 %2139  ;;  %v2268_v63 = vpack.c.bf16 %v2060_v46, %v2058_v54  ;;  %v2089_v38 = vmul.f32 %v2083_v2, %v4037_v60  ;;  %v2090_v49 = vmul.f32 %v2079_v36, %v4349_v50 }
 0x3c1   : > { %v2128_v2 = vmul.f32 %v5031_v48, %v4088_v1 }
 0x3c2   : > { %v2106_v28 = vpop.permute.xlu1 %2105  ;;  %2371 = vmatprep.subr.bf16.mxu0 %v2268_v63  ;;  %v2117_v63 = vmul.f32 %v2113_v47, %v4044_v4  ;;  %v2153_v47 = vsel %vm1172_vm4, %v5220_v3, %v5171_v34 }
 0x3c3   : > { %2372 = vmatpush1.bf16.msra.mxu0 %v2267_v52  ;;  %v2274_v52 = vpack.c.bf16 %v2120_v6, %v2118_v39  ;;  %v2111_v53 = vsel %vm1115_vm3, %v5196_v44, %v2106_v28  ;;  %v2115_v42 = vsel %vm1115_vm3, %v2106_v28, %v5196_v44 }
 0x3c4   : > { %2373 = vmatprep.subr.bf16.mxu0 %v2270_v13  ;;  %v2076_v16 = vpop.permute.xlu0 %2075  ;;  %v2273_v32 = vpack.c.bf16 %v2119_v11, %v2117_v63  ;;  %v2122_v51 = vmul.f32 %v2111_v53, %v4058_v23  ;;  %v2158_v63 = vmul.f32 %v2153_v47, %v4101_v12 }
 0x3c5   : > { %v2080_v26 = vsel %vm1074_vm2, %v5194_v8, %v2076_v16  ;;  %v2084_v37 = vsel %vm1074_vm2, %v2076_v16, %v5194_v8 }
 0x3c6   : > { %v2091_v54 = vmul.f32 %v2084_v37, %v4037_v60  ;;  %v2092_v25 = vmul.f32 %v2080_v26, %v4349_v50  ;;  %v2138_v46 = vpop.permute.xlu1 %2137  ;;  %v2126_v37 = vmul.f32 %v5027_v59, %v4088_v1 }
 0x3c7   : > { %2374 = vmatpush1.bf16.msra.mxu0 %v2269_v5  ;;  %v2121_v5 = vmul.f32 %v2115_v42, %v4044_v4 }
 0x3c8   : > { %v2271_v21 = vpack.c.bf16 %v2091_v54, %v2089_v38  ;;  %v5292_v40 = vpop.permute.xlu0 %2167  ;;  %v2272_v8 = vpack.c.bf16 %v2092_v25, %v2090_v49  ;;  %v2278_v38 = vpack.c.bf16 %v2128_v2, %v2126_v37  ;;  %v2132_v49 = vmul.f32 %v5071_v31, %v4088_v1 }
 0x3c9   : > { %v2154_v54 = vsel %vm1172_vm4, %v5227_v56, %v5176_v19  ;;  %v2125_v25 = vmul.f32 %v5005_v43, %v4084_v61  ;;  %v2150_v31 = vsel %vm1172_vm4, %v5176_v19, %v5227_v56 }
 0x3ca   : > { %v2146_v41 = vpop.permute.xlu1 %2145  ;;  %2375 = vmatprep.subr.bf16.mxu0 %v2272_v8  ;;  %v2160_v43 = vmul.f32 %v2154_v54, %v4101_v12  ;;  %v2159_v19 = vmul.f32 %v2150_v31, %v4091_v62 }
 0x3cb   : > { %2376 = vmatpush1.bf16.msra.mxu0 %v2271_v21  ;;  %v2131_v21 = vmul.f32 %v5051_v29, %v4084_v61  ;;  %v2151_v29 = vsel %vm1172_vm4, %v2138_v46, %v2146_v41 }
 0x3cc   : > { %2377 = vmatprep.subr.bf16.mxu0 %v2274_v52  ;;  %v2108_v57 = vpop.permute.xlu0 %2107  ;;  %v2129_v52 = vmul.f32 %v5047_v58, %v4084_v61 }
 0x3cd   : > { %v2112_v13 = vsel %vm1115_vm3, %v5198_v9, %v2108_v57  ;;  %v2116_v36 = vsel %vm1115_vm3, %v2108_v57, %v5198_v9  ;;  %v2127_v9 = vmul.f32 %v5007_v30, %v4084_v61  ;;  %v2130_v30 = vmul.f32 %v5067_v55, %v4088_v1 }
 0x3ce   : > { %v2123_v44 = vmul.f32 %v2116_v36, %v4044_v4  ;;  %v2124_v28 = vmul.f32 %v2112_v13, %v4058_v23  ;;  %v2166_v16 = vpop.permute.xlu1 %2165  ;;  %v2149_v55 = vsel %vm1172_vm4, %v5171_v34, %v5220_v3  ;;  %v2279_v53 = vpack.c.bf16 %v2131_v21, %v2129_v52 }
 0x3cf   : > { %2378 = vmatpush1.bf16.msra.mxu0 %v2273_v32  ;;  %v2277_v39 = vpack.c.bf16 %v2127_v9, %v2125_v25  ;;  %v2280_v11 = vpack.c.bf16 %v2132_v49, %v2130_v30  ;;  %v2157_v42 = vmul.f32 %v2149_v55, %v4091_v62  ;;  %v2282_v32 = vpack.c.bf16 %v2160_v43, %v2158_v63 }
 0x3d0   : > { %v2275_v10 = vpack.c.bf16 %v2123_v44, %v2121_v5  ;;  %v2176_v6 = vpop.permute.xlu0 %2175  ;;  %v2276_v26 = vpack.c.bf16 %v2124_v28, %v2122_v51  ;;  %v2155_v34 = vsel %vm1172_vm4, %v2146_v41, %v2138_v46  ;;  %v2161_v13 = vmul.f32 %v2151_v29, %v4091_v62 }
 0x3d1   : > { %v2281_v3 = vpack.c.bf16 %v2159_v19, %v2157_v42  ;;  %v2186_v2 = vsel %vm1213_vm5, %v2176_v6, %v5292_v40  ;;  %v2162_v51 = vmul.f32 %v2155_v34, %v4101_v12 }
 0x3d2   : > { %v2174_v48 = vpop.permute.xlu1 %2173  ;;  %2379 = vmatprep.subr.bf16.mxu0 %v2276_v26  ;;  %v2192_v37 = vmul.f32 %v2186_v2, %v4108_v17 }
 0x3d3   : > { %2380 = vmatpush1.bf16.msra.mxu0 %v2275_v10  ;;  %v2185_v58 = vsel %vm1213_vm5, %v2174_v48, %v2166_v16  ;;  %v2181_v5 = vsel %vm1213_vm5, %v2166_v16, %v2174_v48  ;;  %v2182_v16 = vsel %vm1213_vm5, %v5292_v40, %v2176_v6 }
 0x3d4   : > { %2381 = vmatprep.subr.bf16.mxu0 %v2278_v38  ;;  %v2172_v59 = vpop.permute.xlu0 %2171  ;;  %v2190_v44 = vmul.f32 %v2185_v58, %v4108_v17  ;;  %v2189_v9 = vmul.f32 %v2181_v5, %v4104_v15  ;;  %v2191_v54 = vmul.f32 %v2182_v16, %v4104_v15 }
 0x3d6   : > { %v2170_v8 = vpop.permute.xlu1 %2169  ;;  %v2286_v47 = vpack.c.bf16 %v2192_v37, %v2190_v44  ;;  %v2285_v6 = vpack.c.bf16 %v2191_v54, %v2189_v9  ;;  %v3781_v54 = vld [vmem:[%s6256_s8 + $0x1c] ss:$12 sps:$4 sm:$0xff]  }
 0x3d7   : > { %2382 = vmatpush1.bf16.msra.mxu0 %v2277_v39 }
 0x3d8   : > { %v2200_v56 = vpop.permute.xlu0 %2199  ;;  %2383 = vmatprep.subr.bf16.mxu0 %v2280_v11 }
 0x3da   : > { %v2178_v57 = vpop.permute.xlu1 %2177 }
 0x3db   : > { %2384 = vmatpush1.bf16.msra.mxu0 %v2279_v53  ;;  %v2183_v49 = vsel %vm1213_vm5, %v2170_v8, %v2178_v57  ;;  %v2187_v25 = vsel %vm1213_vm5, %v2178_v57, %v2170_v8 }
 0x3dc   : > { %v2148_v36 = vpop.permute.xlu0 %2147  ;;  %2385 = vmatprep.subr.bf16.mxu0 %v2282_v32  ;;  %v2193_v31 = vmul.f32 %v2183_v49, %v4104_v15  ;;  %v2194_v21 = vmul.f32 %v2187_v25, %v4108_v17 }
 0x3dd   : > { %v2152_v46 = vsel %vm1172_vm4, %v5257_v7, %v2148_v36  ;;  %v2156_v41 = vsel %vm1172_vm4, %v2148_v36, %v5257_v7 }
 0x3de   : > { %v2163_v28 = vmul.f32 %v2152_v46, %v4091_v62  ;;  %v2164_v10 = vmul.f32 %v2156_v41, %v4101_v12  ;;  %v2198_v26 = vpop.permute.xlu1 %2197 }
 0x3df   : > { %2386 = vmatpush1.bf16.msra.mxu0 %v2281_v3 }
 0x3e0   : > { %v2283_v48 = vpack.c.bf16 %v2163_v28, %v2161_v13  ;;  %v2208_v7 = vpop.permute.xlu0 %2207  ;;  %v2284_v38 = vpack.c.bf16 %v2164_v10, %v2162_v51 }
 0x3e1   : > { %v2218_v43 = vsel %vm1254_vm6, %v2208_v7, %v2200_v56  ;;  %v2214_v53 = vsel %vm1254_vm6, %v2200_v56, %v2208_v7  ;;  %v3778_v7 = vld [vmem:[%s6256_s8] ss:$12 sps:$4 sm:$0xff]  }
 0x3e2   : > { %v2206_v30 = vpop.permute.xlu1 %2205  ;;  %2387 = vmatprep.subr.bf16.mxu0 %v2284_v38  ;;  %v2224_v42 = vmul.f32 %v2218_v43, %v4114_v27  ;;  %v2223_v13 = vmul.f32 %v2214_v53, %v4111_v18 }
 0x3e3   : > { %v2217_v40 = vsel %vm1254_vm6, %v2206_v30, %v2198_v26  ;;  %2388 = vmatpush1.bf16.msra.mxu0 %v2283_v48  ;;  %v2213_v55 = vsel %vm1254_vm6, %v2198_v26, %v2206_v30 }
 0x3e4   : > { %v2180_v39 = vpop.permute.xlu0 %2179  ;;  %2389 = vmatprep.subr.bf16.mxu0 %v2286_v47  ;;  %v2222_v52 = vmul.f32 %v2217_v40, %v4114_v27 }
 0x3e5   : > { %v2184_v8 = vsel %vm1213_vm5, %v2172_v59, %v2180_v39  ;;  %v2188_v11 = vsel %vm1213_vm5, %v2180_v39, %v2172_v59  ;;  %v2221_v59 = vmul.f32 %v2213_v55, %v4111_v18 }
 0x3e6   : > { %v2195_v63 = vmul.f32 %v2184_v8, %v4104_v15  ;;  %v2196_v19 = vmul.f32 %v2188_v11, %v4108_v17  ;;  %v2202_v29 = vpop.permute.xlu1 %2201  ;;  %v2290_v3 = vpack.c.bf16 %v2224_v42, %v2222_v52  ;;  %v3783_v52 = vld [vmem:[%s6256_s8 + $0x18] ss:$12 sps:$4 sm:$0xff]  }
 0x3e7   : > { %2390 = vmatpush1.bf16.msra.mxu0 %v2285_v6  ;;  %v2289_v5 = vpack.c.bf16 %v2223_v13, %v2221_v59  ;;  %v3784_v13 = vld [vmem:[%s6256_s8 + $0x8] ss:$12 sps:$4 sm:$0xff]  }
 0x3e8   : > { %v2287_v57 = vpack.c.bf16 %v2195_v63, %v2193_v31  ;;  %v2204_v32 = vpop.permute.xlu0 %2203  ;;  %v2288_v34 = vpack.c.bf16 %v2196_v19, %v2194_v21 }
 0x3ea   : > { %v2210_v58 = vpop.permute.xlu1 %2209  ;;  %2391 = vmatprep.subr.bf16.mxu0 %v2288_v34 }
 0x3eb   : > { %v2215_v36 = vsel %vm1254_vm6, %v2202_v29, %v2210_v58  ;;  %v2219_v2 = vsel %vm1254_vm6, %v2210_v58, %v2202_v29  ;;  %2392 = vmatpush1.bf16.msra.mxu0 %v2287_v57 }
 0x3ec   : > { %v2212_v56 = vpop.permute.xlu0 %2211  ;;  %2393 = vmatprep.subr.bf16.mxu0 %v2290_v3  ;;  %v2225_v51 = vmul.f32 %v2215_v36, %v4111_v18  ;;  %v2226_v44 = vmul.f32 %v2219_v2, %v4114_v27  ;;  %v3785_v36 = vld [vmem:[%s6256_s8 + $0x20] ss:$12 sps:$4 sm:$0xff]  }
 0x3ed   : > { %v2216_v46 = vsel %vm1254_vm6, %v2204_v32, %v2212_v56  ;;  %v2220_v41 = vsel %vm1254_vm6, %v2212_v56, %v2204_v32 }
 0x3ee   : > { %v2227_v28 = vmul.f32 %v2216_v46, %v4111_v18  ;;  %v2228_v10 = vmul.f32 %v2220_v41, %v4114_v27  ;;  %v2230_v26 = vpop.permute.xlu1 %2229 }
 0x3ef   : > { %2394 = vmatpush1.bf16.msra.mxu0 %v2289_v5 }
 0x3f0   : > { %v2291_v16 = vpack.c.bf16 %v2227_v28, %v2225_v51  ;;  %v2232_v37 = vpop.permute.xlu0 %2231  ;;  %v2292_v9 = vpack.c.bf16 %v2228_v10, %v2226_v44 }
 0x3f2   : > { %v2238_v48 = vpop.permute.xlu1 %2237  ;;  %2395 = vmatprep.subr.bf16.mxu0 %v2292_v9 }
 0x3f3   : > { %v2245_v38 = vsel %vm1295_vm7, %v2230_v26, %v2238_v48  ;;  %v2249_v49 = vsel %vm1295_vm7, %v2238_v48, %v2230_v26  ;;  %2396 = vmatpush1.bf16.msra.mxu0 %v2291_v16 }
 0x3f4   : > { %v2240_v25 = vpop.permute.xlu0 %2239  ;;  %v2253_v40 = vmul.f32 %v2245_v38, %v3986_v24  ;;  %v2254_v6 = vmul.f32 %v2249_v49, %v3976_v20 }
 0x3f5   : > { %v2246_v30 = vsel %vm1295_vm7, %v2232_v37, %v2240_v25  ;;  %v2250_v47 = vsel %vm1295_vm7, %v2240_v25, %v2232_v37 }
 0x3f6   : > { %v2255_v31 = vmul.f32 %v2246_v30, %v3986_v24  ;;  %v2256_v39 = vmul.f32 %v2250_v47, %v3976_v20  ;;  %v2234_v21 = vpop.permute.xlu1 %2233  ;;  %2398 = vmatmul.mubr.bf16.vlgmr.msra.gmra.mrb[8].mxu0 %v3778_v7 }
 0x3f7   : > { %2407 = vmatprep.mubr.bf16.mxu0 %v3781_v54 }
 0x3f8   : > { %v2293_v43 = vpack.c.bf16 %v2255_v31, %v2253_v40  ;;  %v2236_v8 = vpop.permute.xlu0 %2235  ;;  %v2294_v11 = vpack.c.bf16 %v2256_v39, %v2254_v6 }
 0x3fa   : > { %v2242_v55 = vpop.permute.xlu1 %2241  ;;  %2418 = vmatprep.subr.bf16.mxu0 %v2294_v11  ;;  %v5582_v11 = vld [vmem:[%s6258_s10] sm:$0xff] }
 0x3fb   : > { %v2247_v63 = vsel %vm1295_vm7, %v2234_v21, %v2242_v55  ;;  %v2251_v19 = vsel %vm1295_vm7, %v2242_v55, %v2234_v21  ;;  %2419 = vmatpush1.bf16.msra.mxu0 %v2293_v43  ;;  %v3504_v55 = vcombine.high %v5582_v11, %v5582_v11 }
 0x3fc   : > { %v2244_v29 = vpop.permute.xlu0 %2243  ;;  %v2257_v57 = vmul.f32 %v2247_v63, %v3986_v24  ;;  %v2258_v32 = vmul.f32 %v2251_v19, %v3976_v20 }
 0x3fd   : > { %v2248_v53 = vsel %vm1295_vm7, %v2236_v8, %v2244_v29  ;;  %v2252_v42 = vsel %vm1295_vm7, %v2244_v29, %v2236_v8 }
 0x3fe   : > { %v2259_v34 = vmul.f32 %v2248_v53, %v3986_v24  ;;  %v2260_v59 = vmul.f32 %v2252_v42, %v3976_v20  ;;  %2408 = vmatmul.mubr.bf16.gmra.mrb[12].mxu0 %v3783_v52 }
 0x3ff   : > { %2450 = vmatprep.mubr.bf16.mxu0 %v6339_v22 }
 0x400   : > { %v2295_v58 = vpack.c.bf16 %v2259_v34, %v2257_v57  ;;  %v2296_v3 = vpack.c.bf16 %v2260_v59, %v2258_v32  ;;  %v2876_v57 = vld [vmem:[%s6259_s11] sm:$0xff] }
 0x401   : > { %v2884_v34 = vld [vmem:[%s6260_s12] sm:$0xff] }
 0x402   : > { %2420 = vmatprep.subr.bf16.mxu0 %v2296_v3 }
 0x403   : > { %2421 = vmatpush1.bf16.msra.mxu0 %v2295_v58 }
 0x406   : > { %3501 = vmatmul.mubr.msk.bf16.vlgmr.msra.gmra.mrb[8].mxu0 %vm1702_vm8, %v3784_v13 }
 0x407   : > { %2460 = vmatprep.mubr.bf16.mxu0 %v6339_v22 }
 0x40b   : > { %v2312_v2 = vpop.permute.xlu1 %2311 }
 0x40d   : > { %v2317_v41 = vpop.permute.xlu0 %2316 }
 0x40e   : > { %3502 = vmatmul.mubr.msk.bf16.gmra.mrb[12].mxu0 %vm1702_vm8, %v3785_v36 }
 0x40f   : > { %v2322_v25 = vpop.permute.xlu1 %2321  ;;  %2826 = vmatprep.mubr.bf16.mxu0 %v3504_v55 }
 0x411   : > { %v2327_v47 = vpop.permute.xlu0 %2326 }
 0x4d9   : > { %v2452_v56 = vpop.f32.mrb[8].mxu0 }
 0x4da   : > { %v3525_v5 = vadd.f32 %v2452_v56, %v2312_v2  ;;  %v2454_v46 = vpop.f32.mrb[9].mxu0 }
 0x4db   : > { %v2456_v51 = vpop.f32.mrb[10].mxu0  ;;  %v3526_v7 = vadd.f32 %v2454_v46, %v2312_v2 }
 0x4dc   : > { %v5455_v44 = vmax.f32 %v3525_v5, 0.0  ;;  %v3527_v28 = vadd.f32 %v2456_v51, %v2317_v41  ;;  %v2458_v10 = vpop.f32.mrb[11].mxu0 }
 0x4dd   : > { %v3528_v38 = vadd.f32 %v2458_v10, %v2317_v41  ;;  %v5477_v49 = vmax.f32 %v3526_v7, 0.0 }
 0x4de   : > { %v5457_v26 = vmax.f32 %v3527_v28, 0.0  ;;  %2479 = vrot.lane.b32.xlu1 %v5455_v44, %s6345_s2 }
 0x4df   : > { %v5481_v54 = vmax.f32 %v3528_v38, 0.0 }
 0x4e0   : > { %2481 = vrot.lane.b32.xlu0 %v5457_v26, %s6345_s2 }
 0x4e1   : > { %v2462_v16 = vpop.f32.mrb[12].mxu0 }
 0x4e2   : > { %v2464_v37 = vpop.f32.mrb[13].mxu0  ;;  %2511 = vrot.lane.b32.xlu1 %v5455_v44, %s6346_s6  ;;  %v3529_v30 = vadd.f32 %v2462_v16, %v2322_v25 }
 0x4e3   : > { %v2466_v9 = vpop.f32.mrb[14].mxu0  ;;  %v3530_v39 = vadd.f32 %v2464_v37, %v2322_v25 }
 0x4e4   : > { %v2468_v48 = vpop.f32.mrb[15].mxu0  ;;  %2513 = vrot.lane.b32.xlu0 %v5457_v26, %s6346_s6  ;;  %v3531_v40 = vadd.f32 %v2466_v9, %v2327_v47  ;;  %v5501_v6 = vmax.f32 %v3529_v30, 0.0 }
 0x4e5   : > { %v3532_v21 = vadd.f32 %v2468_v48, %v2327_v47  ;;  %v5521_v43 = vmax.f32 %v3530_v39, 0.0 }
 0x4e6   : > { %2543 = vrot.lane.b32.xlu1 %v5455_v44, %s6347_s1  ;;  %v5505_v31 = vmax.f32 %v3531_v40, 0.0 }
 0x4e7   : > { %v5525_v8 = vmax.f32 %v3532_v21, 0.0 }
 0x4e8   : > { %2545 = vrot.lane.b32.xlu0 %v5457_v26, %s6347_s1 }
 0x4ea   : > { %2575 = vrot.lane.b32.xlu1 %v5455_v44, %s6348_s27 }
 0x4ec   : > { %2577 = vrot.lane.b32.xlu0 %v5457_v26, %s6348_s27 }
 0x4ee   : > { %2615 = vrot.lane.b32.xlu1 %v5455_v44, %s6349_s29 }
 0x4f0   : > { %2617 = vrot.lane.b32.xlu0 %v5457_v26, %s6349_s29 }
 0x4f2   : > { %2487 = vrot.lane.b32.xlu1 %v5477_v49, %s6345_s2 }
 0x4f4   : > { %2489 = vrot.lane.b32.xlu0 %v5481_v54, %s6345_s2 }
 0x4f6   : > { %2519 = vrot.lane.b32.xlu1 %v5477_v49, %s6346_s6 }
 0x4f8   : > { %2521 = vrot.lane.b32.xlu0 %v5481_v54, %s6346_s6 }
 0x4fa   : > { %2551 = vrot.lane.b32.xlu1 %v5477_v49, %s6347_s1 }
 0x4fc   : > { %2553 = vrot.lane.b32.xlu0 %v5481_v54, %s6347_s1 }
 0x4fe   : > { %2583 = vrot.lane.b32.xlu1 %v5477_v49, %s6348_s27 }
 0x500   : > { %2585 = vrot.lane.b32.xlu0 %v5481_v54, %s6348_s27 }
 0x502   : > { %2623 = vrot.lane.b32.xlu1 %v5477_v49, %s6349_s29 }
 0x504   : > { %2625 = vrot.lane.b32.xlu0 %v5481_v54, %s6349_s29 }
 0x506   : > { %2483 = vrot.lane.b32.xlu1 %v5501_v6, %s6345_s2 }
 0x508   : > { %2485 = vrot.lane.b32.xlu0 %v5505_v31, %s6345_s2 }
 0x50a   : > { %2515 = vrot.lane.b32.xlu1 %v5501_v6, %s6346_s6 }
 0x50c   : > { %2517 = vrot.lane.b32.xlu0 %v5505_v31, %s6346_s6 }
 0x50e   : > { %2547 = vrot.lane.b32.xlu1 %v5501_v6, %s6347_s1 }
 0x510   : > { %2549 = vrot.lane.b32.xlu0 %v5505_v31, %s6347_s1 }
 0x512   : > { %2579 = vrot.lane.b32.xlu1 %v5501_v6, %s6348_s27 }
 0x514   : > { %2581 = vrot.lane.b32.xlu0 %v5505_v31, %s6348_s27 }
 0x516   : > { %2491 = vrot.lane.b32.xlu1 %v5521_v43, %s6345_s2 }
 0x518   : > { %2493 = vrot.lane.b32.xlu0 %v5525_v8, %s6345_s2 }
 0x51a   : > { %2619 = vrot.lane.b32.xlu1 %v5501_v6, %s6349_s29 }
 0x51c   : > { %2621 = vrot.lane.b32.xlu0 %v5505_v31, %s6349_s29 }
 0x51e   : > { %2523 = vrot.lane.b32.xlu1 %v5521_v43, %s6346_s6 }
 0x520   : > { %2525 = vrot.lane.b32.xlu0 %v5525_v8, %s6346_s6 }
 0x522   : > { %2555 = vrot.lane.b32.xlu1 %v5521_v43, %s6347_s1 }
 0x524   : > { %2649 = vrot.lane.b32.xlu0 %v5457_v26, %s6340_s26 }
 0x526   : > { %2587 = vrot.lane.b32.xlu1 %v5521_v43, %s6348_s27 }
 0x528   : > { %2557 = vrot.lane.b32.xlu0 %v5525_v8, %s6347_s1 }
 0x52a   : > { %2627 = vrot.lane.b32.xlu1 %v5521_v43, %s6349_s29 }
 0x52c   : > { %2657 = vrot.lane.b32.xlu0 %v5481_v54, %s6340_s26 }
 0x52e   : > { %2647 = vrot.lane.b32.xlu1 %v5455_v44, %s6340_s26 }
 0x530   : > { %2589 = vrot.lane.b32.xlu0 %v5525_v8, %s6348_s27 }
 0x532   : > { %2655 = vrot.lane.b32.xlu1 %v5477_v49, %s6340_s26 }
 0x534   : > { %2653 = vrot.lane.b32.xlu0 %v5505_v31, %s6340_s26 }
 0x536   : > { %2651 = vrot.lane.b32.xlu1 %v5501_v6, %s6340_s26 }
 0x538   : > { %2681 = vrot.lane.b32.xlu0 %v5457_v26, %s6341_s24 }
 0x53a   : > { %2659 = vrot.lane.b32.xlu1 %v5521_v43, %s6340_s26 }
 0x53c   : > { %2689 = vrot.lane.b32.xlu0 %v5481_v54, %s6341_s24 }
 0x53e   : > { %2679 = vrot.lane.b32.xlu1 %v5455_v44, %s6341_s24 }
 0x540   : > { %2629 = vrot.lane.b32.xlu0 %v5525_v8, %s6349_s29 }
 0x542   : > { %2687 = vrot.lane.b32.xlu1 %v5477_v49, %s6341_s24 }
 0x544   : > { %2685 = vrot.lane.b32.xlu0 %v5505_v31, %s6341_s24 }
 0x546   : > { %2683 = vrot.lane.b32.xlu1 %v5501_v6, %s6341_s24 }
 0x548   : > { %2661 = vrot.lane.b32.xlu0 %v5525_v8, %s6340_s26 }
 0x54a   : > { %2691 = vrot.lane.b32.xlu1 %v5521_v43, %s6341_s24 }
 0x54c   : > { %2713 = vrot.lane.b32.xlu0 %v5457_v26, %s6343_s5 }
 0x54e   : > { %2711 = vrot.lane.b32.xlu1 %v5455_v44, %s6343_s5 }
 0x550   : > { %2693 = vrot.lane.b32.xlu0 %v5525_v8, %s6341_s24  ;;  %v2480_v52 = vpop.permute.xlu1 %2479 }
 0x552   : > { %v2482_v63 = vpop.permute.xlu0 %2481  ;;  %2719 = vrot.lane.b32.xlu1 %v5477_v49, %s6343_s5 }
 0x554   : > { %2721 = vrot.lane.b32.xlu0 %v5481_v54, %s6343_s5  ;;  %v5598_v19 = vpop.permute.xlu1 %2511 }
 0x556   : > { %v2514_v29 = vpop.permute.xlu0 %2513  ;;  %2715 = vrot.lane.b32.xlu1 %v5501_v6, %s6343_s5 }
 0x558   : > { %2717 = vrot.lane.b32.xlu0 %v5505_v31, %s6343_s5  ;;  %v5604_v53 = vpop.permute.xlu1 %2543 }
 0x55a   : > { %v5606_v42 = vpop.permute.xlu0 %2545  ;;  %2723 = vrot.lane.b32.xlu1 %v5521_v43, %s6343_s5 }
 0x55c   : > { %2725 = vrot.lane.b32.xlu0 %v5525_v8, %s6343_s5  ;;  %v5615_v32 = vpop.permute.xlu1 %2575 }
 0x55e   : > { %v5620_v59 = vpop.permute.xlu0 %2577  ;;  %2879 = vperm.xlu1 %3625, %v2876_v57  }
 0x560   : > { %2887 = vperm.xlu0 %3619, %v2884_v34   ;;  %v2616_v58 = vpop.permute.xlu1 %2615 }
 0x562   : > { %v2618_v3 = vpop.permute.xlu0 %2617 }
 0x564   : > { %v2488_v13 = vpop.permute.xlu1 %2487 }
 0x565   : > { %v2495_v36 = vsel %vm992_vm0, %v2480_v52, %v2488_v13  ;;  %v2499_v2 = vsel %vm992_vm0, %v2488_v13, %v2480_v52 }
 0x566   : > { %v2490_v56 = vpop.permute.xlu0 %2489  ;;  %v2503_v41 = vmul.f32 %v2499_v2, %v4276_v0  ;;  %v2504_v51 = vmul.f32 %v2495_v36, %v4280_v33 }
 0x567   : > { %v2496_v5 = vsel %vm992_vm0, %v2482_v63, %v2490_v56  ;;  %v2500_v46 = vsel %vm992_vm0, %v2490_v56, %v2482_v63 }
 0x568   : > { %v2505_v28 = vmul.f32 %v2500_v46, %v4276_v0  ;;  %v2506_v10 = vmul.f32 %v2496_v5, %v4280_v33  ;;  %v2520_v16 = vpop.permute.xlu1 %2519 }
 0x56a   : > { %v5634_v37 = vpack.c.bf16 %v2505_v28, %v2503_v41  ;;  %v2522_v9 = vpop.permute.xlu0 %2521  ;;  %v5636_v48 = vpack.c.bf16 %v2506_v10, %v2504_v51 }
 0x56b   : > { %v2528_v10 = vsel %vm1033_vm1, %v2514_v29, %v2522_v9 }
 0x56c   : > { %6350 = vst [vmem:[#allocation2_spill] sm:$0xff] %v5634_v37  ;;  %6351 = vst [vmem:[#allocation3_spill] sm:$0xff] %v5636_v48  ;;  %2794 = vmatprep.subr.bf16.mxu0 %v5636_v48  ;;  %v5639_v7 = vpop.permute.xlu1 %2551 }
 0x56d   : > { %2795 = vmatpush1.bf16.msra.mxu0 %v5634_v37 }
 0x56e   : > { %v2554_v38 = vpop.permute.xlu0 %2553 }
 0x570   : > { %v5642_v25 = vpop.permute.xlu1 %2583 }
 0x572   : > { %v5644_v30 = vpop.permute.xlu0 %2585 }
 0x574   : > { %v2624_v47 = vpop.permute.xlu1 %2623 }
 0x575   : > { %v2631_v40 = vsel %vm1172_vm4, %v2616_v58, %v2624_v47  ;;  %v2635_v39 = vsel %vm1172_vm4, %v2624_v47, %v2616_v58 }
 0x576   : > { %v2626_v21 = vpop.permute.xlu0 %2625  ;;  %v2639_v63 = vmul.f32 %v2631_v40, %v4091_v62  ;;  %v2640_v57 = vmul.f32 %v2635_v39, %v4101_v12 }
 0x577   : > { %v2632_v55 = vsel %vm1172_vm4, %v2618_v3, %v2626_v21  ;;  %v2636_v52 = vsel %vm1172_vm4, %v2626_v21, %v2618_v3  ;;  %v2527_v21 = vsel %vm1033_vm1, %v5598_v19, %v2520_v16 }
 0x578   : > { %v2641_v34 = vmul.f32 %v2632_v55, %v4091_v62  ;;  %v2642_v13 = vmul.f32 %v2636_v52, %v4101_v12  ;;  %v2484_v36 = vpop.permute.xlu1 %2483  ;;  %v2532_v52 = vsel %vm1033_vm1, %v2522_v9, %v2514_v29  ;;  %v2531_v29 = vsel %vm1033_vm1, %v2520_v16, %v5598_v19 }
 0x579   : > { %v2536_v9 = vmul.f32 %v2527_v21, %v4288_v45 }
 0x57a   : > { %v5658_v2 = vpack.c.bf16 %v2641_v34, %v2639_v63  ;;  %v2486_v56 = vpop.permute.xlu0 %2485  ;;  %v5660_v58 = vpack.c.bf16 %v2642_v13, %v2640_v57  ;;  %v2538_v63 = vmul.f32 %v2528_v10, %v4288_v45  ;;  %v2537_v10 = vmul.f32 %v2532_v52, %v4284_v14 }
 0x57b   : > { %v2559_v52 = vsel %vm1074_vm2, %v5604_v53, %v5639_v7 }
 0x57c   : > { %6352 = vst [vmem:[#allocation4_spill] sm:$0xff] %v5660_v58  ;;  %v2516_v5 = vpop.permute.xlu1 %2515  ;;  %v5706_v19 = vpack.c.bf16 %v2538_v63, %v2536_v9  ;;  %v2564_v63 = vsel %vm1074_vm2, %v2554_v38, %v5606_v42 }
 0x57e   : > { %v2518_v46 = vpop.permute.xlu0 %2517 }
 0x580   : > { %v2548_v41 = vpop.permute.xlu1 %2547 }
 0x582   : > { %v5662_v51 = vpop.permute.xlu0 %2549 }
 0x584   : > { %v5664_v3 = vpop.permute.xlu1 %2579 }
 0x586   : > { %v5666_v28 = vpop.permute.xlu0 %2581 }
 0x588   : > { %v2492_v47 = vpop.permute.xlu1 %2491 }
 0x589   : > { %v2497_v40 = vsel %vm992_vm0, %v2484_v36, %v2492_v47  ;;  %v2501_v39 = vsel %vm992_vm0, %v2492_v47, %v2484_v36 }
 0x58a   : > { %v2494_v55 = vpop.permute.xlu0 %2493  ;;  %v2507_v13 = vmul.f32 %v2501_v39, %v4276_v0  ;;  %v2508_v36 = vmul.f32 %v2497_v40, %v4280_v33  ;;  %v2535_v40 = vmul.f32 %v2531_v29, %v4284_v14 }
 0x58b   : > { %v2498_v57 = vsel %vm992_vm0, %v2486_v56, %v2494_v55  ;;  %v2502_v34 = vsel %vm992_vm0, %v2494_v55, %v2486_v56  ;;  %v2560_v55 = vsel %vm1074_vm2, %v5606_v42, %v2554_v38  ;;  %v2563_v42 = vsel %vm1074_vm2, %v5639_v7, %v5604_v53 }
 0x58c   : > { %v2509_v47 = vmul.f32 %v2502_v34, %v4276_v0  ;;  %v2510_v37 = vmul.f32 %v2498_v57, %v4280_v33  ;;  %v5688_v48 = vpop.permute.xlu1 %2619  ;;  %v2568_v38 = vmul.f32 %v2559_v52, %v4349_v50 }
 0x58e   : > { %v5695_v22 = vpack.c.bf16 %v2509_v47, %v2507_v13  ;;  %v5697_v56 = vpop.permute.xlu0 %2621  ;;  %v5699_v39 = vpack.c.bf16 %v2510_v37, %v2508_v36  ;;  %v5713_v37 = vpack.c.bf16 %v2537_v10, %v2535_v40  ;;  %v2570_v13 = vmul.f32 %v2560_v55, %v4349_v50 }
 0x590   : > { %2796 = vmatprep.subr.bf16.mxu0 %v5699_v39  ;;  %v2524_v57 = vpop.permute.xlu1 %2523  ;;  %v5751_v7 = vpack.c.bf16 %v2570_v13, %v2568_v38  ;;  %v2596_v13 = vsel %vm1115_vm3, %v5644_v30, %v5620_v59 }
 0x591   : > { %v2529_v16 = vsel %vm1033_vm1, %v2516_v5, %v2524_v57  ;;  %v2533_v21 = vsel %vm1033_vm1, %v2524_v57, %v2516_v5  ;;  %2797 = vmatpush1.bf16.msra.mxu0 %v5695_v22 }
 0x592   : > { %v2526_v34 = vpop.permute.xlu0 %2525  ;;  %2798 = vmatprep.subr.bf16.mxu0 %v5706_v19  ;;  %v2539_v47 = vmul.f32 %v2533_v21, %v4284_v14  ;;  %v2540_v29 = vmul.f32 %v2529_v16, %v4288_v45  ;;  %v2567_v21 = vmul.f32 %v2563_v42, %v4037_v60 }
 0x593   : > { %v2530_v5 = vsel %vm1033_vm1, %v2518_v46, %v2526_v34  ;;  %v2534_v36 = vsel %vm1033_vm1, %v2526_v34, %v2518_v46  ;;  %v2569_v46 = vmul.f32 %v2564_v63, %v4037_v60  ;;  %v2592_v34 = vsel %vm1115_vm3, %v5620_v59, %v5644_v30 }
 0x594   : > { %v2541_v9 = vmul.f32 %v2534_v36, %v4284_v14  ;;  %v2542_v10 = vmul.f32 %v2530_v5, %v4288_v45  ;;  %v2556_v40 = vpop.permute.xlu1 %2555  ;;  %v2591_v36 = vsel %vm1115_vm3, %v5615_v32, %v5642_v25  ;;  %v2595_v59 = vsel %vm1115_vm3, %v5642_v25, %v5615_v32 }
 0x595   : > { %2799 = vmatpush1.bf16.msra.mxu0 %v5713_v37  ;;  %v2561_v52 = vsel %vm1074_vm2, %v2548_v41, %v2556_v40  ;;  %v2565_v63 = vsel %vm1074_vm2, %v2556_v40, %v2548_v41  ;;  %v5758_v5 = vpack.c.bf16 %v2569_v46, %v2567_v21  ;;  %v2600_v30 = vmul.f32 %v2591_v36, %v4058_v23 }
 0x596   : > { %v5739_v55 = vpack.c.bf16 %v2541_v9, %v2539_v47  ;;  %v5741_v57 = vpop.permute.xlu0 %2649  ;;  %v5743_v16 = vpack.c.bf16 %v2542_v10, %v2540_v29  ;;  %v2602_v29 = vmul.f32 %v2592_v34, %v4058_v23  ;;  %v2571_v10 = vmul.f32 %v2565_v63, %v4037_v60 }
 0x597   : > { %v2572_v40 = vmul.f32 %v2561_v52, %v4349_v50  ;;  %v2601_v52 = vmul.f32 %v2596_v13, %v4044_v4 }
 0x598   : > { %2800 = vmatprep.subr.bf16.mxu0 %v5743_v16  ;;  %v2588_v53 = vpop.permute.xlu1 %2587 }
 0x599   : > { %2801 = vmatpush1.bf16.msra.mxu0 %v5739_v55  ;;  %v2593_v32 = vsel %vm1115_vm3, %v5664_v3, %v2588_v53  ;;  %v2597_v25 = vsel %vm1115_vm3, %v2588_v53, %v5664_v3 }
 0x59a   : > { %v2558_v47 = vpop.permute.xlu0 %2557  ;;  %2802 = vmatprep.subr.bf16.mxu0 %v5751_v7  ;;  %v2603_v3 = vmul.f32 %v2597_v25, %v4044_v4  ;;  %v2604_v53 = vmul.f32 %v2593_v32, %v4058_v23  ;;  %v2614_v25 = vmul.f32 %v5525_v8, %v4088_v1  ;;  %v2611_v8 = vmul.f32 %v5501_v6, %v4084_v61 }
 0x59b   : > { %v2562_v41 = vsel %vm1074_vm2, %v5662_v51, %v2558_v47  ;;  %v2566_v9 = vsel %vm1074_vm2, %v2558_v47, %v5662_v51  ;;  %v5794_v47 = vpack.c.bf16 %v2602_v29, %v2600_v30 }
 0x59c   : > { %v2573_v42 = vmul.f32 %v2566_v9, %v4037_v60  ;;  %v2574_v38 = vmul.f32 %v2562_v41, %v4349_v50  ;;  %v2628_v46 = vpop.permute.xlu1 %2627  ;;  %v2599_v41 = vmul.f32 %v2595_v59, %v4044_v4 }
 0x59d   : > { %2803 = vmatpush1.bf16.msra.mxu0 %v5758_v5 }
 0x59e   : > { %v5786_v21 = vpack.c.bf16 %v2573_v42, %v2571_v10  ;;  %v5788_v51 = vpop.permute.xlu0 %2657  ;;  %v5790_v34 = vpack.c.bf16 %v2574_v38, %v2572_v40  ;;  %v5805_v13 = vpack.c.bf16 %v2601_v52, %v2599_v41  ;;  %v2610_v10 = vmul.f32 %v5481_v54, %v4088_v1 }
 0x59f   : > { %v2609_v54 = vmul.f32 %v5457_v26, %v4084_v61 }
 0x5a0   : > { %2804 = vmatprep.subr.bf16.mxu0 %v5790_v34  ;;  %v2648_v63 = vpop.permute.xlu1 %2647 }
 0x5a1   : > { %2805 = vmatpush1.bf16.msra.mxu0 %v5786_v21 }
 0x5a2   : > { %v2590_v36 = vpop.permute.xlu0 %2589  ;;  %2806 = vmatprep.subr.bf16.mxu0 %v5794_v47 }
 0x5a3   : > { %v2594_v29 = vsel %vm1115_vm3, %v5666_v28, %v2590_v36  ;;  %v2598_v9 = vsel %vm1115_vm3, %v2590_v36, %v5666_v28  ;;  %v2608_v28 = vmul.f32 %v5477_v49, %v4088_v1  ;;  %v2607_v36 = vmul.f32 %v5455_v44, %v4084_v61 }
 0x5a4   : > { %v2605_v40 = vmul.f32 %v2598_v9, %v4044_v4  ;;  %v2606_v42 = vmul.f32 %v2594_v29, %v4058_v23  ;;  %v2656_v38 = vpop.permute.xlu1 %2655  ;;  %v2612_v49 = vmul.f32 %v5521_v43, %v4088_v1  ;;  %v2613_v9 = vmul.f32 %v5505_v31, %v4084_v61 }
 0x5a5   : > { %2807 = vmatpush1.bf16.msra.mxu0 %v5805_v13  ;;  %v5829_v32 = vpack.c.bf16 %v2610_v10, %v2608_v28  ;;  %v5839_v26 = vpack.c.bf16 %v2609_v54, %v2607_v36  ;;  %v2633_v43 = vsel %vm1172_vm4, %v5688_v48, %v2628_v46  ;;  %v2637_v31 = vsel %vm1172_vm4, %v2628_v46, %v5688_v48 }
 0x5a6   : > { %v5820_v59 = vpack.c.bf16 %v2605_v40, %v2603_v3  ;;  %v2654_v30 = vpop.permute.xlu0 %2653  ;;  %v5822_v52 = vpack.c.bf16 %v2606_v42, %v2604_v53  ;;  %v5843_v3 = vpack.c.bf16 %v2614_v25, %v2612_v49  ;;  %v5852_v53 = vpack.c.bf16 %v2613_v9, %v2611_v8 }
 0x5a7   : > { %v2667_v42 = vsel %vm1213_vm5, %v2656_v38, %v2648_v63  ;;  %v2643_v6 = vmul.f32 %v2633_v43, %v4091_v62  ;;  %v2668_v54 = vsel %vm1213_vm5, %v5788_v51, %v5741_v57  ;;  %v2663_v25 = vsel %vm1213_vm5, %v2648_v63, %v2656_v38 }
 0x5a8   : > { %2808 = vmatprep.subr.bf16.mxu0 %v5822_v52  ;;  %v2652_v41 = vpop.permute.xlu1 %2651  ;;  %v2644_v36 = vmul.f32 %v2637_v31, %v4101_v12  ;;  %v2672_v49 = vmul.f32 %v2667_v42, %v4108_v17  ;;  %v2664_v63 = vsel %vm1213_vm5, %v5741_v57, %v5788_v51  ;;  %v2674_v38 = vmul.f32 %v2668_v54, %v4108_v17 }
 0x5a9   : > { %2809 = vmatpush1.bf16.msra.mxu0 %v5820_v59 }
 0x5aa   : > { %v2682_v29 = vpop.permute.xlu0 %2681  ;;  %2810 = vmatprep.subr.bf16.mxu0 %v5829_v32  ;;  %v5895_v51 = vpack.c.bf16 %v2674_v38, %v2672_v49 }
 0x5ac   : > { %v2660_v10 = vpop.permute.xlu1 %2659  ;;  %6353 = vst [vmem:[#allocation5_spill] sm:$0xff] %v5895_v51 }
 0x5ad   : > { %2811 = vmatpush1.bf16.msra.mxu0 %v5839_v26 }
 0x5ae   : > { %v2690_v44 = vpop.permute.xlu0 %2689  ;;  %2812 = vmatprep.subr.bf16.mxu0 %v5843_v3 }
 0x5b0   : > { %v2680_v40 = vpop.permute.xlu1 %2679 }
 0x5b1   : > { %2813 = vmatpush1.bf16.msra.mxu0 %v5852_v53 }
 0x5b2   : > { %v2630_v28 = vpop.permute.xlu0 %2629  ;;  %2814 = vmatprep.subr.bf16.mxu0 %v5660_v58  ;;  %v2669_v58 = vsel %vm1213_vm5, %v2660_v10, %v2652_v41 }
 0x5b3   : > { %v2634_v48 = vsel %vm1172_vm4, %v5697_v56, %v2630_v28  ;;  %v2638_v46 = vsel %vm1172_vm4, %v2630_v28, %v5697_v56  ;;  %v2671_v56 = vmul.f32 %v2663_v25, %v4104_v15 }
 0x5b4   : > { %v2645_v9 = vmul.f32 %v2634_v48, %v4091_v62  ;;  %v2646_v8 = vmul.f32 %v2638_v46, %v4101_v12  ;;  %v2688_v43 = vpop.permute.xlu1 %2687  ;;  %v2665_v48 = vsel %vm1213_vm5, %v2652_v41, %v2660_v10  ;;  %v2673_v46 = vmul.f32 %v2664_v63, %v4104_v15 }
 0x5b5   : > { %2815 = vmatpush1.bf16.msra.mxu0 %v5658_v2  ;;  %v2675_v25 = vmul.f32 %v2665_v48, %v4104_v15  ;;  %v2700_v41 = vsel %vm1254_vm6, %v2690_v44, %v2682_v29 }
 0x5b6   : > { %v5885_v28 = vpack.c.bf16 %v2645_v9, %v2643_v6  ;;  %v2686_v31 = vpop.permute.xlu0 %2685  ;;  %v5887_v42 = vpack.c.bf16 %v2646_v8, %v2644_v36  ;;  %v2699_v6 = vsel %vm1254_vm6, %v2688_v43, %v2680_v40  ;;  %v5900_v54 = vpack.c.bf16 %v2673_v46, %v2671_v56 }
 0x5b7   : > { %v2676_v9 = vmul.f32 %v2669_v58, %v4108_v17  ;;  %v2695_v8 = vsel %vm1254_vm6, %v2680_v40, %v2688_v43  ;;  %v2704_v63 = vmul.f32 %v2699_v6, %v4114_v27  ;;  %v2696_v58 = vsel %vm1254_vm6, %v2682_v29, %v2690_v44 }
 0x5b8   : > { %v2684_v57 = vpop.permute.xlu1 %2683  ;;  %2816 = vmatprep.subr.bf16.mxu0 %v5887_v42  ;;  %v2706_v46 = vmul.f32 %v2700_v41, %v4114_v27  ;;  %v2703_v40 = vmul.f32 %v2695_v8, %v4111_v18 }
 0x5b9   : > { %2817 = vmatpush1.bf16.msra.mxu0 %v5885_v28 }
 0x5ba   : > { %v2662_v36 = vpop.permute.xlu0 %2661  ;;  %2818 = vmatprep.subr.bf16.mxu0 %v5895_v51  ;;  %v5926_v6 = vpack.c.bf16 %v2706_v46, %v2704_v63 }
 0x5bb   : > { %v2666_v10 = vsel %vm1213_vm5, %v2654_v30, %v2662_v36  ;;  %v2670_v49 = vsel %vm1213_vm5, %v2662_v36, %v2654_v30 }
 0x5bc   : > { %v2677_v38 = vmul.f32 %v2666_v10, %v4104_v15  ;;  %v2678_v56 = vmul.f32 %v2670_v49, %v4108_v17  ;;  %v2692_v48 = vpop.permute.xlu1 %2691  ;;  %v2705_v10 = vmul.f32 %v2696_v58, %v4111_v18 }
 0x5bd   : > { %2819 = vmatpush1.bf16.msra.mxu0 %v5900_v54  ;;  %v2697_v49 = vsel %vm1254_vm6, %v2684_v57, %v2692_v48  ;;  %v2701_v29 = vsel %vm1254_vm6, %v2692_v48, %v2684_v57 }
 0x5be   : > { %v5920_v51 = vpack.c.bf16 %v2677_v38, %v2675_v25  ;;  %v2714_v30 = vpop.permute.xlu0 %2713  ;;  %v5922_v36 = vpack.c.bf16 %v2678_v56, %v2676_v9  ;;  %v5935_v25 = vpack.c.bf16 %v2705_v10, %v2703_v40  ;;  %v2707_v8 = vmul.f32 %v2697_v49, %v4111_v18 }
 0x5bf   : > { %v2708_v63 = vmul.f32 %v2701_v29, %v4114_v27  ;;  %v3503_v29 = vcombine.low %v5582_v11, %v5582_v11 }
 0x5c0   : > { %v2712_v43 = vpop.permute.xlu1 %2711  ;;  %2820 = vmatprep.subr.bf16.mxu0 %v5922_v36 }
 0x5c1   : > { %2821 = vmatpush1.bf16.msra.mxu0 %v5920_v51 }
 0x5c2   : > { %v2694_v44 = vpop.permute.xlu0 %2693  ;;  %2822 = vmatprep.subr.bf16.mxu0 %v5926_v6 }
 0x5c3   : > { %v2698_v9 = vsel %vm1254_vm6, %v2686_v31, %v2694_v44  ;;  %v2702_v41 = vsel %vm1254_vm6, %v2694_v44, %v2686_v31 }
 0x5c4   : > { %v2709_v38 = vmul.f32 %v2698_v9, %v4111_v18  ;;  %v2710_v57 = vmul.f32 %v2702_v41, %v4114_v27  ;;  %v2720_v56 = vpop.permute.xlu1 %2719 }
 0x5c5   : > { %v2727_v48 = vsel %vm1295_vm7, %v2712_v43, %v2720_v56  ;;  %v2731_v58 = vsel %vm1295_vm7, %v2720_v56, %v2712_v43  ;;  %2823 = vmatpush1.bf16.msra.mxu0 %v5935_v25 }
 0x5c6   : > { %v5950_v46 = vpack.c.bf16 %v2709_v38, %v2707_v8  ;;  %v2722_v31 = vpop.permute.xlu0 %2721  ;;  %v5952_v40 = vpack.c.bf16 %v2710_v57, %v2708_v63  ;;  %v2735_v44 = vmul.f32 %v2727_v48, %v3986_v24  ;;  %v2736_v43 = vmul.f32 %v2731_v58, %v3976_v20 }
 0x5c7   : > { %v2728_v10 = vsel %vm1295_vm7, %v2714_v30, %v2722_v31  ;;  %v2732_v49 = vsel %vm1295_vm7, %v2722_v31, %v2714_v30  ;;  %v6358_v48 = vmov 0  }
 0x5c8   : > { %6354 = vst [vmem:[#allocation6_spill] sm:$0xff] %v5950_v46  ;;  %6355 = vst [vmem:[#allocation7_spill] sm:$0xff] %v5952_v40  ;;  %v2737_v9 = vmul.f32 %v2728_v10, %v3986_v24  ;;  %v2738_v41 = vmul.f32 %v2732_v49, %v3976_v20  ;;  %v2716_v8 = vpop.permute.xlu1 %2715  ;;  %2824 = vmatprep.subr.bf16.mxu0 %v5952_v40 }
 0x5c9   : > { %2825 = vmatpush1.bf16.msra.mxu0 %v5950_v46 }
 0x5ca   : > { %v5966_v63 = vpack.c.bf16 %v2737_v9, %v2735_v44  ;;  %v2718_v38 = vpop.permute.xlu0 %2717  ;;  %v5968_v30 = vpack.c.bf16 %v2738_v41, %v2736_v43 }
 0x5cc   : > { %6356 = vst [vmem:[#allocation8_spill] sm:$0xff] %v5966_v63  ;;  %6357 = vst [vmem:[#allocation9_spill] sm:$0xff] %v5968_v30  ;;  %v2724_v57 = vpop.permute.xlu1 %2723  ;;  %2827 = vmatmul.mubr.bf16.vlgmr.msra.gmra.mrb[16].mxu0 %v3503_v29  ;;  %2835 = vmatprep.subr.bf16.mxu0 %v5968_v30 }
 0x5cd   : > { %v2729_v11 = vsel %vm1295_vm7, %v2716_v8, %v2724_v57  ;;  %v2733_v56 = vsel %vm1295_vm7, %v2724_v57, %v2716_v8  ;;  %2836 = vmatpush1.bf16.msra.mxu0 %v5966_v63  ;;  %2867 = vmatprep.mubr.bf16.mxu0 %v6358_v48  ;;  %v3788_v8 = vld [vmem:[%s6258_s10 + $0x8] ss:$0 sps:$4 sm:$0xff]  }
 0x5ce   : > { %v2726_v58 = vpop.permute.xlu0 %2725  ;;  %v2739_v49 = vmul.f32 %v2729_v11, %v3986_v24  ;;  %v2740_v29 = vmul.f32 %v2733_v56, %v3976_v20 }
 0x5cf   : > { %v2730_v31 = vsel %vm1295_vm7, %v2718_v38, %v2726_v58  ;;  %v2734_v10 = vsel %vm1295_vm7, %v2726_v58, %v2718_v38 }
 0x5d0   : > { %v2741_v44 = vmul.f32 %v2730_v31, %v3986_v24  ;;  %v2742_v43 = vmul.f32 %v2734_v10, %v3976_v20 }
 0x5d2   : > { %v5985_v9 = vpack.c.bf16 %v2741_v44, %v2739_v49  ;;  %v5987_v41 = vpack.c.bf16 %v2742_v43, %v2740_v29 }
 0x5d4   : > { %6359 = vst [vmem:[#allocation10_spill] sm:$0xff] %v5985_v9  ;;  %6360 = vst [vmem:[#allocation11_spill] sm:$0xff] %v5987_v41  ;;  %2837 = vmatprep.subr.bf16.mxu0 %v5987_v41 }
 0x5d5   : > { %2838 = vmatpush1.bf16.msra.mxu0 %v5985_v9 }
 0x5d8   : > { %3506 = vmatmul.mubr.msk.bf16.vlgmr.msra.gmra.mrb[16].mxu0 %vm1702_vm8, %v3788_v8  ;;  %v3023_v8 = vld [vmem:[%s6262_s14] sm:$0xff] }
 0x5d9   : > { %3014 = vmatprep.mubr.bf16.mxu0 %v6358_v48 }
 0x5dd   : > { %v2880_v38 = vpop.permute.xlu1 %2879 }
 0x5df   : > { %v2888_v58 = vpop.permute.xlu0 %2887 }
 0x6ab   : > { %v2869_v57 = vpop.f32.mrb[16].mxu0 }
 0x6ac   : > { %v2882_v11 = vmul.f32 %v2880_v38, %v2869_v57  ;;  %v2871_v56 = vpop.f32.mrb[17].mxu0 }
 0x6ad   : > { %v2883_v31 = vmul.f32 %v2880_v38, %v2871_v56  ;;  %v2873_v10 = vpop.f32.mrb[18].mxu0  ;;  %v3031_v38 = vld [vmem:[%s6263_s15] sm:$0xff] }
 0x6ae   : > { %v2890_v49 = vadd.f32 %v2888_v58, %v2882_v11  ;;  %v2874_v29 = vpop.f32.mrb[19].mxu0 }
 0x6af   : > { %v2891_v44 = vadd.f32 %v2888_v58, %v2883_v31 }
 0x6b0   : > { %v2892_v43 = vmax.f32 %v2890_v49, 0.0 }
 0x6b1   : > { %v2893_v41 = vmax.f32 %v2891_v44, 0.0 }
 0x6b2   : > { %2894 = vrot.lane.b32.xlu1 %v2892_v43, %s6345_s2 }
 0x6b3   : > { %2896 = vrot.lane.b32.xlu0 %v2893_v41, %s6345_s2 }
 0x6b6   : > { %2902 = vrot.lane.b32.xlu1 %v2892_v43, %s6346_s6 }
 0x6b7   : > { %2904 = vrot.lane.b32.xlu0 %v2893_v41, %s6346_s6 }
 0x6ba   : > { %2910 = vrot.lane.b32.xlu1 %v2892_v43, %s6347_s1 }
 0x6bb   : > { %2912 = vrot.lane.b32.xlu0 %v2893_v41, %s6347_s1 }
 0x6be   : > { %2918 = vrot.lane.b32.xlu1 %v2892_v43, %s6348_s27 }
 0x6bf   : > { %2920 = vrot.lane.b32.xlu0 %v2893_v41, %s6348_s27 }
 0x6c2   : > { %2928 = vrot.lane.b32.xlu1 %v2892_v43, %s6349_s29 }
 0x6c3   : > { %2930 = vrot.lane.b32.xlu0 %v2893_v41, %s6349_s29 }
 0x6c6   : > { %2936 = vrot.lane.b32.xlu1 %v2892_v43, %s6340_s26 }
 0x6c7   : > { %2938 = vrot.lane.b32.xlu0 %v2893_v41, %s6340_s26 }
 0x6ca   : > { %2944 = vrot.lane.b32.xlu1 %v2892_v43, %s6341_s24 }
 0x6cb   : > { %2946 = vrot.lane.b32.xlu0 %v2893_v41, %s6341_s24 }
 0x6ce   : > { %2952 = vrot.lane.b32.xlu1 %v2892_v43, %s6343_s5 }
 0x6cf   : > { %2954 = vrot.lane.b32.xlu0 %v2893_v41, %s6343_s5 }
 0x6d2   : > { %3026 = vperm.xlu1 %3625, %v3023_v8  }
 0x6d3   : > { %3034 = vperm.xlu0 %3619, %v3031_v38  }
 0x724   : > { %v2895_v57 = vpop.permute.xlu1 %2894 }
 0x725   : > { %v2897_v11 = vpop.permute.xlu0 %2896 }
 0x726   : > { %v2898_v56 = vsel %vm992_vm0, %v2895_v57, %v2897_v11  ;;  %v2899_v58 = vsel %vm992_vm0, %v2897_v11, %v2895_v57 }
 0x727   : > { %v2900_v44 = vmul.f32 %v2899_v58, %v4276_v0  ;;  %v2901_v8 = vmul.f32 %v2898_v56, %v4280_v33 }
 0x728   : > { %v2903_v31 = vpop.permute.xlu1 %2902 }
 0x729   : > { %v2905_v10 = vpop.permute.xlu0 %2904 }
 0x72a   : > { %v2906_v49 = vsel %vm1033_vm1, %v2903_v31, %v2905_v10  ;;  %v2907_v29 = vsel %vm1033_vm1, %v2905_v10, %v2903_v31 }
 0x72b   : > { %v2908_v38 = vmul.f32 %v2907_v29, %v4284_v14  ;;  %v2909_v9 = vmul.f32 %v2906_v49, %v4288_v45 }
 0x72c   : > { %v2911_v63 = vpop.permute.xlu1 %2910 }
 0x72d   : > { %v2960_v30 = vpack.c.bf16 %v2908_v38, %v2900_v44  ;;  %v2913_v46 = vpop.permute.xlu0 %2912  ;;  %v2961_v57 = vpack.c.bf16 %v2909_v9, %v2901_v8 }
 0x72e   : > { %v2914_v11 = vsel %vm1074_vm2, %v2911_v63, %v2913_v46  ;;  %v2915_v40 = vsel %vm1074_vm2, %v2913_v46, %v2911_v63 }
 0x72f   : > { %2982 = vmatprep.subr.bf16.mxu0 %v2961_v57  ;;  %v2916_v49 = vmul.f32 %v2915_v40, %v4037_v60  ;;  %v2917_v9 = vmul.f32 %v2914_v11, %v4349_v50 }
 0x730   : > { %v2919_v31 = vpop.permute.xlu1 %2918  ;;  %2983 = vmatpush1.bf16.msra.mxu0 %v2960_v30 }
 0x731   : > { %v2921_v58 = vpop.permute.xlu0 %2920 }
 0x732   : > { %v2922_v56 = vsel %vm1115_vm3, %v2919_v31, %v2921_v58  ;;  %v2923_v10 = vsel %vm1115_vm3, %v2921_v58, %v2919_v31  ;;  %v2926_v31 = vmul.f32 %v2892_v43, %v4084_v61  ;;  %v2927_v58 = vmul.f32 %v2893_v41, %v4088_v1 }
 0x733   : > { %v2924_v29 = vmul.f32 %v2923_v10, %v4044_v4  ;;  %v2925_v44 = vmul.f32 %v2922_v56, %v4058_v23 }
 0x734   : > { %v2929_v8 = vpop.permute.xlu1 %2928 }
 0x735   : > { %v2962_v38 = vpack.c.bf16 %v2924_v29, %v2916_v49  ;;  %v2931_v46 = vpop.permute.xlu0 %2930  ;;  %v2963_v63 = vpack.c.bf16 %v2925_v44, %v2917_v9 }
 0x736   : > { %v2932_v30 = vsel %vm1172_vm4, %v2929_v8, %v2931_v46  ;;  %v2933_v57 = vsel %vm1172_vm4, %v2931_v46, %v2929_v8 }
 0x737   : > { %v2934_v40 = vmul.f32 %v2932_v30, %v4091_v62  ;;  %v2935_v11 = vmul.f32 %v2933_v57, %v4101_v12  ;;  %2984 = vmatprep.subr.bf16.mxu0 %v2963_v63 }
 0x738   : > { %v2937_v56 = vpop.permute.xlu1 %2936  ;;  %2985 = vmatpush1.bf16.msra.mxu0 %v2962_v38 }
 0x739   : > { %v2964_v10 = vpack.c.bf16 %v2934_v40, %v2926_v31  ;;  %v2939_v49 = vpop.permute.xlu0 %2938  ;;  %v2965_v9 = vpack.c.bf16 %v2935_v11, %v2927_v58 }
 0x73a   : > { %v2940_v29 = vsel %vm1213_vm5, %v2937_v56, %v2939_v49  ;;  %v2941_v44 = vsel %vm1213_vm5, %v2939_v49, %v2937_v56 }
 0x73b   : > { %2986 = vmatprep.subr.bf16.mxu0 %v2965_v9  ;;  %v2942_v38 = vmul.f32 %v2940_v29, %v4104_v15  ;;  %v2943_v63 = vmul.f32 %v2941_v44, %v4108_v17 }
 0x73c   : > { %v2945_v43 = vpop.permute.xlu1 %2944  ;;  %2987 = vmatpush1.bf16.msra.mxu0 %v2964_v10 }
 0x73d   : > { %v2947_v8 = vpop.permute.xlu0 %2946 }
 0x73e   : > { %v2948_v46 = vsel %vm1254_vm6, %v2945_v43, %v2947_v8  ;;  %v2949_v41 = vsel %vm1254_vm6, %v2947_v8, %v2945_v43  ;;  %v2970_v8 = vld [vmem:[%s6261_s13] sm:$0xf] }
 0x73f   : > { %v2950_v30 = vmul.f32 %v2948_v46, %v4111_v18  ;;  %v2951_v57 = vmul.f32 %v2949_v41, %v4114_v27 }
 0x740   : > { %v2953_v31 = vpop.permute.xlu1 %2952 }
 0x741   : > { %v2966_v40 = vpack.c.bf16 %v2950_v30, %v2942_v38  ;;  %v2955_v11 = vpop.permute.xlu0 %2954  ;;  %v2967_v58 = vpack.c.bf16 %v2951_v57, %v2943_v63 }
 0x742   : > { %v2956_v56 = vsel %vm1295_vm7, %v2953_v31, %v2955_v11  ;;  %v2957_v10 = vsel %vm1295_vm7, %v2955_v11, %v2953_v31 }
 0x743   : > { %v2958_v49 = vmul.f32 %v2956_v56, %v3986_v24  ;;  %v2959_v9 = vmul.f32 %v2957_v10, %v3976_v20  ;;  %2988 = vmatprep.subr.bf16.mxu0 %v2967_v58 }
 0x744   : > { %2989 = vmatpush1.bf16.msra.mxu0 %v2966_v40 }
 0x745   : > { %v2968_v29 = vpack.c.bf16 %v2958_v49, %v2958_v49  ;;  %v2969_v44 = vpack.c.bf16 %v2959_v9, %v2959_v9  ;;  %v3265_v49 = vld [vmem:[%s6266_s18] sm:$0xff] }
 0x746   : > { %v3273_v9 = vld [vmem:[%s6267_s19] sm:$0xff] }
 0x747   : > { %3507 = vmatprep.subr.msk.bf16.mxu0 %vm2975_vm9, %v2969_v44  ;;  %v2977_v43 = vsel %vm2975_vm9, %v2968_v29, 0  ;;  %v3289_v29 = vld [vmem:[%s6269_s21] sm:$0xff]  ;;  %v3290_v44 = vld [vmem:[%s6269_s21 + $0x8] sm:$0xff] }
 0x748   : > { %2991 = vmatpush1.bf16.msra.mxu0 %v2977_v43  ;;  %v3291_v43 = vld [vmem:[%s6269_s21 + $0x10] sm:$0xff] }
 0x74b   : > { %3508 = vmatmul.mubr.msk.bf16.vlgmr.msra.gmra.mrb[20].mxu0 %vm2971_vm10, %v2970_v8  ;;  %v3292_v8 = vld [vmem:[%s6269_s21 + $0x18] sm:$0xff] }
 0x74c   : > { %3368 = vmatprep.mubr.bf16.mxu0 %v6358_v48 }
 0x751   : > { %v3027_v46 = vpop.permute.xlu1 %3026 }
 0x752   : > { %v3035_v30 = vpop.permute.xlu0 %3034 }
 0x81e   : > { %v3016_v41 = vpop.f32.mrb[20].mxu0 }
 0x81f   : > { %v3029_v38 = vmul.f32 %v3027_v46, %v3016_v41  ;;  %v3018_v63 = vpop.f32.mrb[21].mxu0 }
 0x820   : > { %v3030_v57 = vmul.f32 %v3027_v46, %v3018_v63  ;;  %v3020_v31 = vpop.f32.mrb[22].mxu0 }
 0x821   : > { %v3037_v40 = vadd.f32 %v3035_v30, %v3029_v38  ;;  %v3021_v11 = vpop.f32.mrb[23].mxu0 }
 0x822   : > { %v3038_v58 = vadd.f32 %v3035_v30, %v3030_v57 }
 0x823   : > { %v6075_v56 = vmax.f32 %v3037_v40, 0.0 }
 0x824   : > { %v6077_v10 = vmax.f32 %v3038_v58, 0.0 }
 0x825   : > { %3043 = vrot.lane.b32.xlu1 %v6075_v56, %s6345_s2 }
 0x826   : > { %3045 = vrot.lane.b32.xlu0 %v6077_v10, %s6345_s2 }
 0x829   : > { %3051 = vrot.lane.b32.xlu1 %v6075_v56, %s6346_s6 }
 0x82a   : > { %3053 = vrot.lane.b32.xlu0 %v6077_v10, %s6346_s6 }
 0x82d   : > { %3059 = vrot.lane.b32.xlu1 %v6075_v56, %s6347_s1 }
 0x82e   : > { %3061 = vrot.lane.b32.xlu0 %v6077_v10, %s6347_s1 }
 0x831   : > { %3067 = vrot.lane.b32.xlu1 %v6075_v56, %s6348_s27 }
 0x832   : > { %3069 = vrot.lane.b32.xlu0 %v6077_v10, %s6348_s27 }
 0x835   : > { %3077 = vrot.lane.b32.xlu1 %v6075_v56, %s6349_s29 }
 0x836   : > { %3079 = vrot.lane.b32.xlu0 %v6077_v10, %s6349_s29 }
 0x839   : > { %3085 = vrot.lane.b32.xlu1 %v6075_v56, %s6340_s26 }
 0x83a   : > { %3087 = vrot.lane.b32.xlu0 %v6077_v10, %s6340_s26 }
 0x83d   : > { %3093 = vrot.lane.b32.xlu1 %v6075_v56, %s6341_s24 }
 0x83e   : > { %3095 = vrot.lane.b32.xlu0 %v6077_v10, %s6341_s24 }
 0x841   : > { %3101 = vrot.lane.b32.xlu1 %v6075_v56, %s6343_s5 }
 0x842   : > { %3103 = vrot.lane.b32.xlu0 %v6077_v10, %s6343_s5  ;;  %s6371_s5 = sshll.u32 %s6373_s28, 6 }
 0x843   : > { %s703_s30 = scalar_lea.vmem %s6270_s22, %s6371_s5 }
 0x845   : > { %3268 = vperm.xlu1 %3625, %v3265_v49  }
 0x846   : > { %3276 = vperm.xlu0 %3619, %v3273_v9  }
 0x849   : > { %3295 = vperm.xlu1 %3625, %v3289_v29  }
 0x84a   : > { %3300 = vperm.xlu0 %3619, %v3290_v44  }
 0x84d   : > { %3305 = vperm.xlu1 %3625, %v3291_v43  }
 0x84e   : > { %3310 = vperm.xlu0 %3619, %v3292_v8  }
 0x897   : > { %v3044_v46 = vpop.permute.xlu1 %3043 }
 0x898   : > { %v3046_v41 = vpop.permute.xlu0 %3045 }
 0x899   : > { %v3047_v38 = vsel %vm992_vm0, %v3044_v46, %v3046_v41  ;;  %v3048_v63 = vsel %vm992_vm0, %v3046_v41, %v3044_v46 }
 0x89a   : > { %v3049_v11 = vmul.f32 %v3048_v63, %v4276_v0  ;;  %v3050_v58 = vmul.f32 %v3047_v38, %v4280_v33 }
 0x89b   : > { %v3052_v30 = vpop.permute.xlu1 %3051 }
 0x89c   : > { %v3054_v57 = vpop.permute.xlu0 %3053 }
 0x89d   : > { %v3055_v31 = vsel %vm1033_vm1, %v3052_v30, %v3054_v57  ;;  %v3056_v40 = vsel %vm1033_vm1, %v3054_v57, %v3052_v30 }
 0x89e   : > { %v3057_v49 = vmul.f32 %v3056_v40, %v4284_v14  ;;  %v3058_v9 = vmul.f32 %v3055_v31, %v4288_v45 }
 0x89f   : > { %v3060_v29 = vpop.permute.xlu1 %3059 }
 0x8a0   : > { %v3109_v44 = vpack.c.bf16 %v3057_v49, %v3049_v11  ;;  %v3062_v43 = vpop.permute.xlu0 %3061  ;;  %v3110_v8 = vpack.c.bf16 %v3058_v9, %v3050_v58 }
 0x8a1   : > { %v3063_v46 = vsel %vm1074_vm2, %v3060_v29, %v3062_v43  ;;  %v3064_v41 = vsel %vm1074_vm2, %v3062_v43, %v3060_v29  ;;  %v3075_v29 = vmul.f32 %v6075_v56, %v4084_v61 }
 0x8a2   : > { %3129 = vmatprep.subr.bf16.mxu1 %v3110_v8  ;;  %v3065_v45 = vmul.f32 %v3064_v41, %v4037_v60  ;;  %v3066_v38 = vmul.f32 %v3063_v46, %v4349_v50 }
 0x8a3   : > { %v3068_v30 = vpop.permute.xlu1 %3067  ;;  %3130 = vmatpush1.bf16.msra.mxu1 %v3109_v44 }
 0x8a4   : > { %v3070_v0 = vpop.permute.xlu0 %3069 }
 0x8a5   : > { %v3071_v33 = vsel %vm1115_vm3, %v3068_v30, %v3070_v0  ;;  %v3072_v14 = vsel %vm1115_vm3, %v3070_v0, %v3068_v30 }
 0x8a6   : > { %v3073_v63 = vmul.f32 %v3072_v14, %v4044_v4  ;;  %v3074_v57 = vmul.f32 %v3071_v33, %v4058_v23  ;;  %v3076_v4 = vmul.f32 %v6077_v10, %v4088_v1 }
 0x8a7   : > { %v3078_v31 = vpop.permute.xlu1 %3077 }
 0x8a8   : > { %v3111_v40 = vpack.c.bf16 %v3073_v63, %v3065_v45  ;;  %v3080_v11 = vpop.permute.xlu0 %3079  ;;  %v3112_v58 = vpack.c.bf16 %v3074_v57, %v3066_v38 }
 0x8a9   : > { %v3081_v49 = vsel %vm1172_vm4, %v3078_v31, %v3080_v11  ;;  %v3082_v9 = vsel %vm1172_vm4, %v3080_v11, %v3078_v31  ;;  %v6361_v11 = vld [vmem:[#allocation3_spill] sm:$0xff] }
 0x8aa   : > { %v3083_v60 = vmul.f32 %v3081_v49, %v4091_v62  ;;  %v3084_v50 = vmul.f32 %v3082_v9, %v4101_v12  ;;  %3131 = vmatprep.subr.bf16.mxu1 %v3112_v58  ;;  %v3793_v58 = vld [vmem:[%s6268_s20 + $0x8] sm:$0xff]  }
 0x8ab   : > { %v3086_v23 = vpop.permute.xlu1 %3085  ;;  %3132 = vmatpush1.bf16.msra.mxu1 %v3111_v40 }
 0x8ac   : > { %v3113_v44 = vpack.c.bf16 %v3083_v60, %v3075_v29  ;;  %v3088_v43 = vpop.permute.xlu0 %3087  ;;  %v3114_v8 = vpack.c.bf16 %v3084_v50, %v3076_v4 }
 0x8ad   : > { %v3089_v46 = vsel %vm1213_vm5, %v3086_v23, %v3088_v43  ;;  %v3090_v61 = vsel %vm1213_vm5, %v3088_v43, %v3086_v23 }
 0x8ae   : > { %3133 = vmatprep.subr.bf16.mxu1 %v3114_v8  ;;  %v3091_v10 = vmul.f32 %v3089_v46, %v4104_v15  ;;  %v3092_v41 = vmul.f32 %v3090_v61, %v4108_v17 }
 0x8af   : > { %v3094_v56 = vpop.permute.xlu1 %3093  ;;  %3134 = vmatpush1.bf16.msra.mxu1 %v3113_v44 }
 0x8b0   : > { %v3096_v62 = vpop.permute.xlu0 %3095 }
 0x8b1   : > { %v3097_v12 = vsel %vm1254_vm6, %v3094_v56, %v3096_v62  ;;  %v3098_v1 = vsel %vm1254_vm6, %v3096_v62, %v3094_v56 }
 0x8b2   : > { %v3099_v30 = vmul.f32 %v3097_v12, %v4111_v18  ;;  %v3100_v0 = vmul.f32 %v3098_v1, %v4114_v27  ;;  %v3041_v27 = vld [vmem:[%s6264_s16] sm:$0xff] }
 0x8b3   : > { %v3102_v33 = vpop.permute.xlu1 %3101 }
 0x8b4   : > { %v3115_v14 = vpack.c.bf16 %v3099_v30, %v3091_v10  ;;  %v3104_v45 = vpop.permute.xlu0 %3103  ;;  %v3116_v38 = vpack.c.bf16 %v3100_v0, %v3092_v41 }
 0x8b5   : > { %v3105_v63 = vsel %vm1295_vm7, %v3102_v33, %v3104_v45  ;;  %v3106_v57 = vsel %vm1295_vm7, %v3104_v45, %v3102_v33 }
 0x8b6   : > { %v3107_v31 = vmul.f32 %v3105_v63, %v3986_v24  ;;  %v3108_v15 = vmul.f32 %v3106_v57, %v3976_v20  ;;  %3135 = vmatprep.subr.bf16.mxu1 %v3116_v38  ;;  %v3512_v24 = vcombine.high %v3041_v27, %v3041_v27  ;;  %v6362_v20 = vld [vmem:[#allocation2_spill] sm:$0xff] }
 0x8b7   : > { %3136 = vmatpush1.bf16.msra.mxu1 %v3115_v14 }
 0x8b8   : > { %v3117_v17 = vpack.c.bf16 %v3107_v31, %v3107_v31  ;;  %v3118_v18 = vpack.c.bf16 %v3108_v15, %v3108_v15 }
 0x8ba   : > { %3509 = vmatprep.subr.msk.bf16.mxu1 %vm2975_vm9, %v3118_v18  ;;  %v3124_v40 = vsel %vm2975_vm9, %v3117_v17, 0 }
 0x8bb   : > { %3138 = vmatpush1.bf16.msra.mxu1 %v3124_v40 }
 0x8bc   : > { %3183 = vmatprep.subr.bf16.mxu1 %v6361_v11 }
 0x8be   : > { %3510 = vmatmul.mubr.msk.bf16.vlgmr.msra.gmra.mrb[8].mxu1 %vm2971_vm10, %v3119_v35 }
 0x8bf   : > { %3184 = vmatpush1.bf16.msra.mxu1 %v6362_v20  ;;  %3215 = vmatprep.mubr.bf16.mxu1 %v3512_v24 }
 0x8c0   : > { %3185 = vmatprep.subr.bf16.mxu1 %v5699_v39  ;;  %v6364_v39 = vld [vmem:[#allocation5_spill] sm:$0xff] }
 0x8c3   : > { %3186 = vmatpush1.bf16.msra.mxu1 %v5695_v22  ;;  %v6363_v22 = vld [vmem:[#allocation4_spill] sm:$0xff] }
 0x8c4   : > { %3187 = vmatprep.subr.bf16.mxu1 %v5706_v19  ;;  %v6365_v19 = vld [vmem:[#allocation7_spill] sm:$0xff] }
 0x8c7   : > { %3188 = vmatpush1.bf16.msra.mxu1 %v5713_v37  ;;  %v3511_v37 = vcombine.low %v3041_v27, %v3041_v27 }
 0x8c8   : > { %3189 = vmatprep.subr.bf16.mxu1 %v5743_v16  ;;  %v6368_v16 = vld [vmem:[#allocation8_spill] sm:$0xff] }
 0x8cb   : > { %3190 = vmatpush1.bf16.msra.mxu1 %v5739_v55  ;;  %v6367_v55 = vld [vmem:[#allocation9_spill] sm:$0xff] }
 0x8cc   : > { %3191 = vmatprep.subr.bf16.mxu1 %v5751_v7  ;;  %v6369_v7 = vld [vmem:[#allocation11_spill] sm:$0xff] }
 0x8cf   : > { %3192 = vmatpush1.bf16.msra.mxu1 %v5758_v5  ;;  %v6370_v5 = vld [vmem:[#allocation10_spill] sm:$0xff] }
 0x8d0   : > { %3193 = vmatprep.subr.bf16.mxu1 %v5790_v34  ;;  %v3269_v34 = vpop.permute.xlu1 %3268 }
 0x8d3   : > { %3194 = vmatpush1.bf16.msra.mxu1 %v5786_v21  ;;  %v3791_v21 = vld [vmem:[%s6264_s16 + $0x8] ss:$0 sps:$4 sm:$0xff]  }
 0x8d4   : > { %3195 = vmatprep.subr.bf16.mxu1 %v5794_v47  ;;  %v3296_v49 = vpop.permute.xlu1 %3295 }
 0x8d7   : > { %3196 = vmatpush1.bf16.msra.mxu1 %v5805_v13 }
 0x8d8   : > { %3197 = vmatprep.subr.bf16.mxu1 %v5822_v52  ;;  %v3277_v52 = vpop.permute.xlu0 %3276  ;;  %v3306_v8 = vpop.permute.xlu1 %3305 }
 0x8db   : > { %3198 = vmatpush1.bf16.msra.mxu1 %v5820_v59 }
 0x8dc   : > { %3199 = vmatprep.subr.bf16.mxu1 %v5829_v32  ;;  %v3301_v50 = vpop.permute.xlu0 %3300 }
 0x8df   : > { %3200 = vmatpush1.bf16.msra.mxu1 %v5839_v26 }
 0x8e0   : > { %3201 = vmatprep.subr.bf16.mxu1 %v5843_v3  ;;  %v3311_v62 = vpop.permute.xlu0 %3310 }
 0x8e3   : > { %3202 = vmatpush1.bf16.msra.mxu1 %v5852_v53 }
 0x8e4   : > { %3203 = vmatprep.subr.bf16.mxu1 %v6363_v22 }
 0x8e7   : > { %3204 = vmatpush1.bf16.msra.mxu1 %v5658_v2  ;;  %v6366_v2 = vld [vmem:[#allocation6_spill] sm:$0xff] }
 0x8e8   : > { %3205 = vmatprep.subr.bf16.mxu1 %v5887_v42 }
 0x8eb   : > { %3206 = vmatpush1.bf16.msra.mxu1 %v5885_v28 }
 0x8ec   : > { %3207 = vmatprep.subr.bf16.mxu1 %v6364_v39 }
 0x8ef   : > { %3208 = vmatpush1.bf16.msra.mxu1 %v5900_v54 }
 0x8f0   : > { %3209 = vmatprep.subr.bf16.mxu1 %v5922_v36 }
 0x8f3   : > { %3210 = vmatpush1.bf16.msra.mxu1 %v5920_v51 }
 0x8f4   : > { %3211 = vmatprep.subr.bf16.mxu1 %v5926_v6 }
 0x8f7   : > { %3212 = vmatpush1.bf16.msra.mxu1 %v5935_v25  ;;  %v3792_v25 = vld [vmem:[%s6268_s20] sm:$0xff]  }
 0x8f8   : > { %3213 = vmatprep.subr.bf16.mxu1 %v6365_v19 }
 0x8fb   : > { %3214 = vmatpush1.bf16.msra.mxu1 %v6366_v2 }
 0x8fc   : > { %3224 = vmatprep.subr.bf16.mxu1 %v6367_v55 }
 0x8fe   : > { %3216 = vmatmul.mubr.bf16.vlgmr.msra.gmra.mrb[8].mxu1 %v3511_v37 }
 0x8ff   : > { %3225 = vmatpush1.bf16.msra.mxu1 %v6368_v16  ;;  %3256 = vmatprep.mubr.bf16.mxu1 %v6358_v48 }
 0x900   : > { %3226 = vmatprep.subr.bf16.mxu1 %v6369_v7 }
 0x903   : > { %3227 = vmatpush1.bf16.msra.mxu1 %v6370_v5 }
 0x90a   : > { %3514 = vmatmul.mubr.msk.bf16.vlgmr.msra.gmra.mrb[8].mxu1 %vm1702_vm8, %v3791_v21 }
 0x9dd   : > { %v3258_v47 = vpop.f32.mrb[8].mxu1 }
 0x9de   : > { %v3271_v13 = vmul.f32 %v3269_v34, %v3258_v47  ;;  %v3260_v59 = vpop.f32.mrb[9].mxu1 }
 0x9df   : > { %v3272_v32 = vmul.f32 %v3269_v34, %v3260_v59  ;;  %v3262_v26 = vpop.f32.mrb[10].mxu1 }
 0x9e0   : > { %v3279_v3 = vadd.f32 %v3277_v52, %v3271_v13  ;;  %v3263_v53 = vpop.f32.mrb[11].mxu1 }
 0x9e1   : > { %v3280_v28 = vadd.f32 %v3277_v52, %v3272_v32 }
 0x9e2   : > { %v3281_v42 = vmax.f32 %v3279_v3, 0.0 }
 0x9e3   : > { %v3282_v51 = vmax.f32 %v3280_v28, 0.0 }
 0x9e4   : > { %v3287_v54 = vpack.c.bf16 %v3281_v42, %v3281_v42 }
 0x9e5   : > { %v3288_v36 = vpack.c.bf16 %v3282_v51, %v3282_v51 }
 0x9e6   : > { %v3331_v6 = vsel %vm2975_vm9, %v3287_v54, 0 }
 0x9e7   : > { %3517 = vmatprep.subr.msk.bf16.mxu0 %vm2975_vm9, %v3288_v36 }
 0x9e8   : > { %3337 = vmatpush1.bf16.msra.mxu0 %v3331_v6 }
 0x9eb   : > { %3518 = vmatmul.mubr.msk.bf16.vlgmr.msra.gmra.mrb[24].mxu0 %vm3323_vm11, %v3792_v25 }
 0x9ec   : > { %3378 = vmatprep.mubr.bf16.mxu0 %v6358_v48 }
 0x9f3   : > { %3519 = vmatmul.mubr.msk.bf16.gmra.mrb[28].mxu0 %vm3323_vm11, %v3793_v58 }
 0xabe   : > { %v3370_v9 = vpop.f32.mrb[24].mxu0 }
 0xabf   : > { %v3371_v29 = vadd.f32 %v3370_v9, %v3296_v49  ;;  %v3372_v60 = vpop.f32.mrb[25].mxu0 }
 0xac0   : > { %v3373_v4 = vadd.f32 %v3372_v60, %v3296_v49  ;;  %v3374_v23 = vpop.f32.mrb[26].mxu0 }
 0xac1   : > { %3389 = vst [vmem:[%s703_s30] sm:$0xff] %v3371_v29  ;;  %v3375_v44 = vadd.f32 %v3374_v23, %v3301_v50  ;;  %v3376_v48 = vpop.f32.mrb[27].mxu0 }
 0xac2   : > { %3390 = vst [vmem:[%s703_s30 + $0x8] sm:$0xff] %v3373_v4  ;;  %v3377_v43 = vadd.f32 %v3376_v48, %v3301_v50 }
 0xac3   : > { %3391 = vst [vmem:[%s703_s30 + $0x10] sm:$0xff] %v3375_v44 }
 0xac4   : > { %3392 = vst [vmem:[%s703_s30 + $0x18] sm:$0xff] %v3377_v43 }
 0xac6   : > { %v3380_v46 = vpop.f32.mrb[28].mxu0 }
 0xac7   : > { %v3381_v61 = vadd.f32 %v3380_v46, %v3306_v8  ;;  %v3382_v56 = vpop.f32.mrb[29].mxu0 }
 0xac8   : > { %v3383_v12 = vadd.f32 %v3382_v56, %v3306_v8  ;;  %v3384_v1 = vpop.f32.mrb[30].mxu0 }
 0xac9   : > { %3393 = vst [vmem:[%s703_s30 + $0x20] sm:$0xff] %v3381_v61  ;;  %v3385_v10 = vadd.f32 %v3384_v1, %v3311_v62  ;;  %v3386_v41 = vpop.f32.mrb[31].mxu0 }
 0xaca   : > { %3394 = vst [vmem:[%s703_s30 + $0x28] sm:$0xff] %v3383_v12  ;;  %v3387_v30 = vadd.f32 %v3386_v41, %v3311_v62 }
 0xacb   : > { %3395 = vst [vmem:[%s703_s30 + $0x30] sm:$0xff] %v3385_v10 }
 0xacc   : > { %3396 = vst [vmem:[%s703_s30 + $0x38] sm:$0xff] %v3387_v30 }
 0xacd PF: > { %s32_s3 = sadd.s32 1, %s3800_s3  }
 0xace   : > { %p29_p4 = scmp.ge.s32.totalorder %s32_s3, 4  }
 0xad0   :  { %31 = sbr.rel (!%p29_p4) target bundleno = 9 (0x9), region = 141 }

</bundles_post_ra>
